<compile_context>
chip_gen: v6e
topology: v6e:2x2x1
jax: 0.10.0
libtpu: 0.0.40
codegen_flags: <defaults>
</compile_context>

<pallas_src>
import functools

import numpy as np
import jax
import jax.numpy as jnp
from jax import lax
from jax.experimental import pallas as pl
from jax.experimental.pallas import tpu as pltpu


# ----------------------------------------------------------------------------
# In-kernel building blocks (everything operates on a resident (C, HW) tile)
# ----------------------------------------------------------------------------
def _roll_lanes(a, shift):
    """out[:, j] = a[:, (j + shift) % n] for a static shift (two slices + concat)."""
    n = a.shape[-1]
    shift = shift % n
    if shift == 0:
        return a
    return jnp.concatenate([a[:, shift:], a[:, :shift]], axis=-1)


def _conv_ca_relu_block(act, masks_ref, cw_ref, cb_ref, w1_ref, b1_ref, w2_ref, b2_ref,
                        width):
    """conv3x3 (in-kernel im2col via masked lane rolls) + ChannelAttention + ReLU.

    act: (Cin, HW) resident tile.  Returns (Cout, HW).
    """
    acc = None
    tap = 0
    for dy in (-1, 0, 1):
        for dx in (-1, 0, 1):
            src = _roll_lanes(act, dy * width + dx)
            if tap != 4:                      # center tap never crosses the border
                src = src * masks_ref[tap]    # (1, HW) 0/1 boundary mask (zero padding)
            term = jnp.dot(cw_ref[tap], src, preferred_element_type=jnp.float32)
            acc = term if acc is None else acc + term
            tap += 1
    y = acc + cb_ref[...]                                               # (Cout, HW)

    # Channel attention (CBAM-style: fc(avg + max)), applied pre-ReLU as in PyTorch.
    stats = (jnp.mean(y, axis=-1, keepdims=True)
             + jnp.max(y, axis=-1, keepdims=True))                      # (Cout, 1)
    hid = jnp.maximum(
        jnp.dot(w1_ref[...], stats, preferred_element_type=jnp.float32) + b1_ref[...],
        0.0)
    att = jax.nn.sigmoid(
        jnp.dot(w2_ref[...], hid, preferred_element_type=jnp.float32) + b2_ref[...])
    return jnp.maximum(y * att, 0.0)                                    # ReLU(CA(conv(x)))


def _spatial_attention_block(act, pool, wqT_ref, bq_ref, wkT_ref, bk_ref,
                             wv_ref, bv_ref, up_ref):
    """SpatialAttention on a resident (C, HW) tile (gamma folded into up_ref)."""
    # Adaptive average pooling as one matmul against the host-built (S, HW) matrix.
    xdT = lax.dot_general(pool, act, (((1,), (1,)), ((), ())),
                          preferred_element_type=jnp.float32)           # (S, C)
    qT = jnp.dot(xdT, wqT_ref[...], preferred_element_type=jnp.float32) + bq_ref[...]  # (S, P)
    kT = jnp.dot(xdT, wkT_ref[...], preferred_element_type=jnp.float32) + bk_ref[...]  # (S, P)
    v = lax.dot_general(wv_ref[...], xdT, (((1,), (1,)), ((), ())),
                        preferred_element_type=jnp.float32) + bv_ref[...]               # (C, S)

    # attn[s1, s2] = softmax_s2(<q[:, s1], k[:, s2]>)
    logits = lax.dot_general(qT, kT, (((1,), (1,)), ((), ())),
                             preferred_element_type=jnp.float32)        # (S, S)
    logits = logits - jnp.max(logits, axis=-1, keepdims=True)
    e = jnp.exp(logits)
    attn = e * pl.reciprocal(jnp.sum(e, axis=-1, keepdims=True), approx=True)

    out = lax.dot_general(v, attn, (((1,), (1,)), ((), ())),
                          preferred_element_type=jnp.float32)           # (C, S)
    up = jnp.dot(out, up_ref[...], preferred_element_type=jnp.float32)  # (C, HW)  gamma*upsample
    return up + act


def _fused_kernel(*refs, width):
    """Entire CNNBranch forward for one batch element, resident in VMEM."""
    (x_ref, masks_ref, pool_ref,
     c1w_ref, c1b_ref, ca1w1_ref, ca1b1_ref, ca1w2_ref, ca1b2_ref,
     sa1wq_ref, sa1bq_ref, sa1wk_ref, sa1bk_ref, sa1wv_ref, sa1bv_ref, sa1up_ref,
     c2w_ref, c2b_ref, ca2w1_ref, ca2b1_ref, ca2w2_ref, ca2b2_ref,
     sa2wq_ref, sa2bq_ref, sa2wk_ref, sa2bk_ref, sa2wv_ref, sa2bv_ref, sa2up_ref,
     o_ref) = refs

    pool = pool_ref[...]
    y = x_ref[0]                                                        # (Cin, HW)
    y = _conv_ca_relu_block(y, masks_ref, c1w_ref, c1b_ref,
                            ca1w1_ref, ca1b1_ref, ca1w2_ref, ca1b2_ref, width)
    y = _spatial_attention_block(y, pool, sa1wq_ref, sa1bq_ref, sa1wk_ref, sa1bk_ref,
                                 sa1wv_ref, sa1bv_ref, sa1up_ref)
    y = _conv_ca_relu_block(y, masks_ref, c2w_ref, c2b_ref,
                            ca2w1_ref, ca2b1_ref, ca2w2_ref, ca2b2_ref, width)
    y = _spatial_attention_block(y, pool, sa2wq_ref, sa2bq_ref, sa2wk_ref, sa2bk_ref,
                                 sa2wv_ref, sa2bv_ref, sa2up_ref)
    o_ref[0] = y                                    # (Cout, HW): lane-dense, already NCHW


# ----------------------------------------------------------------------------
# Host-side constant matrices (layout-only, deterministic from shapes)
# ----------------------------------------------------------------------------
def _adaptive_avg_matrix(in_size, out_size):
    """(out_size, in_size) matrix implementing torch adaptive_avg_pool1d."""
    m = np.zeros((out_size, in_size), dtype=np.float32)
    for o in range(out_size):
        start = (o * in_size) // out_size
        end = -((-(o + 1) * in_size) // out_size)  # ceil
        m[o, start:end] = 1.0 / (end - start)
    return m


def _bilinear_matrix(in_size, out_size):
    """(out_size, in_size) matrix implementing torch bilinear resize (align_corners=False)."""
    m = np.zeros((out_size, in_size), dtype=np.float32)
    if in_size == 1:
        m[:, 0] = 1.0
        return m
    scale = in_size / out_size
    for o in range(out_size):
        src = max((o + 0.5) * scale - 0.5, 0.0)
        i0 = min(int(np.floor(src)), in_size - 1)
        i1 = min(i0 + 1, in_size - 1)
        lam = src - i0
        m[o, i0] += 1.0 - lam
        m[o, i1] += lam
    return m


def _conv_boundary_masks(H, W):
    """(9, 1, HW) 0/1 masks: tap (dy,dx) is valid where the 3x3 neighbour is in-bounds."""
    m = np.zeros((9, 1, H * W), np.float32)
    tap = 0
    for dy in (-1, 0, 1):
        for dx in (-1, 0, 1):
            for h in range(H):
                for w in range(W):
                    if 0 <= h + dy < H and 0 <= w + dx < W:
                        m[tap, 0, h * W + w] = 1.0
            tap += 1
    return m


# ----------------------------------------------------------------------------
# One-time weight packing (hoisted out of the forward pass)
# ----------------------------------------------------------------------------
def pack_params(p, H, W, reduction=4):
    th, tw = max(1, H // reduction), max(1, W // reduction)

    pool = jnp.asarray(np.kron(_adaptive_avg_matrix(H, th),
                               _adaptive_avg_matrix(W, tw)), jnp.float32)      # (S, HW)
    up_t = jnp.asarray(np.kron(_bilinear_matrix(th, H),
                               _bilinear_matrix(tw, W)).T, jnp.float32)        # (S, HW)
    masks = jnp.asarray(_conv_boundary_masks(H, W))                            # (9, 1, HW)

    def conv_w(w):  # (Cout, Cin, 3, 3) -> (9, Cout, Cin), tap = (dy+1)*3 + (dx+1)
        co, ci = w.shape[0], w.shape[1]
        return jnp.transpose(w, (2, 3, 0, 1)).reshape(9, co, ci)

    col = lambda b: b.reshape(-1, 1)
    row = lambda b: b.reshape(1, -1)

    pk = {"masks": masks, "pool": pool}
    for i in (1, 2):
        c = p[f"conv{i}_b"].shape[0]
        proj = p[f"sa{i}_q_w"].shape[0]
        pk[f"c{i}_w"] = conv_w(p[f"conv{i}_w"])
        pk[f"c{i}_b"] = col(p[f"conv{i}_b"])
        pk[f"ca{i}_w1"] = p[f"ca{i}_fc1_w"]                   # (C//16, C)
        pk[f"ca{i}_b1"] = col(p[f"ca{i}_fc1_b"])
        pk[f"ca{i}_w2"] = p[f"ca{i}_fc2_w"]                   # (C, C//16)
        pk[f"ca{i}_b2"] = col(p[f"ca{i}_fc2_b"])
        pk[f"sa{i}_wqT"] = p[f"sa{i}_q_w"].reshape(proj, c).T  # (C, C//8)
        pk[f"sa{i}_bq"] = row(p[f"sa{i}_q_b"])
        pk[f"sa{i}_wkT"] = p[f"sa{i}_k_w"].reshape(proj, c).T
        pk[f"sa{i}_bk"] = row(p[f"sa{i}_k_b"])
        pk[f"sa{i}_wv"] = p[f"sa{i}_v_w"].reshape(c, c)
        pk[f"sa{i}_bv"] = col(p[f"sa{i}_v_b"])
        pk[f"sa{i}_upT"] = p[f"sa{i}_gamma"][0] * up_t         # gamma folded into upsample
    return pk


# ----------------------------------------------------------------------------
# Pallas wrapper: single fused pallas_call
# ----------------------------------------------------------------------------
def cnn_branch(x_nchw, pk):
    """CNNBranch forward: (B, Cin, H, W) -> (B, out_channels, H, W)."""
    B, Cin, H, W = x_nchw.shape
    HW = H * W
    C2 = pk["c2_b"].shape[0]

    operands = [
        x_nchw.reshape(B, Cin, HW).astype(jnp.float32),
        pk["masks"], pk["pool"],
        pk["c1_w"], pk["c1_b"], pk["ca1_w1"], pk["ca1_b1"], pk["ca1_w2"], pk["ca1_b2"],
        pk["sa1_wqT"], pk["sa1_bq"], pk["sa1_wkT"], pk["sa1_bk"],
        pk["sa1_wv"], pk["sa1_bv"], pk["sa1_upT"],
        pk["c2_w"], pk["c2_b"], pk["ca2_w1"], pk["ca2_b1"], pk["ca2_w2"], pk["ca2_b2"],
        pk["sa2_wqT"], pk["sa2_bq"], pk["sa2_wkT"], pk["sa2_bk"],
        pk["sa2_wv"], pk["sa2_bv"], pk["sa2_upT"],
    ]

    def invariant(a):                       # grid-invariant (weights / constants)
        zeros = (0,) * a.ndim

        def idx(b):
            return zeros

        return pl.BlockSpec(a.shape, idx)

    in_specs = ([pl.BlockSpec((1, Cin, HW), lambda b: (b, 0, 0))]
                + [invariant(a) for a in operands[1:]])

    out = pl.pallas_call(
        functools.partial(_fused_kernel, width=W),
        out_shape=jax.ShapeDtypeStruct((B, C2, HW), jnp.float32),
        grid=(B,),
        in_specs=in_specs,
        out_specs=pl.BlockSpec((1, C2, HW), lambda b: (b, 0, 0)),
        compiler_params=pltpu.CompilerParams(dimension_semantics=("parallel",)),
    )(*operands)
    return out.reshape(B, C2, H, W)


# ----------------------------------------------------------------------------
# Pure-JAX reference (matches PyTorch semantics; default matmul precision)
# ----------------------------------------------------------------------------
def _conv3x3_ref(x_nhwc, w, b):
    y = lax.conv_general_dilated(
        x_nhwc, jnp.transpose(w, (2, 3, 1, 0)),
        window_strides=(1, 1), padding=((1, 1), (1, 1)),
        dimension_numbers=("NHWC", "HWIO", "NHWC"))
    return y + b[None, None, None, :]


def _channel_attention_ref(y, w1, b1, w2, b2):
    s = y.mean(axis=(1, 2)) + y.max(axis=(1, 2))
    h = jax.nn.relu(s @ w1.T + b1)
    att = jax.nn.sigmoid(h @ w2.T + b2)
    return y * att[:, None, None, :]


def _bilinear_upsample_ref(x, H, W):
    B, th, tw, C = x.shape

    def coords(out_size, in_size):
        src = jnp.maximum((jnp.arange(out_size, dtype=jnp.float32) + 0.5)
                          * (in_size / out_size) - 0.5, 0.0)
        i0 = jnp.minimum(jnp.floor(src).astype(jnp.int32), in_size - 1)
        i1 = jnp.minimum(i0 + 1, in_size - 1)
        lam = src - i0.astype(jnp.float32)
        return i0, i1, lam

    r0, r1, rl = coords(H, th)
    c0, c1, cl = coords(W, tw)
    xr = x[:, r0] * (1.0 - rl)[None, :, None, None] + x[:, r1] * rl[None, :, None, None]
    return (xr[:, :, c0] * (1.0 - cl)[None, None, :, None]
            + xr[:, :, c1] * cl[None, None, :, None])


def _spatial_attention_ref(x, wq, bq, wk, bk, wv, bv, gamma, reduction=4):
    B, H, W, C = x.shape
    th, tw = max(1, H // reduction), max(1, W // reduction)
    xd = x.reshape(B, th, H // th, tw, W // tw, C).mean(axis=(2, 4))
    S = th * tw
    xdf = xd.reshape(B, S, C)
    P = wq.shape[0]
    q = xdf @ wq.reshape(P, C).T + bq
    k = xdf @ wk.reshape(P, C).T + bk
    v = xdf @ wv.reshape(C, C).T + bv
    attn = jax.nn.softmax(jnp.einsum("bsc,btc->bst", q, k), axis=-1)
    out = jnp.einsum("bst,btc->bsc", attn, v).reshape(B, th, tw, C)
    up = _bilinear_upsample_ref(out, H, W)
    return gamma * up + x


def cnn_branch_ref(x_nchw, p):
    x = jnp.transpose(x_nchw, (0, 2, 3, 1)).astype(jnp.float32)
    y = _conv3x3_ref(x, p["conv1_w"], p["conv1_b"])
    y = _channel_attention_ref(y, p["ca1_fc1_w"], p["ca1_fc1_b"], p["ca1_fc2_w"], p["ca1_fc2_b"])
    y = jax.nn.relu(y)
    y = _spatial_attention_ref(y, p["sa1_q_w"], p["sa1_q_b"], p["sa1_k_w"], p["sa1_k_b"],
                               p["sa1_v_w"], p["sa1_v_b"], p["sa1_gamma"])
    y = _conv3x3_ref(y, p["conv2_w"], p["conv2_b"])
    y = _channel_attention_ref(y, p["ca2_fc1_w"], p["ca2_fc1_b"], p["ca2_fc2_w"], p["ca2_fc2_b"])
    y = jax.nn.relu(y)
    y = _spatial_attention_ref(y, p["sa2_q_w"], p["sa2_q_b"], p["sa2_k_w"], p["sa2_k_b"],
                               p["sa2_v_w"], p["sa2_v_b"], p["sa2_gamma"])
    return jnp.transpose(y, (0, 3, 1, 2))


# ----------------------------------------------------------------------------
# Params
# ----------------------------------------------------------------------------
def init_params(key, in_channels=8, out_channels=64):
    ks = iter(jax.random.split(key, 32))
    scale = 0.1

    def nrm(shape):
        return scale * jax.random.normal(next(ks), shape, jnp.float32)

    c1, c2 = 32, out_channels
    return {
        "conv1_w": nrm((c1, in_channels, 3, 3)), "conv1_b": nrm((c1,)),
        "ca1_fc1_w": nrm((c1 // 16, c1)), "ca1_fc1_b": nrm((c1 // 16,)),
        "ca1_fc2_w": nrm((c1, c1 // 16)), "ca1_fc2_b": nrm((c1,)),
        "sa1_q_w": nrm((c1 // 8, c1, 1, 1)), "sa1_q_b": nrm((c1 // 8,)),
        "sa1_k_w": nrm((c1 // 8, c1, 1, 1)), "sa1_k_b": nrm((c1 // 8,)),
        "sa1_v_w": nrm((c1, c1, 1, 1)), "sa1_v_b": nrm((c1,)),
        # PyTorch initializes gamma to 0; use nonzero so the attention path is exercised.
        "sa1_gamma": jnp.asarray([0.5], jnp.float32),
        "conv2_w": nrm((c2, c1, 3, 3)), "conv2_b": nrm((c2,)),
        "ca2_fc1_w": nrm((c2 // 16, c2)), "ca2_fc1_b": nrm((c2 // 16,)),
        "ca2_fc2_w": nrm((c2, c2 // 16)), "ca2_fc2_b": nrm((c2,)),
        "sa2_q_w": nrm((c2 // 8, c2, 1, 1)), "sa2_q_b": nrm((c2 // 8,)),
        "sa2_k_w": nrm((c2 // 8, c2, 1, 1)), "sa2_k_b": nrm((c2 // 8,)),
        "sa2_v_w": nrm((c2, c2, 1, 1)), "sa2_v_b": nrm((c2,)),
        "sa2_gamma": jnp.asarray([0.5], jnp.float32),
    }


if __name__ == "__main__":
    key = jax.random.PRNGKey(0)
    k_x, k_p = jax.random.split(key)

    batch, in_channels, height, width, out_channels = 2, 8, 16, 16, 64
    x = jax.random.normal(k_x, (batch, in_channels, height, width), jnp.float32)
    params = init_params(k_p, in_channels, out_channels)

    packed = pack_params(params, height, width)     # hoisted: built once, reused per call
    fwd = jax.jit(cnn_branch)

    out = jax.block_until_ready(fwd(x, packed))
    ref = jax.block_until_ready(cnn_branch_ref(x, params))

    assert out.shape == (batch, out_channels, height, width)
    max_diff = float(jnp.max(jnp.abs(out - ref)))
    # Both paths run at default (bf16-pass) matmul precision -> moderate tolerance.
    assert jnp.allclose(out, ref, atol=3e-2, rtol=3e-2), f"mismatch vs reference (max diff {max_diff})"
    print("KERNEL_OK")
</pallas_src>

<mosaic_0001>
module attributes {stable_mosaic.version = 11 : i64} {
  func.func @_fused_kernel(%arg0: i32, %arg1: memref<1x8x256xf32, #tpu.memory_space<vmem>>, %arg2: memref<9x1x256xf32, #tpu.memory_space<vmem>>, %arg3: memref<16x256xf32, #tpu.memory_space<vmem>>, %arg4: memref<9x32x8xf32, #tpu.memory_space<vmem>>, %arg5: memref<32x1xf32, #tpu.memory_space<vmem>>, %arg6: memref<2x32xf32, #tpu.memory_space<vmem>>, %arg7: memref<2x1xf32, #tpu.memory_space<vmem>>, %arg8: memref<32x2xf32, #tpu.memory_space<vmem>>, %arg9: memref<32x1xf32, #tpu.memory_space<vmem>>, %arg10: memref<32x4xf32, #tpu.memory_space<vmem>>, %arg11: memref<1x4xf32, #tpu.memory_space<vmem>>, %arg12: memref<32x4xf32, #tpu.memory_space<vmem>>, %arg13: memref<1x4xf32, #tpu.memory_space<vmem>>, %arg14: memref<32x32xf32, #tpu.memory_space<vmem>>, %arg15: memref<32x1xf32, #tpu.memory_space<vmem>>, %arg16: memref<16x256xf32, #tpu.memory_space<vmem>>, %arg17: memref<9x64x32xf32, #tpu.memory_space<vmem>>, %arg18: memref<64x1xf32, #tpu.memory_space<vmem>>, %arg19: memref<4x64xf32, #tpu.memory_space<vmem>>, %arg20: memref<4x1xf32, #tpu.memory_space<vmem>>, %arg21: memref<64x4xf32, #tpu.memory_space<vmem>>, %arg22: memref<64x1xf32, #tpu.memory_space<vmem>>, %arg23: memref<64x8xf32, #tpu.memory_space<vmem>>, %arg24: memref<1x8xf32, #tpu.memory_space<vmem>>, %arg25: memref<64x8xf32, #tpu.memory_space<vmem>>, %arg26: memref<1x8xf32, #tpu.memory_space<vmem>>, %arg27: memref<64x64xf32, #tpu.memory_space<vmem>>, %arg28: memref<64x1xf32, #tpu.memory_space<vmem>>, %arg29: memref<16x256xf32, #tpu.memory_space<vmem>>, %arg30: memref<1x64x256xf32, #tpu.memory_space<vmem>>) attributes {dimension_semantics = [#tpu.dimension_semantics<parallel>], iteration_bounds = array<i64: 2>, scalar_prefetch = 0 : i64, scratch_operands = 0 : i64, tpu.core_type = #tpu.core_type<tc>, window_params = [{transform_indices = @transform_0, window_bounds = array<i64: 1, 8, 256>}, {pipeline_mode = #tpu.pipeline_mode<synchronous>, transform_indices = @transform_1, window_bounds = array<i64: 9, 1, 256>}, {pipeline_mode = #tpu.pipeline_mode<synchronous>, transform_indices = @transform_2, window_bounds = array<i64: 16, 256>}, {pipeline_mode = #tpu.pipeline_mode<synchronous>, transform_indices = @transform_3, window_bounds = array<i64: 9, 32, 8>}, {pipeline_mode = #tpu.pipeline_mode<synchronous>, transform_indices = @transform_4, window_bounds = array<i64: 32, 1>}, {pipeline_mode = #tpu.pipeline_mode<synchronous>, transform_indices = @transform_5, window_bounds = array<i64: 2, 32>}, {pipeline_mode = #tpu.pipeline_mode<synchronous>, transform_indices = @transform_6, window_bounds = array<i64: 2, 1>}, {pipeline_mode = #tpu.pipeline_mode<synchronous>, transform_indices = @transform_7, window_bounds = array<i64: 32, 2>}, {pipeline_mode = #tpu.pipeline_mode<synchronous>, transform_indices = @transform_8, window_bounds = array<i64: 32, 1>}, {pipeline_mode = #tpu.pipeline_mode<synchronous>, transform_indices = @transform_9, window_bounds = array<i64: 32, 4>}, {pipeline_mode = #tpu.pipeline_mode<synchronous>, transform_indices = @transform_10, window_bounds = array<i64: 1, 4>}, {pipeline_mode = #tpu.pipeline_mode<synchronous>, transform_indices = @transform_11, window_bounds = array<i64: 32, 4>}, {pipeline_mode = #tpu.pipeline_mode<synchronous>, transform_indices = @transform_12, window_bounds = array<i64: 1, 4>}, {pipeline_mode = #tpu.pipeline_mode<synchronous>, transform_indices = @transform_13, window_bounds = array<i64: 32, 32>}, {pipeline_mode = #tpu.pipeline_mode<synchronous>, transform_indices = @transform_14, window_bounds = array<i64: 32, 1>}, {pipeline_mode = #tpu.pipeline_mode<synchronous>, transform_indices = @transform_15, window_bounds = array<i64: 16, 256>}, {pipeline_mode = #tpu.pipeline_mode<synchronous>, transform_indices = @transform_16, window_bounds = array<i64: 9, 64, 32>}, {pipeline_mode = #tpu.pipeline_mode<synchronous>, transform_indices = @transform_17, window_bounds = array<i64: 64, 1>}, {pipeline_mode = #tpu.pipeline_mode<synchronous>, transform_indices = @transform_18, window_bounds = array<i64: 4, 64>}, {pipeline_mode = #tpu.pipeline_mode<synchronous>, transform_indices = @transform_19, window_bounds = array<i64: 4, 1>}, {pipeline_mode = #tpu.pipeline_mode<synchronous>, transform_indices = @transform_20, window_bounds = array<i64: 64, 4>}, {pipeline_mode = #tpu.pipeline_mode<synchronous>, transform_indices = @transform_21, window_bounds = array<i64: 64, 1>}, {pipeline_mode = #tpu.pipeline_mode<synchronous>, transform_indices = @transform_22, window_bounds = array<i64: 64, 8>}, {pipeline_mode = #tpu.pipeline_mode<synchronous>, transform_indices = @transform_23, window_bounds = array<i64: 1, 8>}, {pipeline_mode = #tpu.pipeline_mode<synchronous>, transform_indices = @transform_24, window_bounds = array<i64: 64, 8>}, {pipeline_mode = #tpu.pipeline_mode<synchronous>, transform_indices = @transform_25, window_bounds = array<i64: 1, 8>}, {pipeline_mode = #tpu.pipeline_mode<synchronous>, transform_indices = @transform_26, window_bounds = array<i64: 64, 64>}, {pipeline_mode = #tpu.pipeline_mode<synchronous>, transform_indices = @transform_27, window_bounds = array<i64: 64, 1>}, {pipeline_mode = #tpu.pipeline_mode<synchronous>, transform_indices = @transform_28, window_bounds = array<i64: 16, 256>}, {transform_indices = @transform_29, window_bounds = array<i64: 1, 64, 256>}]} {
    %c0 = arith.constant 0 : index
    %c0_0 = arith.constant 0 : index
    %0 = vector.load %arg3[%c0, %c0_0] : memref<16x256xf32, #tpu.memory_space<vmem>>, vector<16x256xf32>
    %c0_1 = arith.constant 0 : index
    %c0_2 = arith.constant 0 : index
    %c0_3 = arith.constant 0 : index
    %1 = vector.load %arg1[%c0_1, %c0_2, %c0_3] : memref<1x8x256xf32, #tpu.memory_space<vmem>>, vector<1x8x256xf32>
    %2 = vector.shape_cast %1 : vector<1x8x256xf32> to vector<8x256xf32>
    %3 = vector.extract_strided_slice %2 {offsets = [0, 239], sizes = [8, 17], strides = [1, 1]} : vector<8x256xf32> to vector<8x17xf32>
    %4 = vector.extract_strided_slice %2 {offsets = [0, 0], sizes = [8, 239], strides = [1, 1]} : vector<8x256xf32> to vector<8x239xf32>
    %5 = tpu.concatenate %3, %4 in 1 : vector<8x17xf32>, vector<8x239xf32> -> vector<8x256xf32>
    %c0_4 = arith.constant 0 : index
    %c0_5 = arith.constant 0 : index
    %c0_6 = arith.constant 0 : index
    %6 = vector.load %arg2[%c0_4, %c0_5, %c0_6] : memref<9x1x256xf32, #tpu.memory_space<vmem>>, vector<1x1x256xf32>
    %7 = vector.shape_cast %6 : vector<1x1x256xf32> to vector<1x256xf32>
    %8 = vector.broadcast %7 : vector<1x256xf32> to vector<8x256xf32>
    %9 = arith.mulf %5, %8 : vector<8x256xf32>
    %c0_7 = arith.constant 0 : index
    %c0_8 = arith.constant 0 : index
    %c0_9 = arith.constant 0 : index
    %10 = vector.load %arg4[%c0_7, %c0_8, %c0_9] : memref<9x32x8xf32, #tpu.memory_space<vmem>>, vector<1x32x8xf32>
    %11 = vector.shape_cast %10 : vector<1x32x8xf32> to vector<32x8xf32>
    %cst = arith.constant dense<0.000000e+00> : vector<32x256xf32>
    %12 = tpu.matmul %11, %9, %cst {dimension_numbers = #tpu.dot_dimension_numbers<[1], [0], [0], [1], [0, 0, 1, 1], [], []>} : vector<32x8xf32>, vector<8x256xf32>, vector<32x256xf32> -> vector<32x256xf32>
    %13 = vector.extract_strided_slice %2 {offsets = [0, 240], sizes = [8, 16], strides = [1, 1]} : vector<8x256xf32> to vector<8x16xf32>
    %14 = vector.extract_strided_slice %2 {offsets = [0, 0], sizes = [8, 240], strides = [1, 1]} : vector<8x256xf32> to vector<8x240xf32>
    %15 = tpu.concatenate %13, %14 in 1 : vector<8x16xf32>, vector<8x240xf32> -> vector<8x256xf32>
    %c1 = arith.constant 1 : index
    %c0_10 = arith.constant 0 : index
    %c0_11 = arith.constant 0 : index
    %16 = vector.load %arg2[%c1, %c0_10, %c0_11] : memref<9x1x256xf32, #tpu.memory_space<vmem>>, vector<1x1x256xf32>
    %17 = vector.shape_cast %16 : vector<1x1x256xf32> to vector<1x256xf32>
    %18 = vector.broadcast %17 : vector<1x256xf32> to vector<8x256xf32>
    %19 = arith.mulf %15, %18 : vector<8x256xf32>
    %c1_12 = arith.constant 1 : index
    %c0_13 = arith.constant 0 : index
    %c0_14 = arith.constant 0 : index
    %20 = vector.load %arg4[%c1_12, %c0_13, %c0_14] : memref<9x32x8xf32, #tpu.memory_space<vmem>>, vector<1x32x8xf32>
    %21 = vector.shape_cast %20 : vector<1x32x8xf32> to vector<32x8xf32>
    %cst_15 = arith.constant dense<0.000000e+00> : vector<32x256xf32>
    %22 = tpu.matmul %21, %19, %cst_15 {dimension_numbers = #tpu.dot_dimension_numbers<[1], [0], [0], [1], [0, 0, 1, 1], [], []>} : vector<32x8xf32>, vector<8x256xf32>, vector<32x256xf32> -> vector<32x256xf32>
    %23 = arith.addf %12, %22 : vector<32x256xf32>
    %24 = vector.extract_strided_slice %2 {offsets = [0, 241], sizes = [8, 15], strides = [1, 1]} : vector<8x256xf32> to vector<8x15xf32>
    %25 = vector.extract_strided_slice %2 {offsets = [0, 0], sizes = [8, 241], strides = [1, 1]} : vector<8x256xf32> to vector<8x241xf32>
    %26 = tpu.concatenate %24, %25 in 1 : vector<8x15xf32>, vector<8x241xf32> -> vector<8x256xf32>
    %c2 = arith.constant 2 : index
    %c0_16 = arith.constant 0 : index
    %c0_17 = arith.constant 0 : index
    %27 = vector.load %arg2[%c2, %c0_16, %c0_17] : memref<9x1x256xf32, #tpu.memory_space<vmem>>, vector<1x1x256xf32>
    %28 = vector.shape_cast %27 : vector<1x1x256xf32> to vector<1x256xf32>
    %29 = vector.broadcast %28 : vector<1x256xf32> to vector<8x256xf32>
    %30 = arith.mulf %26, %29 : vector<8x256xf32>
    %c2_18 = arith.constant 2 : index
    %c0_19 = arith.constant 0 : index
    %c0_20 = arith.constant 0 : index
    %31 = vector.load %arg4[%c2_18, %c0_19, %c0_20] : memref<9x32x8xf32, #tpu.memory_space<vmem>>, vector<1x32x8xf32>
    %32 = vector.shape_cast %31 : vector<1x32x8xf32> to vector<32x8xf32>
    %cst_21 = arith.constant dense<0.000000e+00> : vector<32x256xf32>
    %33 = tpu.matmul %32, %30, %cst_21 {dimension_numbers = #tpu.dot_dimension_numbers<[1], [0], [0], [1], [0, 0, 1, 1], [], []>} : vector<32x8xf32>, vector<8x256xf32>, vector<32x256xf32> -> vector<32x256xf32>
    %34 = arith.addf %23, %33 : vector<32x256xf32>
    %35 = vector.extract_strided_slice %2 {offsets = [0, 255], sizes = [8, 1], strides = [1, 1]} : vector<8x256xf32> to vector<8x1xf32>
    %36 = vector.extract_strided_slice %2 {offsets = [0, 0], sizes = [8, 255], strides = [1, 1]} : vector<8x256xf32> to vector<8x255xf32>
    %37 = tpu.concatenate %35, %36 in 1 : vector<8x1xf32>, vector<8x255xf32> -> vector<8x256xf32>
    %c3 = arith.constant 3 : index
    %c0_22 = arith.constant 0 : index
    %c0_23 = arith.constant 0 : index
    %38 = vector.load %arg2[%c3, %c0_22, %c0_23] : memref<9x1x256xf32, #tpu.memory_space<vmem>>, vector<1x1x256xf32>
    %39 = vector.shape_cast %38 : vector<1x1x256xf32> to vector<1x256xf32>
    %40 = vector.broadcast %39 : vector<1x256xf32> to vector<8x256xf32>
    %41 = arith.mulf %37, %40 : vector<8x256xf32>
    %c3_24 = arith.constant 3 : index
    %c0_25 = arith.constant 0 : index
    %c0_26 = arith.constant 0 : index
    %42 = vector.load %arg4[%c3_24, %c0_25, %c0_26] : memref<9x32x8xf32, #tpu.memory_space<vmem>>, vector<1x32x8xf32>
    %43 = vector.shape_cast %42 : vector<1x32x8xf32> to vector<32x8xf32>
    %cst_27 = arith.constant dense<0.000000e+00> : vector<32x256xf32>
    %44 = tpu.matmul %43, %41, %cst_27 {dimension_numbers = #tpu.dot_dimension_numbers<[1], [0], [0], [1], [0, 0, 1, 1], [], []>} : vector<32x8xf32>, vector<8x256xf32>, vector<32x256xf32> -> vector<32x256xf32>
    %45 = arith.addf %34, %44 : vector<32x256xf32>
    %c4 = arith.constant 4 : index
    %c0_28 = arith.constant 0 : index
    %c0_29 = arith.constant 0 : index
    %46 = vector.load %arg4[%c4, %c0_28, %c0_29] : memref<9x32x8xf32, #tpu.memory_space<vmem>>, vector<1x32x8xf32>
    %47 = vector.shape_cast %46 : vector<1x32x8xf32> to vector<32x8xf32>
    %cst_30 = arith.constant dense<0.000000e+00> : vector<32x256xf32>
    %48 = tpu.matmul %47, %2, %cst_30 {dimension_numbers = #tpu.dot_dimension_numbers<[1], [0], [0], [1], [0, 0, 1, 1], [], []>} : vector<32x8xf32>, vector<8x256xf32>, vector<32x256xf32> -> vector<32x256xf32>
    %49 = arith.addf %45, %48 : vector<32x256xf32>
    %50 = vector.extract_strided_slice %2 {offsets = [0, 1], sizes = [8, 255], strides = [1, 1]} : vector<8x256xf32> to vector<8x255xf32>
    %51 = vector.extract_strided_slice %2 {offsets = [0, 0], sizes = [8, 1], strides = [1, 1]} : vector<8x256xf32> to vector<8x1xf32>
    %52 = tpu.concatenate %50, %51 in 1 : vector<8x255xf32>, vector<8x1xf32> -> vector<8x256xf32>
    %c5 = arith.constant 5 : index
    %c0_31 = arith.constant 0 : index
    %c0_32 = arith.constant 0 : index
    %53 = vector.load %arg2[%c5, %c0_31, %c0_32] : memref<9x1x256xf32, #tpu.memory_space<vmem>>, vector<1x1x256xf32>
    %54 = vector.shape_cast %53 : vector<1x1x256xf32> to vector<1x256xf32>
    %55 = vector.broadcast %54 : vector<1x256xf32> to vector<8x256xf32>
    %56 = arith.mulf %52, %55 : vector<8x256xf32>
    %c5_33 = arith.constant 5 : index
    %c0_34 = arith.constant 0 : index
    %c0_35 = arith.constant 0 : index
    %57 = vector.load %arg4[%c5_33, %c0_34, %c0_35] : memref<9x32x8xf32, #tpu.memory_space<vmem>>, vector<1x32x8xf32>
    %58 = vector.shape_cast %57 : vector<1x32x8xf32> to vector<32x8xf32>
    %cst_36 = arith.constant dense<0.000000e+00> : vector<32x256xf32>
    %59 = tpu.matmul %58, %56, %cst_36 {dimension_numbers = #tpu.dot_dimension_numbers<[1], [0], [0], [1], [0, 0, 1, 1], [], []>} : vector<32x8xf32>, vector<8x256xf32>, vector<32x256xf32> -> vector<32x256xf32>
    %60 = arith.addf %49, %59 : vector<32x256xf32>
    %61 = vector.extract_strided_slice %2 {offsets = [0, 15], sizes = [8, 241], strides = [1, 1]} : vector<8x256xf32> to vector<8x241xf32>
    %62 = vector.extract_strided_slice %2 {offsets = [0, 0], sizes = [8, 15], strides = [1, 1]} : vector<8x256xf32> to vector<8x15xf32>
    %63 = tpu.concatenate %61, %62 in 1 : vector<8x241xf32>, vector<8x15xf32> -> vector<8x256xf32>
    %c6 = arith.constant 6 : index
    %c0_37 = arith.constant 0 : index
    %c0_38 = arith.constant 0 : index
    %64 = vector.load %arg2[%c6, %c0_37, %c0_38] : memref<9x1x256xf32, #tpu.memory_space<vmem>>, vector<1x1x256xf32>
    %65 = vector.shape_cast %64 : vector<1x1x256xf32> to vector<1x256xf32>
    %66 = vector.broadcast %65 : vector<1x256xf32> to vector<8x256xf32>
    %67 = arith.mulf %63, %66 : vector<8x256xf32>
    %c6_39 = arith.constant 6 : index
    %c0_40 = arith.constant 0 : index
    %c0_41 = arith.constant 0 : index
    %68 = vector.load %arg4[%c6_39, %c0_40, %c0_41] : memref<9x32x8xf32, #tpu.memory_space<vmem>>, vector<1x32x8xf32>
    %69 = vector.shape_cast %68 : vector<1x32x8xf32> to vector<32x8xf32>
    %cst_42 = arith.constant dense<0.000000e+00> : vector<32x256xf32>
    %70 = tpu.matmul %69, %67, %cst_42 {dimension_numbers = #tpu.dot_dimension_numbers<[1], [0], [0], [1], [0, 0, 1, 1], [], []>} : vector<32x8xf32>, vector<8x256xf32>, vector<32x256xf32> -> vector<32x256xf32>
    %71 = arith.addf %60, %70 : vector<32x256xf32>
    %72 = vector.extract_strided_slice %2 {offsets = [0, 16], sizes = [8, 240], strides = [1, 1]} : vector<8x256xf32> to vector<8x240xf32>
    %73 = vector.extract_strided_slice %2 {offsets = [0, 0], sizes = [8, 16], strides = [1, 1]} : vector<8x256xf32> to vector<8x16xf32>
    %74 = tpu.concatenate %72, %73 in 1 : vector<8x240xf32>, vector<8x16xf32> -> vector<8x256xf32>
    %c7 = arith.constant 7 : index
    %c0_43 = arith.constant 0 : index
    %c0_44 = arith.constant 0 : index
    %75 = vector.load %arg2[%c7, %c0_43, %c0_44] : memref<9x1x256xf32, #tpu.memory_space<vmem>>, vector<1x1x256xf32>
    %76 = vector.shape_cast %75 : vector<1x1x256xf32> to vector<1x256xf32>
    %77 = vector.broadcast %76 : vector<1x256xf32> to vector<8x256xf32>
    %78 = arith.mulf %74, %77 : vector<8x256xf32>
    %c7_45 = arith.constant 7 : index
    %c0_46 = arith.constant 0 : index
    %c0_47 = arith.constant 0 : index
    %79 = vector.load %arg4[%c7_45, %c0_46, %c0_47] : memref<9x32x8xf32, #tpu.memory_space<vmem>>, vector<1x32x8xf32>
    %80 = vector.shape_cast %79 : vector<1x32x8xf32> to vector<32x8xf32>
    %cst_48 = arith.constant dense<0.000000e+00> : vector<32x256xf32>
    %81 = tpu.matmul %80, %78, %cst_48 {dimension_numbers = #tpu.dot_dimension_numbers<[1], [0], [0], [1], [0, 0, 1, 1], [], []>} : vector<32x8xf32>, vector<8x256xf32>, vector<32x256xf32> -> vector<32x256xf32>
    %82 = arith.addf %71, %81 : vector<32x256xf32>
    %83 = vector.extract_strided_slice %2 {offsets = [0, 17], sizes = [8, 239], strides = [1, 1]} : vector<8x256xf32> to vector<8x239xf32>
    %84 = vector.extract_strided_slice %2 {offsets = [0, 0], sizes = [8, 17], strides = [1, 1]} : vector<8x256xf32> to vector<8x17xf32>
    %85 = tpu.concatenate %83, %84 in 1 : vector<8x239xf32>, vector<8x17xf32> -> vector<8x256xf32>
    %c8 = arith.constant 8 : index
    %c0_49 = arith.constant 0 : index
    %c0_50 = arith.constant 0 : index
    %86 = vector.load %arg2[%c8, %c0_49, %c0_50] : memref<9x1x256xf32, #tpu.memory_space<vmem>>, vector<1x1x256xf32>
    %87 = vector.shape_cast %86 : vector<1x1x256xf32> to vector<1x256xf32>
    %88 = vector.broadcast %87 : vector<1x256xf32> to vector<8x256xf32>
    %89 = arith.mulf %85, %88 : vector<8x256xf32>
    %c8_51 = arith.constant 8 : index
    %c0_52 = arith.constant 0 : index
    %c0_53 = arith.constant 0 : index
    %90 = vector.load %arg4[%c8_51, %c0_52, %c0_53] : memref<9x32x8xf32, #tpu.memory_space<vmem>>, vector<1x32x8xf32>
    %91 = vector.shape_cast %90 : vector<1x32x8xf32> to vector<32x8xf32>
    %cst_54 = arith.constant dense<0.000000e+00> : vector<32x256xf32>
    %92 = tpu.matmul %91, %89, %cst_54 {dimension_numbers = #tpu.dot_dimension_numbers<[1], [0], [0], [1], [0, 0, 1, 1], [], []>} : vector<32x8xf32>, vector<8x256xf32>, vector<32x256xf32> -> vector<32x256xf32>
    %93 = arith.addf %82, %92 : vector<32x256xf32>
    %c0_55 = arith.constant 0 : index
    %c0_56 = arith.constant 0 : index
    %94 = vector.load %arg5[%c0_55, %c0_56] : memref<32x1xf32, #tpu.memory_space<vmem>>, vector<32x1xf32>
    %95 = vector.broadcast %94 : vector<32x1xf32> to vector<32x256xf32>
    %96 = arith.addf %93, %95 : vector<32x256xf32>
    %cst_57 = arith.constant dense<0.000000e+00> : vector<32xf32>
    %97 = vector.multi_reduction <add>, %96, %cst_57 [1] : vector<32x256xf32> to vector<32xf32>
    %98 = vector.shape_cast %97 : vector<32xf32> to vector<32x1xf32>
    %cst_58 = arith.constant 2.560000e+02 : f32
    %99 = vector.broadcast %cst_58 : f32 to vector<32x1xf32>
    %100 = arith.divf %98, %99 : vector<32x1xf32>
    %cst_59 = arith.constant dense<0xFF800000> : vector<32xf32>
    %101 = vector.multi_reduction <maximumf>, %96, %cst_59 [1] : vector<32x256xf32> to vector<32xf32>
    %102 = vector.shape_cast %101 : vector<32xf32> to vector<32x1xf32>
    %103 = arith.addf %100, %102 : vector<32x1xf32>
    %c0_60 = arith.constant 0 : index
    %c0_61 = arith.constant 0 : index
    %104 = vector.load %arg6[%c0_60, %c0_61] : memref<2x32xf32, #tpu.memory_space<vmem>>, vector<2x32xf32>
    %cst_62 = arith.constant dense<0.000000e+00> : vector<2x1xf32>
    %105 = tpu.matmul %104, %103, %cst_62 {dimension_numbers = #tpu.dot_dimension_numbers<[1], [0], [0], [1], [0, 0, 1, 1], [], []>} : vector<2x32xf32>, vector<32x1xf32>, vector<2x1xf32> -> vector<2x1xf32>
    %c0_63 = arith.constant 0 : index
    %c0_64 = arith.constant 0 : index
    %106 = vector.load %arg7[%c0_63, %c0_64] : memref<2x1xf32, #tpu.memory_space<vmem>>, vector<2x1xf32>
    %107 = arith.addf %105, %106 : vector<2x1xf32>
    %cst_65 = arith.constant 0.000000e+00 : f32
    %108 = vector.broadcast %cst_65 : f32 to vector<2x1xf32>
    %109 = arith.maximumf %107, %108 : vector<2x1xf32>
    %c0_66 = arith.constant 0 : index
    %c0_67 = arith.constant 0 : index
    %110 = vector.load %arg8[%c0_66, %c0_67] : memref<32x2xf32, #tpu.memory_space<vmem>>, vector<32x2xf32>
    %cst_68 = arith.constant dense<0.000000e+00> : vector<32x1xf32>
    %111 = tpu.matmul %110, %109, %cst_68 {dimension_numbers = #tpu.dot_dimension_numbers<[1], [0], [0], [1], [0, 0, 1, 1], [], []>} : vector<32x2xf32>, vector<2x1xf32>, vector<32x1xf32> -> vector<32x1xf32>
    %c0_69 = arith.constant 0 : index
    %c0_70 = arith.constant 0 : index
    %112 = vector.load %arg9[%c0_69, %c0_70] : memref<32x1xf32, #tpu.memory_space<vmem>>, vector<32x1xf32>
    %113 = arith.addf %111, %112 : vector<32x1xf32>
    %114 = arith.negf %113 : vector<32x1xf32>
    %115 = math.exp %114 : vector<32x1xf32>
    %cst_71 = arith.constant 1.000000e+00 : f32
    %116 = vector.broadcast %cst_71 : f32 to vector<32x1xf32>
    %117 = arith.addf %116, %115 : vector<32x1xf32>
    %118 = arith.divf %116, %117 : vector<32x1xf32>
    %119 = vector.broadcast %118 : vector<32x1xf32> to vector<32x256xf32>
    %120 = arith.mulf %96, %119 : vector<32x256xf32>
    %cst_72 = arith.constant 0.000000e+00 : f32
    %121 = vector.broadcast %cst_72 : f32 to vector<32x256xf32>
    %122 = arith.maximumf %120, %121 : vector<32x256xf32>
    %cst_73 = arith.constant dense<0.000000e+00> : vector<16x32xf32>
    %123 = tpu.matmul %0, %122, %cst_73 {dimension_numbers = #tpu.dot_dimension_numbers<[1], [1], [0], [0], [0, 0, 1, 0], [], []>} : vector<16x256xf32>, vector<32x256xf32>, vector<16x32xf32> -> vector<16x32xf32>
    %c0_74 = arith.constant 0 : index
    %c0_75 = arith.constant 0 : index
    %124 = vector.load %arg10[%c0_74, %c0_75] : memref<32x4xf32, #tpu.memory_space<vmem>>, vector<32x4xf32>
    %cst_76 = arith.constant dense<0.000000e+00> : vector<16x4xf32>
    %125 = tpu.matmul %123, %124, %cst_76 {dimension_numbers = #tpu.dot_dimension_numbers<[1], [0], [0], [1], [0, 0, 1, 1], [], []>} : vector<16x32xf32>, vector<32x4xf32>, vector<16x4xf32> -> vector<16x4xf32>
    %c0_77 = arith.constant 0 : index
    %c0_78 = arith.constant 0 : index
    %126 = vector.load %arg11[%c0_77, %c0_78] : memref<1x4xf32, #tpu.memory_space<vmem>>, vector<1x4xf32>
    %127 = vector.broadcast %126 : vector<1x4xf32> to vector<16x4xf32>
    %128 = arith.addf %125, %127 : vector<16x4xf32>
    %c0_79 = arith.constant 0 : index
    %c0_80 = arith.constant 0 : index
    %129 = vector.load %arg12[%c0_79, %c0_80] : memref<32x4xf32, #tpu.memory_space<vmem>>, vector<32x4xf32>
    %cst_81 = arith.constant dense<0.000000e+00> : vector<16x4xf32>
    %130 = tpu.matmul %123, %129, %cst_81 {dimension_numbers = #tpu.dot_dimension_numbers<[1], [0], [0], [1], [0, 0, 1, 1], [], []>} : vector<16x32xf32>, vector<32x4xf32>, vector<16x4xf32> -> vector<16x4xf32>
    %c0_82 = arith.constant 0 : index
    %c0_83 = arith.constant 0 : index
    %131 = vector.load %arg13[%c0_82, %c0_83] : memref<1x4xf32, #tpu.memory_space<vmem>>, vector<1x4xf32>
    %132 = vector.broadcast %131 : vector<1x4xf32> to vector<16x4xf32>
    %133 = arith.addf %130, %132 : vector<16x4xf32>
    %c0_84 = arith.constant 0 : index
    %c0_85 = arith.constant 0 : index
    %134 = vector.load %arg14[%c0_84, %c0_85] : memref<32x32xf32, #tpu.memory_space<vmem>>, vector<32x32xf32>
    %cst_86 = arith.constant dense<0.000000e+00> : vector<32x16xf32>
    %135 = tpu.matmul %134, %123, %cst_86 {dimension_numbers = #tpu.dot_dimension_numbers<[1], [1], [0], [0], [0, 0, 1, 0], [], []>} : vector<32x32xf32>, vector<16x32xf32>, vector<32x16xf32> -> vector<32x16xf32>
    %c0_87 = arith.constant 0 : index
    %c0_88 = arith.constant 0 : index
    %136 = vector.load %arg15[%c0_87, %c0_88] : memref<32x1xf32, #tpu.memory_space<vmem>>, vector<32x1xf32>
    %137 = vector.broadcast %136 : vector<32x1xf32> to vector<32x16xf32>
    %138 = arith.addf %135, %137 : vector<32x16xf32>
    %cst_89 = arith.constant dense<0.000000e+00> : vector<16x16xf32>
    %139 = tpu.matmul %128, %133, %cst_89 {dimension_numbers = #tpu.dot_dimension_numbers<[1], [1], [0], [0], [0, 0, 1, 0], [], []>} : vector<16x4xf32>, vector<16x4xf32>, vector<16x16xf32> -> vector<16x16xf32>
    %cst_90 = arith.constant dense<0xFF800000> : vector<16xf32>
    %140 = vector.multi_reduction <maximumf>, %139, %cst_90 [1] : vector<16x16xf32> to vector<16xf32>
    %141 = vector.shape_cast %140 : vector<16xf32> to vector<16x1xf32>
    %142 = vector.broadcast %141 : vector<16x1xf32> to vector<16x16xf32>
    %143 = arith.subf %139, %142 : vector<16x16xf32>
    %144 = math.exp %143 : vector<16x16xf32>
    %cst_91 = arith.constant dense<0.000000e+00> : vector<16xf32>
    %145 = vector.multi_reduction <add>, %144, %cst_91 [1] : vector<16x16xf32> to vector<16xf32>
    %146 = vector.shape_cast %145 : vector<16xf32> to vector<16x1xf32>
    %147 = tpu.reciprocal %146 {approx = true} : vector<16x1xf32> -> vector<16x1xf32>
    %148 = vector.broadcast %147 : vector<16x1xf32> to vector<16x16xf32>
    %149 = arith.mulf %144, %148 : vector<16x16xf32>
    %cst_92 = arith.constant dense<0.000000e+00> : vector<32x16xf32>
    %150 = tpu.matmul %138, %149, %cst_92 {dimension_numbers = #tpu.dot_dimension_numbers<[1], [1], [0], [0], [0, 0, 1, 0], [], []>} : vector<32x16xf32>, vector<16x16xf32>, vector<32x16xf32> -> vector<32x16xf32>
    %c0_93 = arith.constant 0 : index
    %c0_94 = arith.constant 0 : index
    %151 = vector.load %arg16[%c0_93, %c0_94] : memref<16x256xf32, #tpu.memory_space<vmem>>, vector<16x256xf32>
    %cst_95 = arith.constant dense<0.000000e+00> : vector<32x256xf32>
    %152 = tpu.matmul %150, %151, %cst_95 {dimension_numbers = #tpu.dot_dimension_numbers<[1], [0], [0], [1], [0, 0, 1, 1], [], []>} : vector<32x16xf32>, vector<16x256xf32>, vector<32x256xf32> -> vector<32x256xf32>
    %153 = arith.addf %152, %122 : vector<32x256xf32>
    %154 = vector.extract_strided_slice %153 {offsets = [0, 239], sizes = [32, 17], strides = [1, 1]} : vector<32x256xf32> to vector<32x17xf32>
    %155 = vector.extract_strided_slice %153 {offsets = [0, 0], sizes = [32, 239], strides = [1, 1]} : vector<32x256xf32> to vector<32x239xf32>
    %156 = tpu.concatenate %154, %155 in 1 : vector<32x17xf32>, vector<32x239xf32> -> vector<32x256xf32>
    %c0_96 = arith.constant 0 : index
    %c0_97 = arith.constant 0 : index
    %c0_98 = arith.constant 0 : index
    %157 = vector.load %arg2[%c0_96, %c0_97, %c0_98] : memref<9x1x256xf32, #tpu.memory_space<vmem>>, vector<1x1x256xf32>
    %158 = vector.shape_cast %157 : vector<1x1x256xf32> to vector<1x256xf32>
    %159 = vector.broadcast %158 : vector<1x256xf32> to vector<32x256xf32>
    %160 = arith.mulf %156, %159 : vector<32x256xf32>
    %c0_99 = arith.constant 0 : index
    %c0_100 = arith.constant 0 : index
    %c0_101 = arith.constant 0 : index
    %161 = vector.load %arg17[%c0_99, %c0_100, %c0_101] : memref<9x64x32xf32, #tpu.memory_space<vmem>>, vector<1x64x32xf32>
    %162 = vector.shape_cast %161 : vector<1x64x32xf32> to vector<64x32xf32>
    %cst_102 = arith.constant dense<0.000000e+00> : vector<64x256xf32>
    %163 = tpu.matmul %162, %160, %cst_102 {dimension_numbers = #tpu.dot_dimension_numbers<[1], [0], [0], [1], [0, 0, 1, 1], [], []>} : vector<64x32xf32>, vector<32x256xf32>, vector<64x256xf32> -> vector<64x256xf32>
    %164 = vector.extract_strided_slice %153 {offsets = [0, 240], sizes = [32, 16], strides = [1, 1]} : vector<32x256xf32> to vector<32x16xf32>
    %165 = vector.extract_strided_slice %153 {offsets = [0, 0], sizes = [32, 240], strides = [1, 1]} : vector<32x256xf32> to vector<32x240xf32>
    %166 = tpu.concatenate %164, %165 in 1 : vector<32x16xf32>, vector<32x240xf32> -> vector<32x256xf32>
    %c1_103 = arith.constant 1 : index
    %c0_104 = arith.constant 0 : index
    %c0_105 = arith.constant 0 : index
    %167 = vector.load %arg2[%c1_103, %c0_104, %c0_105] : memref<9x1x256xf32, #tpu.memory_space<vmem>>, vector<1x1x256xf32>
    %168 = vector.shape_cast %167 : vector<1x1x256xf32> to vector<1x256xf32>
    %169 = vector.broadcast %168 : vector<1x256xf32> to vector<32x256xf32>
    %170 = arith.mulf %166, %169 : vector<32x256xf32>
    %c1_106 = arith.constant 1 : index
    %c0_107 = arith.constant 0 : index
    %c0_108 = arith.constant 0 : index
    %171 = vector.load %arg17[%c1_106, %c0_107, %c0_108] : memref<9x64x32xf32, #tpu.memory_space<vmem>>, vector<1x64x32xf32>
    %172 = vector.shape_cast %171 : vector<1x64x32xf32> to vector<64x32xf32>
    %cst_109 = arith.constant dense<0.000000e+00> : vector<64x256xf32>
    %173 = tpu.matmul %172, %170, %cst_109 {dimension_numbers = #tpu.dot_dimension_numbers<[1], [0], [0], [1], [0, 0, 1, 1], [], []>} : vector<64x32xf32>, vector<32x256xf32>, vector<64x256xf32> -> vector<64x256xf32>
    %174 = arith.addf %163, %173 : vector<64x256xf32>
    %175 = vector.extract_strided_slice %153 {offsets = [0, 241], sizes = [32, 15], strides = [1, 1]} : vector<32x256xf32> to vector<32x15xf32>
    %176 = vector.extract_strided_slice %153 {offsets = [0, 0], sizes = [32, 241], strides = [1, 1]} : vector<32x256xf32> to vector<32x241xf32>
    %177 = tpu.concatenate %175, %176 in 1 : vector<32x15xf32>, vector<32x241xf32> -> vector<32x256xf32>
    %c2_110 = arith.constant 2 : index
    %c0_111 = arith.constant 0 : index
    %c0_112 = arith.constant 0 : index
    %178 = vector.load %arg2[%c2_110, %c0_111, %c0_112] : memref<9x1x256xf32, #tpu.memory_space<vmem>>, vector<1x1x256xf32>
    %179 = vector.shape_cast %178 : vector<1x1x256xf32> to vector<1x256xf32>
    %180 = vector.broadcast %179 : vector<1x256xf32> to vector<32x256xf32>
    %181 = arith.mulf %177, %180 : vector<32x256xf32>
    %c2_113 = arith.constant 2 : index
    %c0_114 = arith.constant 0 : index
    %c0_115 = arith.constant 0 : index
    %182 = vector.load %arg17[%c2_113, %c0_114, %c0_115] : memref<9x64x32xf32, #tpu.memory_space<vmem>>, vector<1x64x32xf32>
    %183 = vector.shape_cast %182 : vector<1x64x32xf32> to vector<64x32xf32>
    %cst_116 = arith.constant dense<0.000000e+00> : vector<64x256xf32>
    %184 = tpu.matmul %183, %181, %cst_116 {dimension_numbers = #tpu.dot_dimension_numbers<[1], [0], [0], [1], [0, 0, 1, 1], [], []>} : vector<64x32xf32>, vector<32x256xf32>, vector<64x256xf32> -> vector<64x256xf32>
    %185 = arith.addf %174, %184 : vector<64x256xf32>
    %186 = vector.extract_strided_slice %153 {offsets = [0, 255], sizes = [32, 1], strides = [1, 1]} : vector<32x256xf32> to vector<32x1xf32>
    %187 = vector.extract_strided_slice %153 {offsets = [0, 0], sizes = [32, 255], strides = [1, 1]} : vector<32x256xf32> to vector<32x255xf32>
    %188 = tpu.concatenate %186, %187 in 1 : vector<32x1xf32>, vector<32x255xf32> -> vector<32x256xf32>
    %c3_117 = arith.constant 3 : index
    %c0_118 = arith.constant 0 : index
    %c0_119 = arith.constant 0 : index
    %189 = vector.load %arg2[%c3_117, %c0_118, %c0_119] : memref<9x1x256xf32, #tpu.memory_space<vmem>>, vector<1x1x256xf32>
    %190 = vector.shape_cast %189 : vector<1x1x256xf32> to vector<1x256xf32>
    %191 = vector.broadcast %190 : vector<1x256xf32> to vector<32x256xf32>
    %192 = arith.mulf %188, %191 : vector<32x256xf32>
    %c3_120 = arith.constant 3 : index
    %c0_121 = arith.constant 0 : index
    %c0_122 = arith.constant 0 : index
    %193 = vector.load %arg17[%c3_120, %c0_121, %c0_122] : memref<9x64x32xf32, #tpu.memory_space<vmem>>, vector<1x64x32xf32>
    %194 = vector.shape_cast %193 : vector<1x64x32xf32> to vector<64x32xf32>
    %cst_123 = arith.constant dense<0.000000e+00> : vector<64x256xf32>
    %195 = tpu.matmul %194, %192, %cst_123 {dimension_numbers = #tpu.dot_dimension_numbers<[1], [0], [0], [1], [0, 0, 1, 1], [], []>} : vector<64x32xf32>, vector<32x256xf32>, vector<64x256xf32> -> vector<64x256xf32>
    %196 = arith.addf %185, %195 : vector<64x256xf32>
    %c4_124 = arith.constant 4 : index
    %c0_125 = arith.constant 0 : index
    %c0_126 = arith.constant 0 : index
    %197 = vector.load %arg17[%c4_124, %c0_125, %c0_126] : memref<9x64x32xf32, #tpu.memory_space<vmem>>, vector<1x64x32xf32>
    %198 = vector.shape_cast %197 : vector<1x64x32xf32> to vector<64x32xf32>
    %cst_127 = arith.constant dense<0.000000e+00> : vector<64x256xf32>
    %199 = tpu.matmul %198, %153, %cst_127 {dimension_numbers = #tpu.dot_dimension_numbers<[1], [0], [0], [1], [0, 0, 1, 1], [], []>} : vector<64x32xf32>, vector<32x256xf32>, vector<64x256xf32> -> vector<64x256xf32>
    %200 = arith.addf %196, %199 : vector<64x256xf32>
    %201 = vector.extract_strided_slice %153 {offsets = [0, 1], sizes = [32, 255], strides = [1, 1]} : vector<32x256xf32> to vector<32x255xf32>
    %202 = vector.extract_strided_slice %153 {offsets = [0, 0], sizes = [32, 1], strides = [1, 1]} : vector<32x256xf32> to vector<32x1xf32>
    %203 = tpu.concatenate %201, %202 in 1 : vector<32x255xf32>, vector<32x1xf32> -> vector<32x256xf32>
    %c5_128 = arith.constant 5 : index
    %c0_129 = arith.constant 0 : index
    %c0_130 = arith.constant 0 : index
    %204 = vector.load %arg2[%c5_128, %c0_129, %c0_130] : memref<9x1x256xf32, #tpu.memory_space<vmem>>, vector<1x1x256xf32>
    %205 = vector.shape_cast %204 : vector<1x1x256xf32> to vector<1x256xf32>
    %206 = vector.broadcast %205 : vector<1x256xf32> to vector<32x256xf32>
    %207 = arith.mulf %203, %206 : vector<32x256xf32>
    %c5_131 = arith.constant 5 : index
    %c0_132 = arith.constant 0 : index
    %c0_133 = arith.constant 0 : index
    %208 = vector.load %arg17[%c5_131, %c0_132, %c0_133] : memref<9x64x32xf32, #tpu.memory_space<vmem>>, vector<1x64x32xf32>
    %209 = vector.shape_cast %208 : vector<1x64x32xf32> to vector<64x32xf32>
    %cst_134 = arith.constant dense<0.000000e+00> : vector<64x256xf32>
    %210 = tpu.matmul %209, %207, %cst_134 {dimension_numbers = #tpu.dot_dimension_numbers<[1], [0], [0], [1], [0, 0, 1, 1], [], []>} : vector<64x32xf32>, vector<32x256xf32>, vector<64x256xf32> -> vector<64x256xf32>
    %211 = arith.addf %200, %210 : vector<64x256xf32>
    %212 = vector.extract_strided_slice %153 {offsets = [0, 15], sizes = [32, 241], strides = [1, 1]} : vector<32x256xf32> to vector<32x241xf32>
    %213 = vector.extract_strided_slice %153 {offsets = [0, 0], sizes = [32, 15], strides = [1, 1]} : vector<32x256xf32> to vector<32x15xf32>
    %214 = tpu.concatenate %212, %213 in 1 : vector<32x241xf32>, vector<32x15xf32> -> vector<32x256xf32>
    %c6_135 = arith.constant 6 : index
    %c0_136 = arith.constant 0 : index
    %c0_137 = arith.constant 0 : index
    %215 = vector.load %arg2[%c6_135, %c0_136, %c0_137] : memref<9x1x256xf32, #tpu.memory_space<vmem>>, vector<1x1x256xf32>
    %216 = vector.shape_cast %215 : vector<1x1x256xf32> to vector<1x256xf32>
    %217 = vector.broadcast %216 : vector<1x256xf32> to vector<32x256xf32>
    %218 = arith.mulf %214, %217 : vector<32x256xf32>
    %c6_138 = arith.constant 6 : index
    %c0_139 = arith.constant 0 : index
    %c0_140 = arith.constant 0 : index
    %219 = vector.load %arg17[%c6_138, %c0_139, %c0_140] : memref<9x64x32xf32, #tpu.memory_space<vmem>>, vector<1x64x32xf32>
    %220 = vector.shape_cast %219 : vector<1x64x32xf32> to vector<64x32xf32>
    %cst_141 = arith.constant dense<0.000000e+00> : vector<64x256xf32>
    %221 = tpu.matmul %220, %218, %cst_141 {dimension_numbers = #tpu.dot_dimension_numbers<[1], [0], [0], [1], [0, 0, 1, 1], [], []>} : vector<64x32xf32>, vector<32x256xf32>, vector<64x256xf32> -> vector<64x256xf32>
    %222 = arith.addf %211, %221 : vector<64x256xf32>
    %223 = vector.extract_strided_slice %153 {offsets = [0, 16], sizes = [32, 240], strides = [1, 1]} : vector<32x256xf32> to vector<32x240xf32>
    %224 = vector.extract_strided_slice %153 {offsets = [0, 0], sizes = [32, 16], strides = [1, 1]} : vector<32x256xf32> to vector<32x16xf32>
    %225 = tpu.concatenate %223, %224 in 1 : vector<32x240xf32>, vector<32x16xf32> -> vector<32x256xf32>
    %c7_142 = arith.constant 7 : index
    %c0_143 = arith.constant 0 : index
    %c0_144 = arith.constant 0 : index
    %226 = vector.load %arg2[%c7_142, %c0_143, %c0_144] : memref<9x1x256xf32, #tpu.memory_space<vmem>>, vector<1x1x256xf32>
    %227 = vector.shape_cast %226 : vector<1x1x256xf32> to vector<1x256xf32>
    %228 = vector.broadcast %227 : vector<1x256xf32> to vector<32x256xf32>
    %229 = arith.mulf %225, %228 : vector<32x256xf32>
    %c7_145 = arith.constant 7 : index
    %c0_146 = arith.constant 0 : index
    %c0_147 = arith.constant 0 : index
    %230 = vector.load %arg17[%c7_145, %c0_146, %c0_147] : memref<9x64x32xf32, #tpu.memory_space<vmem>>, vector<1x64x32xf32>
    %231 = vector.shape_cast %230 : vector<1x64x32xf32> to vector<64x32xf32>
    %cst_148 = arith.constant dense<0.000000e+00> : vector<64x256xf32>
    %232 = tpu.matmul %231, %229, %cst_148 {dimension_numbers = #tpu.dot_dimension_numbers<[1], [0], [0], [1], [0, 0, 1, 1], [], []>} : vector<64x32xf32>, vector<32x256xf32>, vector<64x256xf32> -> vector<64x256xf32>
    %233 = arith.addf %222, %232 : vector<64x256xf32>
    %234 = vector.extract_strided_slice %153 {offsets = [0, 17], sizes = [32, 239], strides = [1, 1]} : vector<32x256xf32> to vector<32x239xf32>
    %235 = vector.extract_strided_slice %153 {offsets = [0, 0], sizes = [32, 17], strides = [1, 1]} : vector<32x256xf32> to vector<32x17xf32>
    %236 = tpu.concatenate %234, %235 in 1 : vector<32x239xf32>, vector<32x17xf32> -> vector<32x256xf32>
    %c8_149 = arith.constant 8 : index
    %c0_150 = arith.constant 0 : index
    %c0_151 = arith.constant 0 : index
    %237 = vector.load %arg2[%c8_149, %c0_150, %c0_151] : memref<9x1x256xf32, #tpu.memory_space<vmem>>, vector<1x1x256xf32>
    %238 = vector.shape_cast %237 : vector<1x1x256xf32> to vector<1x256xf32>
    %239 = vector.broadcast %238 : vector<1x256xf32> to vector<32x256xf32>
    %240 = arith.mulf %236, %239 : vector<32x256xf32>
    %c8_152 = arith.constant 8 : index
    %c0_153 = arith.constant 0 : index
    %c0_154 = arith.constant 0 : index
    %241 = vector.load %arg17[%c8_152, %c0_153, %c0_154] : memref<9x64x32xf32, #tpu.memory_space<vmem>>, vector<1x64x32xf32>
    %242 = vector.shape_cast %241 : vector<1x64x32xf32> to vector<64x32xf32>
    %cst_155 = arith.constant dense<0.000000e+00> : vector<64x256xf32>
    %243 = tpu.matmul %242, %240, %cst_155 {dimension_numbers = #tpu.dot_dimension_numbers<[1], [0], [0], [1], [0, 0, 1, 1], [], []>} : vector<64x32xf32>, vector<32x256xf32>, vector<64x256xf32> -> vector<64x256xf32>
    %244 = arith.addf %233, %243 : vector<64x256xf32>
    %c0_156 = arith.constant 0 : index
    %c0_157 = arith.constant 0 : index
    %245 = vector.load %arg18[%c0_156, %c0_157] : memref<64x1xf32, #tpu.memory_space<vmem>>, vector<64x1xf32>
    %246 = vector.broadcast %245 : vector<64x1xf32> to vector<64x256xf32>
    %247 = arith.addf %244, %246 : vector<64x256xf32>
    %cst_158 = arith.constant dense<0.000000e+00> : vector<64xf32>
    %248 = vector.multi_reduction <add>, %247, %cst_158 [1] : vector<64x256xf32> to vector<64xf32>
    %249 = vector.shape_cast %248 : vector<64xf32> to vector<64x1xf32>
    %cst_159 = arith.constant 2.560000e+02 : f32
    %250 = vector.broadcast %cst_159 : f32 to vector<64x1xf32>
    %251 = arith.divf %249, %250 : vector<64x1xf32>
    %cst_160 = arith.constant dense<0xFF800000> : vector<64xf32>
    %252 = vector.multi_reduction <maximumf>, %247, %cst_160 [1] : vector<64x256xf32> to vector<64xf32>
    %253 = vector.shape_cast %252 : vector<64xf32> to vector<64x1xf32>
    %254 = arith.addf %251, %253 : vector<64x1xf32>
    %c0_161 = arith.constant 0 : index
    %c0_162 = arith.constant 0 : index
    %255 = vector.load %arg19[%c0_161, %c0_162] : memref<4x64xf32, #tpu.memory_space<vmem>>, vector<4x64xf32>
    %cst_163 = arith.constant dense<0.000000e+00> : vector<4x1xf32>
    %256 = tpu.matmul %255, %254, %cst_163 {dimension_numbers = #tpu.dot_dimension_numbers<[1], [0], [0], [1], [0, 0, 1, 1], [], []>} : vector<4x64xf32>, vector<64x1xf32>, vector<4x1xf32> -> vector<4x1xf32>
    %c0_164 = arith.constant 0 : index
    %c0_165 = arith.constant 0 : index
    %257 = vector.load %arg20[%c0_164, %c0_165] : memref<4x1xf32, #tpu.memory_space<vmem>>, vector<4x1xf32>
    %258 = arith.addf %256, %257 : vector<4x1xf32>
    %cst_166 = arith.constant 0.000000e+00 : f32
    %259 = vector.broadcast %cst_166 : f32 to vector<4x1xf32>
    %260 = arith.maximumf %258, %259 : vector<4x1xf32>
    %c0_167 = arith.constant 0 : index
    %c0_168 = arith.constant 0 : index
    %261 = vector.load %arg21[%c0_167, %c0_168] : memref<64x4xf32, #tpu.memory_space<vmem>>, vector<64x4xf32>
    %cst_169 = arith.constant dense<0.000000e+00> : vector<64x1xf32>
    %262 = tpu.matmul %261, %260, %cst_169 {dimension_numbers = #tpu.dot_dimension_numbers<[1], [0], [0], [1], [0, 0, 1, 1], [], []>} : vector<64x4xf32>, vector<4x1xf32>, vector<64x1xf32> -> vector<64x1xf32>
    %c0_170 = arith.constant 0 : index
    %c0_171 = arith.constant 0 : index
    %263 = vector.load %arg22[%c0_170, %c0_171] : memref<64x1xf32, #tpu.memory_space<vmem>>, vector<64x1xf32>
    %264 = arith.addf %262, %263 : vector<64x1xf32>
    %265 = arith.negf %264 : vector<64x1xf32>
    %266 = math.exp %265 : vector<64x1xf32>
    %cst_172 = arith.constant 1.000000e+00 : f32
    %267 = vector.broadcast %cst_172 : f32 to vector<64x1xf32>
    %268 = arith.addf %267, %266 : vector<64x1xf32>
    %269 = arith.divf %267, %268 : vector<64x1xf32>
    %270 = vector.broadcast %269 : vector<64x1xf32> to vector<64x256xf32>
    %271 = arith.mulf %247, %270 : vector<64x256xf32>
    %cst_173 = arith.constant 0.000000e+00 : f32
    %272 = vector.broadcast %cst_173 : f32 to vector<64x256xf32>
    %273 = arith.maximumf %271, %272 : vector<64x256xf32>
    %cst_174 = arith.constant dense<0.000000e+00> : vector<16x64xf32>
    %274 = tpu.matmul %0, %273, %cst_174 {dimension_numbers = #tpu.dot_dimension_numbers<[1], [1], [0], [0], [0, 0, 1, 0], [], []>} : vector<16x256xf32>, vector<64x256xf32>, vector<16x64xf32> -> vector<16x64xf32>
    %c0_175 = arith.constant 0 : index
    %c0_176 = arith.constant 0 : index
    %275 = vector.load %arg23[%c0_175, %c0_176] : memref<64x8xf32, #tpu.memory_space<vmem>>, vector<64x8xf32>
    %cst_177 = arith.constant dense<0.000000e+00> : vector<16x8xf32>
    %276 = tpu.matmul %274, %275, %cst_177 {dimension_numbers = #tpu.dot_dimension_numbers<[1], [0], [0], [1], [0, 0, 1, 1], [], []>} : vector<16x64xf32>, vector<64x8xf32>, vector<16x8xf32> -> vector<16x8xf32>
    %c0_178 = arith.constant 0 : index
    %c0_179 = arith.constant 0 : index
    %277 = vector.load %arg24[%c0_178, %c0_179] : memref<1x8xf32, #tpu.memory_space<vmem>>, vector<1x8xf32>
    %278 = vector.broadcast %277 : vector<1x8xf32> to vector<16x8xf32>
    %279 = arith.addf %276, %278 : vector<16x8xf32>
    %c0_180 = arith.constant 0 : index
    %c0_181 = arith.constant 0 : index
    %280 = vector.load %arg25[%c0_180, %c0_181] : memref<64x8xf32, #tpu.memory_space<vmem>>, vector<64x8xf32>
    %cst_182 = arith.constant dense<0.000000e+00> : vector<16x8xf32>
    %281 = tpu.matmul %274, %280, %cst_182 {dimension_numbers = #tpu.dot_dimension_numbers<[1], [0], [0], [1], [0, 0, 1, 1], [], []>} : vector<16x64xf32>, vector<64x8xf32>, vector<16x8xf32> -> vector<16x8xf32>
    %c0_183 = arith.constant 0 : index
    %c0_184 = arith.constant 0 : index
    %282 = vector.load %arg26[%c0_183, %c0_184] : memref<1x8xf32, #tpu.memory_space<vmem>>, vector<1x8xf32>
    %283 = vector.broadcast %282 : vector<1x8xf32> to vector<16x8xf32>
    %284 = arith.addf %281, %283 : vector<16x8xf32>
    %c0_185 = arith.constant 0 : index
    %c0_186 = arith.constant 0 : index
    %285 = vector.load %arg27[%c0_185, %c0_186] : memref<64x64xf32, #tpu.memory_space<vmem>>, vector<64x64xf32>
    %cst_187 = arith.constant dense<0.000000e+00> : vector<64x16xf32>
    %286 = tpu.matmul %285, %274, %cst_187 {dimension_numbers = #tpu.dot_dimension_numbers<[1], [1], [0], [0], [0, 0, 1, 0], [], []>} : vector<64x64xf32>, vector<16x64xf32>, vector<64x16xf32> -> vector<64x16xf32>
    %c0_188 = arith.constant 0 : index
    %c0_189 = arith.constant 0 : index
    %287 = vector.load %arg28[%c0_188, %c0_189] : memref<64x1xf32, #tpu.memory_space<vmem>>, vector<64x1xf32>
    %288 = vector.broadcast %287 : vector<64x1xf32> to vector<64x16xf32>
    %289 = arith.addf %286, %288 : vector<64x16xf32>
    %cst_190 = arith.constant dense<0.000000e+00> : vector<16x16xf32>
    %290 = tpu.matmul %279, %284, %cst_190 {dimension_numbers = #tpu.dot_dimension_numbers<[1], [1], [0], [0], [0, 0, 1, 0], [], []>} : vector<16x8xf32>, vector<16x8xf32>, vector<16x16xf32> -> vector<16x16xf32>
    %cst_191 = arith.constant dense<0xFF800000> : vector<16xf32>
    %291 = vector.multi_reduction <maximumf>, %290, %cst_191 [1] : vector<16x16xf32> to vector<16xf32>
    %292 = vector.shape_cast %291 : vector<16xf32> to vector<16x1xf32>
    %293 = vector.broadcast %292 : vector<16x1xf32> to vector<16x16xf32>
    %294 = arith.subf %290, %293 : vector<16x16xf32>
    %295 = math.exp %294 : vector<16x16xf32>
    %cst_192 = arith.constant dense<0.000000e+00> : vector<16xf32>
    %296 = vector.multi_reduction <add>, %295, %cst_192 [1] : vector<16x16xf32> to vector<16xf32>
    %297 = vector.shape_cast %296 : vector<16xf32> to vector<16x1xf32>
    %298 = tpu.reciprocal %297 {approx = true} : vector<16x1xf32> -> vector<16x1xf32>
    %299 = vector.broadcast %298 : vector<16x1xf32> to vector<16x16xf32>
    %300 = arith.mulf %295, %299 : vector<16x16xf32>
    %cst_193 = arith.constant dense<0.000000e+00> : vector<64x16xf32>
    %301 = tpu.matmul %289, %300, %cst_193 {dimension_numbers = #tpu.dot_dimension_numbers<[1], [1], [0], [0], [0, 0, 1, 0], [], []>} : vector<64x16xf32>, vector<16x16xf32>, vector<64x16xf32> -> vector<64x16xf32>
    %c0_194 = arith.constant 0 : index
    %c0_195 = arith.constant 0 : index
    %302 = vector.load %arg29[%c0_194, %c0_195] : memref<16x256xf32, #tpu.memory_space<vmem>>, vector<16x256xf32>
    %cst_196 = arith.constant dense<0.000000e+00> : vector<64x256xf32>
    %303 = tpu.matmul %301, %302, %cst_196 {dimension_numbers = #tpu.dot_dimension_numbers<[1], [0], [0], [1], [0, 0, 1, 1], [], []>} : vector<64x16xf32>, vector<16x256xf32>, vector<64x256xf32> -> vector<64x256xf32>
    %304 = arith.addf %303, %273 : vector<64x256xf32>
    %c0_197 = arith.constant 0 : index
    %c0_198 = arith.constant 0 : index
    %c0_199 = arith.constant 0 : index
    %305 = vector.load %arg30[%c0_197, %c0_198, %c0_199] : memref<1x64x256xf32, #tpu.memory_space<vmem>>, vector<1x64x256xf32>
    %306 = vector.shape_cast %305 : vector<1x64x256xf32> to vector<64x256xf32>
    %307 = vector.shape_cast %304 : vector<64x256xf32> to vector<1x64x256xf32>
    tpu.vector_store %arg30[%c0_197, %c0_198, %c0_199], %307 {strides = array<i32>} : memref<1x64x256xf32, #tpu.memory_space<vmem>>, vector<1x64x256xf32>,
    return
  }
  func.func @transform_0(%arg0: i32) -> (i32, i32, i32) {
    %c0_i32 = arith.constant 0 : i32
    %c0_i32_0 = arith.constant 0 : i32
    %c0_i32_1 = arith.constant 0 : i32
    return %arg0, %c0_i32, %c0_i32_0 : i32, i32, i32
  }
  func.func @transform_1(%arg0: i32) -> (i32, i32, i32) {
    %c0_i32 = arith.constant 0 : i32
    %c0_i32_0 = arith.constant 0 : i32
    %c0_i32_1 = arith.constant 0 : i32
    %c0_i32_2 = arith.constant 0 : i32
    return %c0_i32, %c0_i32_0, %c0_i32_1 : i32, i32, i32
  }
  func.func @transform_2(%arg0: i32) -> (i32, i32) {
    %c0_i32 = arith.constant 0 : i32
    %c0_i32_0 = arith.constant 0 : i32
    %c0_i32_1 = arith.constant 0 : i32
    return %c0_i32, %c0_i32_0 : i32, i32
  }
  func.func @transform_3(%arg0: i32) -> (i32, i32, i32) {
    %c0_i32 = arith.constant 0 : i32
    %c0_i32_0 = arith.constant 0 : i32
    %c0_i32_1 = arith.constant 0 : i32
    %c0_i32_2 = arith.constant 0 : i32
    return %c0_i32, %c0_i32_0, %c0_i32_1 : i32, i32, i32
  }
  func.func @transform_4(%arg0: i32) -> (i32, i32) {
    %c0_i32 = arith.constant 0 : i32
    %c0_i32_0 = arith.constant 0 : i32
    %c0_i32_1 = arith.constant 0 : i32
    return %c0_i32, %c0_i32_0 : i32, i32
  }
  func.func @transform_5(%arg0: i32) -> (i32, i32) {
    %c0_i32 = arith.constant 0 : i32
    %c0_i32_0 = arith.constant 0 : i32
    %c0_i32_1 = arith.constant 0 : i32
    return %c0_i32, %c0_i32_0 : i32, i32
  }
  func.func @transform_6(%arg0: i32) -> (i32, i32) {
    %c0_i32 = arith.constant 0 : i32
    %c0_i32_0 = arith.constant 0 : i32
    %c0_i32_1 = arith.constant 0 : i32
    return %c0_i32, %c0_i32_0 : i32, i32
  }
  func.func @transform_7(%arg0: i32) -> (i32, i32) {
    %c0_i32 = arith.constant 0 : i32
    %c0_i32_0 = arith.constant 0 : i32
    %c0_i32_1 = arith.constant 0 : i32
    return %c0_i32, %c0_i32_0 : i32, i32
  }
  func.func @transform_8(%arg0: i32) -> (i32, i32) {
    %c0_i32 = arith.constant 0 : i32
    %c0_i32_0 = arith.constant 0 : i32
    %c0_i32_1 = arith.constant 0 : i32
    return %c0_i32, %c0_i32_0 : i32, i32
  }
  func.func @transform_9(%arg0: i32) -> (i32, i32) {
    %c0_i32 = arith.constant 0 : i32
    %c0_i32_0 = arith.constant 0 : i32
    %c0_i32_1 = arith.constant 0 : i32
    return %c0_i32, %c0_i32_0 : i32, i32
  }
  func.func @transform_10(%arg0: i32) -> (i32, i32) {
    %c0_i32 = arith.constant 0 : i32
    %c0_i32_0 = arith.constant 0 : i32
    %c0_i32_1 = arith.constant 0 : i32
    return %c0_i32, %c0_i32_0 : i32, i32
  }
  func.func @transform_11(%arg0: i32) -> (i32, i32) {
    %c0_i32 = arith.constant 0 : i32
    %c0_i32_0 = arith.constant 0 : i32
    %c0_i32_1 = arith.constant 0 : i32
    return %c0_i32, %c0_i32_0 : i32, i32
  }
  func.func @transform_12(%arg0: i32) -> (i32, i32) {
    %c0_i32 = arith.constant 0 : i32
    %c0_i32_0 = arith.constant 0 : i32
    %c0_i32_1 = arith.constant 0 : i32
    return %c0_i32, %c0_i32_0 : i32, i32
  }
  func.func @transform_13(%arg0: i32) -> (i32, i32) {
    %c0_i32 = arith.constant 0 : i32
    %c0_i32_0 = arith.constant 0 : i32
    %c0_i32_1 = arith.constant 0 : i32
    return %c0_i32, %c0_i32_0 : i32, i32
  }
  func.func @transform_14(%arg0: i32) -> (i32, i32) {
    %c0_i32 = arith.constant 0 : i32
    %c0_i32_0 = arith.constant 0 : i32
    %c0_i32_1 = arith.constant 0 : i32
    return %c0_i32, %c0_i32_0 : i32, i32
  }
  func.func @transform_15(%arg0: i32) -> (i32, i32) {
    %c0_i32 = arith.constant 0 : i32
    %c0_i32_0 = arith.constant 0 : i32
    %c0_i32_1 = arith.constant 0 : i32
    return %c0_i32, %c0_i32_0 : i32, i32
  }
  func.func @transform_16(%arg0: i32) -> (i32, i32, i32) {
    %c0_i32 = arith.constant 0 : i32
    %c0_i32_0 = arith.constant 0 : i32
    %c0_i32_1 = arith.constant 0 : i32
    %c0_i32_2 = arith.constant 0 : i32
    return %c0_i32, %c0_i32_0, %c0_i32_1 : i32, i32, i32
  }
  func.func @transform_17(%arg0: i32) -> (i32, i32) {
    %c0_i32 = arith.constant 0 : i32
    %c0_i32_0 = arith.constant 0 : i32
    %c0_i32_1 = arith.constant 0 : i32
    return %c0_i32, %c0_i32_0 : i32, i32
  }
  func.func @transform_18(%arg0: i32) -> (i32, i32) {
    %c0_i32 = arith.constant 0 : i32
    %c0_i32_0 = arith.constant 0 : i32
    %c0_i32_1 = arith.constant 0 : i32
    return %c0_i32, %c0_i32_0 : i32, i32
  }
  func.func @transform_19(%arg0: i32) -> (i32, i32) {
    %c0_i32 = arith.constant 0 : i32
    %c0_i32_0 = arith.constant 0 : i32
    %c0_i32_1 = arith.constant 0 : i32
    return %c0_i32, %c0_i32_0 : i32, i32
  }
  func.func @transform_20(%arg0: i32) -> (i32, i32) {
    %c0_i32 = arith.constant 0 : i32
    %c0_i32_0 = arith.constant 0 : i32
    %c0_i32_1 = arith.constant 0 : i32
    return %c0_i32, %c0_i32_0 : i32, i32
  }
  func.func @transform_21(%arg0: i32) -> (i32, i32) {
    %c0_i32 = arith.constant 0 : i32
    %c0_i32_0 = arith.constant 0 : i32
    %c0_i32_1 = arith.constant 0 : i32
    return %c0_i32, %c0_i32_0 : i32, i32
  }
  func.func @transform_22(%arg0: i32) -> (i32, i32) {
    %c0_i32 = arith.constant 0 : i32
    %c0_i32_0 = arith.constant 0 : i32
    %c0_i32_1 = arith.constant 0 : i32
    return %c0_i32, %c0_i32_0 : i32, i32
  }
  func.func @transform_23(%arg0: i32) -> (i32, i32) {
    %c0_i32 = arith.constant 0 : i32
    %c0_i32_0 = arith.constant 0 : i32
    %c0_i32_1 = arith.constant 0 : i32
    return %c0_i32, %c0_i32_0 : i32, i32
  }
  func.func @transform_24(%arg0: i32) -> (i32, i32) {
    %c0_i32 = arith.constant 0 : i32
    %c0_i32_0 = arith.constant 0 : i32
    %c0_i32_1 = arith.constant 0 : i32
    return %c0_i32, %c0_i32_0 : i32, i32
  }
  func.func @transform_25(%arg0: i32) -> (i32, i32) {
    %c0_i32 = arith.constant 0 : i32
    %c0_i32_0 = arith.constant 0 : i32
    %c0_i32_1 = arith.constant 0 : i32
    return %c0_i32, %c0_i32_0 : i32, i32
  }
  func.func @transform_26(%arg0: i32) -> (i32, i32) {
    %c0_i32 = arith.constant 0 : i32
    %c0_i32_0 = arith.constant 0 : i32
    %c0_i32_1 = arith.constant 0 : i32
    return %c0_i32, %c0_i32_0 : i32, i32
  }
  func.func @transform_27(%arg0: i32) -> (i32, i32) {
    %c0_i32 = arith.constant 0 : i32
    %c0_i32_0 = arith.constant 0 : i32
    %c0_i32_1 = arith.constant 0 : i32
    return %c0_i32, %c0_i32_0 : i32, i32
  }
  func.func @transform_28(%arg0: i32) -> (i32, i32) {
    %c0_i32 = arith.constant 0 : i32
    %c0_i32_0 = arith.constant 0 : i32
    %c0_i32_1 = arith.constant 0 : i32
    return %c0_i32, %c0_i32_0 : i32, i32
  }
  func.func @transform_29(%arg0: i32) -> (i32, i32, i32) {
    %c0_i32 = arith.constant 0 : i32
    %c0_i32_0 = arith.constant 0 : i32
    %c0_i32_1 = arith.constant 0 : i32
    return %arg0, %c0_i32, %c0_i32_0 : i32, i32, i32
  }
}

</mosaic_0001>

<bundles_post_ra>
// kernel: cnn_branch.1
= control target key start
LH: loop header
LB: loop body
LE: loop exit
PB: predicated region body
PF: predicated region fallthrough
CT: control target
= control target key end

     0   :  { %s7040_s6 = smov 1   ;;  %s7041_s10 = smov 2   ;;  %s8788_s0 = inlined_call_operand.smem [shape: u32[30], index: -1, kind: input, shape index: {}] }
   0x1   :  { %s7088_s5 = sld [smem:[%s8788_s0]]   ;;  %s7042_s14 = smov 3  }
   0x2   :  { %s7093_s9 = sld [smem:[%s8788_s0 + %s7040_s6]]   ;;  %s7043_s18 = smov 4  }
   0x3   :  { %s7098_s13 = sld [smem:[%s8788_s0 + %s7041_s10]]   ;;  %s7044_s22 = smov 5  }
   0x4   :  { %s7103_s17 = sld [smem:[%s8788_s0 + %s7042_s14]]   ;;  %s7045_s26 = smov 6  }
   0x5   :  { %s7108_s21 = sld [smem:[%s8788_s0 + %s7043_s18]]   ;;  %s7046_s30 = smov 7  }
   0x6   :  { %s7113_s25 = sld [smem:[%s8788_s0 + %s7044_s22]]   ;;  %s7047_s4 = smov 8  }
   0x7   :  { %s7118_s29 = sld [smem:[%s8788_s0 + %s7045_s26]]   ;;  %s7048_s10 = smov 9  }
   0x8   :  { %s7123_s3 = sld [smem:[%s8788_s0 + %s7046_s30]]   ;;  %s7049_s15 = smov 10  }
   0x9   :  { %s7128_s8 = sld [smem:[%s8788_s0 + %s7047_s4]]   ;;  %s7050_s20 = smov 11  }
   0xa   :  { %s7133_s14 = sld [smem:[%s8788_s0 + %s7048_s10]]   ;;  %s7051_s26 = smov 12  }
   0xb   :  { %s7138_s19 = sld [smem:[%s8788_s0 + %s7049_s15]]   ;;  %s7052_s1 = smov 13  }
   0xc   :  { %s7143_s24 = sld [smem:[%s8788_s0 + %s7050_s20]]   ;;  %s7053_s7 = smov 14  }
   0xd   :  { %s7148_s30 = sld [smem:[%s8788_s0 + %s7051_s26]]   ;;  %s7054_s15 = smov 15  }
   0xe   :  { %s7153_s6 = sld [smem:[%s8788_s0 + %s7052_s1]]   ;;  %s7055_s22 = smov 16  }
   0xf   :  { %s7158_s12 = sld [smem:[%s8788_s0 + %s7053_s7]]   ;;  %s7056_s28 = smov 17  }
  0x10   :  { %s7163_s20 = sld [smem:[%s8788_s0 + %s7054_s15]]   ;;  %s7057_s7 = smov 18  }
  0x11   :  { %s7168_s27 = sld [smem:[%s8788_s0 + %s7055_s22]]   ;;  %s7058_s15 = smov 19  }
  0x12   :  { %s7173_s4 = sld [smem:[%s8788_s0 + %s7056_s28]]   ;;  %s7059_s22 = smov 20  }
  0x13   :  { %s7060_s28 = smov 21  }
  0x15   :  { %8833 = sst [smem:[#allocation2_spill]] %s7158_s12 }
  0x16   :  { %8834 = sst [smem:[#allocation3_spill]] %s7163_s20 }
  0x17   :  { %8835 = sst [smem:[#allocation4_spill]] %s7168_s27 }
  0x18   :  { %8836 = sst [smem:[#allocation5_spill]] %s7173_s4 }
  0x19   :  { %s7178_s12 = sld [smem:[%s8788_s0 + %s7057_s7]]   ;;  %s7061_s7 = smov 22  }
  0x1a   :  { %s7183_s20 = sld [smem:[%s8788_s0 + %s7058_s15]]   ;;  %s7062_s15 = smov 23  }
  0x1b   :  { %s7188_s27 = sld [smem:[%s8788_s0 + %s7059_s22]]   ;;  %s7063_s22 = smov 24  }
  0x1c   :  { %s7193_s4 = sld [smem:[%s8788_s0 + %s7060_s28]]   ;;  %s7064_s28 = smov 25  }
  0x1f   :  { %8837 = sst [smem:[#allocation6_spill]] %s7178_s12 }
  0x20   :  { %8838 = sst [smem:[#allocation7_spill]] %s7183_s20 }
  0x21   :  { %8839 = sst [smem:[#allocation8_spill]] %s7188_s27 }
  0x22   :  { %8840 = sst [smem:[#allocation9_spill]] %s7193_s4 }
  0x23   :  { %s7198_s12 = sld [smem:[%s8788_s0 + %s7061_s7]]   ;;  %s7065_s7 = smov 26  }
  0x24   :  { %s7203_s20 = sld [smem:[%s8788_s0 + %s7062_s15]]   ;;  %s7066_s15 = smov 27  }
  0x25   :  { %s7208_s27 = sld [smem:[%s8788_s0 + %s7063_s22]]   ;;  %s7067_s22 = smov 28  }
  0x26   :  { %s7213_s4 = sld [smem:[%s8788_s0 + %s7064_s28]]   ;;  %s7068_s28 = smov 29  }
  0x29   :  { %8841 = sst [smem:[#allocation10_spill]] %s7198_s12 }
  0x2a   :  { %8842 = sst [smem:[#allocation11_spill]] %s7203_s20 }
  0x2b   :  { %8843 = sst [smem:[#allocation12_spill]] %s7208_s27 }
  0x2c   :  { %8844 = sst [smem:[#allocation13_spill]] %s7213_s4 }
  0x2d   :  { %s7218_s12 = sld [smem:[%s8788_s0 + %s7065_s7]]   ;;  %s7235_s7 = smov 0  }
  0x2e   :  { %s7223_s20 = sld [smem:[%s8788_s0 + %s7066_s15]]  }
  0x2f   :  { %s7228_s27 = sld [smem:[%s8788_s0 + %s7067_s22]]  }
  0x30   :  { %s7233_s4 = sld [smem:[%s8788_s0 + %s7068_s28]]  }
  0x31 LB: > { %s6318_s10 = sadd.s32 4294967295, %s7038_s7   ;;  %p6322_p0 = scmp.ge.s32.totalorder %s7038_s7, 1  ;;  %s7038_s7 = sphi %s7235_s7, %s69_s7  }
  0x32   : > { %p817_p1 = scmp.lt.s32.totalorder %s7038_s7, 3 }
  0x34   : > { %p818_p2 = pnand %p6322_p0, %p817_p1 }
  0x36   : > { %821 = sbr.rel (%p818_p2) target bundleno = 5120 (0x1400), region = 136 }
  0x3b   : > { %p893_p3 = scmp.lt.s32.totalorder %s6318_s10, 1  ;;  %v8797_v0 = vmov 0.0   ;;  %s7070_s15 = smov 16   ;;  %v2123_v3 = vld [vmem:[%s7108_s21 + $0x18] sm:$0xff]  ;;  %v2122_v4 = vld [vmem:[%s7108_s21 + $0x10] sm:$0xff]  ;;  %v7078_v5 = vmov 0   ;;  %v923_v8 = vlaneseq }
  0x3c   : > { %1046 = vmatprep.mubr.f32.mxu0 %v8797_v0  ;;  %1159 = vmatprep.mubr.f32.mxu1 %v8797_v0  ;;  %s7071_s16 = smov 17   ;;  %s7072_s18 = smov 15   ;;  %v2120_v6 = vld [vmem:[%s7108_s21] sm:$0xff]  ;;  %v2121_v7 = vld [vmem:[%s7108_s21 + $0x8] sm:$0xff]  ;;  %vm944_vm0 = vcmask 130048   ;;  %vm916_vm1 = vcmask 138240  }
  0x3d   : > { %s8946_s10 = smov (!%p893_p3, %s6318_s10), 1  ;;  %s7073_s22 = smov 1   ;;  %6962 = vset.pattern.permute.xlu0 %v7078_v5  ;;  %6963 = vset.pattern.permute.xlu1 %v7078_v5  ;;  %v924_v9 = vshrl.u32 %v923_v8, 7  ;;  %v6327_v12 = vld [vmem:[%s7093_s9 + $0x2] sm:$0x3]  ;;  %vm1177_vm2 = vcmask 121856  }
  0x3e   : > { %s6632_s0 = sshll.u32 %s8946_s10, 4  ;;  %s7074_s23 = smov 127   ;;  %v921_v13 = vld [vmem:[%s7093_s9] sm:$0x3]  ;;  %v7296_v16 = vld [vmem:[%s7093_s9 + $0x4] sm:$0x3] }
  0x3f   : > { %s897_s11 = scalar_lea.vmem %s7088_s5, %s6632_s0  ;;  %s7075_s26 = smov 113   ;;  %v7289_v10 = vsub.s32 1, %v924_v9  ;;  %v7291_v11 = vsub.s32 0, %v924_v9  ;;  %v6328_v32 = vld [vmem:[%s7103_s17 + $0x20] sm:$0xff]  ;;  %vm969_vm3 = vcmask 64512   ;;  %v937_v33 = vld [vmem:[%s7103_s17 + $0x10] sm:$0xff] }
  0x40   : > { %v7249_v1 = vld [vmem:[%s897_s11 + $0x8] sm:$0xff]  ;;  %v7255_v2 = vld [vmem:[%s897_s11] sm:$0xff]  ;;  %s7076_s28 = smov 112   ;;  %s7077_s1 = smov 111   ;;  %vm1316_vm4 = vcmask 7168   ;;  %v938_v43 = vld [vmem:[%s7103_s17 + $0x18] sm:$0xff] }
  0x41   : > { %939 = vrot.lane.b32.xlu0 %v7249_v1, %s7070_s15  ;;  %910 = vrot.lane.b32.xlu1 %v7249_v1, %s7071_s16  ;;  %v7299_v17 = vrot.slane %v6327_v12, %v7289_v10  ;;  %v7302_v18 = vrot.slane %v6327_v12, %v7291_v11  ;;  %v7305_v19 = vrot.slane %v921_v13, %v7289_v10  ;;  %v6349_v34 = vld [vmem:[%s7093_s9 + $0x6] sm:$0x3]  ;;  %v6366_v41 = vld [vmem:[%s7093_s9 + $0xa] sm:$0x3]  ;;  %vm1568_vm5 = vcmask 1039360   ;;  %s8872_s2 = sld [smem:[#allocation2_spill]] }
  0x42   : > { %v7308_v20 = vrot.slane %v921_v13, %v7291_v11  ;;  %v7312_v23 = vrot.slane %v7296_v16, %v7289_v10  ;;  %v7329_v38 = vrot.slane %v6349_v34, %v7291_v11  ;;  %v7333_v40 = vrot.slane %v6349_v34, %v7289_v10  ;;  %v6329_v42 = vld [vmem:[%s7103_s17 + $0x28] sm:$0xff]  ;;  %v6330_v52 = vld [vmem:[%s7103_s17 + $0x30] sm:$0xff]  ;;  %v6350_v53 = vld [vmem:[%s7103_s17 + $0x60] sm:$0xff]  ;;  %s8873_s0 = sld [smem:[#allocation3_spill]] }
  0x43   : > { %8845 = vst [vmem:[#allocation14_spill] sm:$0xff] %v7299_v17  ;;  %8846 = vst [vmem:[#allocation15_spill] sm:$0xff] %v7302_v18  ;;  %v7343_v48 = vrot.slane %v6366_v41, %v7291_v11  ;;  %v7350_v51 = vrot.slane %v6366_v41, %v7289_v10  ;;  %v6331_v60 = vld [vmem:[%s7103_s17 + $0x38] sm:$0xff]  ;;  %v7366_v61 = vrot.slane %v7296_v16, %v7291_v11  ;;  %v6351_v62 = vld [vmem:[%s7103_s17 + $0x68] sm:$0xff]  ;;  %vm1846_vm6 = vcmask 916480   ;;  %s8874_s11 = sld [smem:[#allocation5_spill]] }
  0x44   : > { %8847 = vst [vmem:[#allocation16_spill] sm:$0xff] %v7305_v19  ;;  %8848 = vst [vmem:[#allocation17_spill] sm:$0xff] %v7308_v20  ;;  %v6384_v63 = vld [vmem:[%s7093_s9 + $0xe] sm:$0x3]  ;;  %v6352_v9 = vld [vmem:[%s7103_s17 + $0x70] sm:$0xff]  ;;  %vm1707_vm7 = vcmask 924672  }
  0x45   : > { %942 = vrot.lane.b32.xlu0 %v7255_v2, %s7070_s15  ;;  %914 = vrot.lane.b32.xlu1 %v7255_v2, %s7071_s16  ;;  %8849 = vst [vmem:[#allocation18_spill] sm:$0xff] %v7312_v23  ;;  %8850 = vst [vmem:[#allocation19_spill] sm:$0xff] %v7329_v38  ;;  %v6369_v34 = vld [vmem:[%s7103_s17 + $0xb0] sm:$0xff]  ;;  %vm1985_vm8 = vcmask 908288   ;;  %v6370_v41 = vld [vmem:[%s7103_s17 + $0xb8] sm:$0xff]  ;;  %vm7079_vm9 = vmmov 0  }
  0x46   : > { %8851 = vst [vmem:[#allocation20_spill] sm:$0xff] %v7333_v40  ;;  %8852 = vst [vmem:[#allocation21_spill] sm:$0xff] %v7343_v48  ;;  %vm2187_vm10 = vcmask 261120   ;;  %vm2270_vm11 = vcmask 15360   ;;  %vm2283_vm12 = vcmask 1041408   ;;  %vm2810_vm13 = vcmask 31744  }
  0x47   : > { %8853 = vst [vmem:[#allocation22_spill] sm:$0xff] %v7350_v51  ;;  %8854 = vst [vmem:[#allocation23_spill] sm:$0xff] %v7366_v61  ;;  %vm5043_vm14 = vcmask 523264   ;;  %vm5158_vm15 = vcmask 1043456  }
  0x49   : > { %1175 = vrot.lane.b32.xlu1 %v7255_v2, %s7072_s18  ;;  %1172 = vrot.lane.b32.xlu0 %v7249_v1, %s7072_s18 }
  0x4d   : > { %1314 = vrot.lane.b32.xlu1 %v7255_v2, %s7073_s22  ;;  %1311 = vrot.lane.b32.xlu0 %v7249_v1, %s7073_s22 }
  0x51   : > { %1566 = vrot.lane.b32.xlu1 %v7249_v1, %s7074_s23  ;;  %1564 = vrot.lane.b32.xlu0 %v7255_v2, %s7074_s23 }
  0x55   : > { %1705 = vrot.lane.b32.xlu1 %v7249_v1, %s7075_s26  ;;  %1703 = vrot.lane.b32.xlu0 %v7255_v2, %s7075_s26 }
  0x59   : > { %1844 = vrot.lane.b32.xlu1 %v7249_v1, %s7076_s28  ;;  %1842 = vrot.lane.b32.xlu0 %v7255_v2, %s7076_s28 }
  0x5d   : > { %1983 = vrot.lane.b32.xlu1 %v7249_v1, %s7077_s1  ;;  %1981 = vrot.lane.b32.xlu0 %v7255_v2, %s7077_s1 }
  0x61   : > { %2141 = vperm.xlu0 %6962, %v2123_v3   ;;  %2136 = vperm.xlu1 %6963, %v2122_v4  }
  0x65   : > { %2126 = vperm.xlu0 %6962, %v2120_v6   ;;  %2131 = vperm.xlu1 %6963, %v2121_v7   ;;  %v7379_v6 = vrot.slane %v6384_v63, %v7289_v10  ;;  %v935_v7 = vld [vmem:[%s7103_s17] sm:$0xff] }
  0x67   : > { %8855 = vst [vmem:[#allocation24_spill] sm:$0xff] %v7379_v6 }
  0xb3   : > { %v940_v14 = vpop.permute.xlu0 %939  ;;  %v911_v15 = vpop.permute.xlu1 %910 }
  0xb7   : > { %v943_v21 = vpop.permute.xlu0 %942  ;;  %v915_v22 = vpop.permute.xlu1 %914 }
  0xb8   : > { %v945_v24 = vsel %vm944_vm0, %v943_v21, %v940_v14  ;;  %v948_v25 = vsel %vm944_vm0, %v940_v14, %v943_v21  ;;  %v917_v26 = vsel %vm916_vm1, %v915_v22, %v911_v15  ;;  %v920_v27 = vsel %vm916_vm1, %v911_v15, %v915_v22  ;;  %v6375_v14 = vld [vmem:[%s7093_s9 + $0xc] sm:$0x3]  ;;  %v6353_v22 = vld [vmem:[%s7103_s17 + $0x78] sm:$0xff] }
  0xb9   : > { %v963_v28 = vmul.f32 %v7299_v17, %v945_v24  ;;  %v962_v29 = vmul.f32 %v7302_v18, %v948_v25  ;;  %v934_v30 = vmul.f32 %v7305_v19, %v917_v26  ;;  %v933_v31 = vmul.f32 %v7308_v20, %v920_v27  ;;  %v936_v21 = vld [vmem:[%s7103_s17 + $0x8] sm:$0xff] }
  0xba   : > { %v7397_v24 = vrot.slane %v6375_v14, %v7289_v10  ;;  %v7403_v26 = vrot.slane %v6384_v63, %v7291_v11  ;;  %v6394_v63 = vld [vmem:[%s7103_s17 + $0x100] sm:$0xff] }
  0xbb   : > { %1012 = vmatprep.subr.mxu0 %v963_v28  ;;  %6912 = vmatprep.subr.mxu1 %v934_v30  ;;  %v1176_v35 = vpop.permute.xlu1 %1175  ;;  %v1173_v36 = vpop.permute.xlu0 %1172  ;;  %v6367_v28 = vld [vmem:[%s7103_s17 + $0xa0] sm:$0xff] }
  0xbc   : > { %1013 = vmatpush1.msra.mxu0 %v962_v29  ;;  %6913 = vmatpush1.msra.mxu1 %v933_v31  ;;  %v1178_v37 = vsel %vm1177_vm2, %v1176_v35, %v1173_v36  ;;  %v1181_v3 = vsel %vm1177_vm2, %v1173_v36, %v1176_v35  ;;  %8856 = vst [vmem:[#allocation25_spill] sm:$0xff] %v7397_v24  ;;  %8857 = vst [vmem:[#allocation26_spill] sm:$0xff] %v7403_v26 }
  0xbd   : > { %6332 = vmatmul.mubr.msk.f32.vlgmr.msra.gmra.mxu0 %vm969_vm3, %v6328_v32  ;;  %6338 = vmatmul.mubr.msk.f32.vlgmr.msra.gmra.mxu1 %vm969_vm3, %v937_v33  ;;  %v1196_v39 = vmul.f32 %v7312_v23, %v1178_v37  ;;  %v1195_v8 = vmul.f32 %v7366_v61, %v1181_v3  ;;  %v6368_v32 = vld [vmem:[%s7103_s17 + $0xa8] sm:$0xff]  ;;  %v6343_v33 = vld [vmem:[%s7103_s17 + $0x50] sm:$0xff]  ;;  %v6344_v37 = vld [vmem:[%s7103_s17 + $0x58] sm:$0xff] }
  0xbe   : > { %1052 = vmatprep.mubr.f32.mxu0 %v8797_v0  ;;  %1113 = vmatprep.subr.mxu0 %v934_v30  ;;  %v6395_v3 = vld [vmem:[%s7103_s17 + $0x108] sm:$0xff] }
  0xbf   : > { %1114 = vmatpush1.msra.mxu0 %v933_v31  ;;  %1165 = vmatprep.mubr.f32.mxu1 %v8797_v0  ;;  %v1315_v44 = vpop.permute.xlu1 %1314  ;;  %v1312_v45 = vpop.permute.xlu0 %1311  ;;  %v6342_v31 = vld [vmem:[%s7103_s17 + $0x48] sm:$0xff] }
  0xc0   : > { %v1317_v46 = vsel %vm1316_vm4, %v1315_v44, %v1312_v45  ;;  %v1320_v47 = vsel %vm1316_vm4, %v1312_v45, %v1315_v44  ;;  %1244 = vmatprep.subr.mxu0 %v1196_v39  ;;  %v7434_v39 = vrot.slane %v6375_v14, %v7291_v11  ;;  %v6358_v45 = vld [vmem:[%s7103_s17 + $0x80] sm:$0xff] }
  0xc1   : > { %6333 = vmatmul.mubr.msk.f32.gmra.mxu0 %vm969_vm3, %v6329_v42  ;;  %6339 = vmatmul.mubr.msk.f32.gmra.mxu1 %vm969_vm3, %v938_v43  ;;  %v1334_v49 = vmul.f32 %v7329_v38, %v1320_v47  ;;  %v1335_v50 = vmul.f32 %v7333_v40, %v1317_v46  ;;  %v6385_v47 = vld [vmem:[%s7103_s17 + $0xe0] sm:$0xff] }
  0xc2   : > { %1058 = vmatprep.mubr.f32.mxu0 %v8797_v0  ;;  %1417 = vmatprep.mubr.f32.mxu1 %v8797_v0  ;;  %8858 = vst [vmem:[#allocation27_spill] sm:$0xff] %v7434_v39 }
  0xc3   : > { %1383 = vmatprep.subr.mxu1 %v1335_v50  ;;  %v1567_v54 = vpop.permute.xlu1 %1566  ;;  %v1565_v55 = vpop.permute.xlu0 %1564  ;;  %v6386_v50 = vld [vmem:[%s7103_s17 + $0xe8] sm:$0xff] }
  0xc4   : > { %1384 = vmatpush1.msra.mxu1 %v1334_v49  ;;  %v1569_v56 = vsel %vm1568_vm5, %v1565_v55, %v1567_v54  ;;  %v1573_v57 = vsel %vm1568_vm5, %v1567_v54, %v1565_v55  ;;  %v6361_v54 = vld [vmem:[%s7103_s17 + $0x98] sm:$0xff] }
  0xc5   : > { %6334 = vmatmul.mubr.msk.f32.gmra.mxu0 %vm969_vm3, %v6330_v52  ;;  %6354 = vmatmul.mubr.msk.f32.vlgmr.msra.gmra.mxu1 %vm969_vm3, %v6350_v53  ;;  %v1587_v58 = vmul.f32 %v7343_v48, %v1569_v56  ;;  %v1588_v59 = vmul.f32 %v7350_v51, %v1573_v57  ;;  %v6360_v52 = vld [vmem:[%s7103_s17 + $0x90] sm:$0xff]  ;;  %v6388_v56 = vld [vmem:[%s7103_s17 + $0xf8] sm:$0xff] }
  0xc6   : > { %1064 = vmatprep.mubr.f32.mxu0 %v8797_v0  ;;  %1423 = vmatprep.mubr.f32.mxu1 %v8797_v0  ;;  %v6387_v53 = vld [vmem:[%s7103_s17 + $0xf0] sm:$0xff] }
  0xc7   : > { %1636 = vmatprep.subr.mxu1 %v1588_v59  ;;  %v7372_v4 = vpop.permute.xlu1 %1705  ;;  %v7374_v5 = vpop.permute.xlu0 %1703 }
  0xc8   : > { %1637 = vmatpush1.msra.mxu1 %v1587_v58  ;;  %v1712_v25 = vsel %vm1707_vm7, %v7372_v4, %v7374_v5  ;;  %v1708_v42 = vsel %vm1707_vm7, %v7374_v5, %v7372_v4  ;;  %v6376_v58 = vld [vmem:[%s7103_s17 + $0xc0] sm:$0xff]  ;;  %v6396_v4 = vld [vmem:[%s7103_s17 + $0x110] sm:$0xff]  ;;  %v6397_v5 = vld [vmem:[%s7103_s17 + $0x118] sm:$0xff] }
  0xc9   : > { %6335 = vmatmul.mubr.msk.f32.gmra.mxu0 %vm969_vm3, %v6331_v60  ;;  %6355 = vmatmul.mubr.msk.f32.gmra.mxu1 %vm969_vm3, %v6351_v62  ;;  %v1727_v29 = vmul.f32 %v7397_v24, %v1712_v25  ;;  %v1726_v46 = vmul.f32 %v7434_v39, %v1708_v42  ;;  %v6378_v60 = vld [vmem:[%s7103_s17 + $0xd0] sm:$0xff]  ;;  %v6379_v62 = vld [vmem:[%s7103_s17 + $0xd8] sm:$0xff] }
  0xca   : > { %1147 = vmatprep.mubr.f32.mxu0 %v8797_v0  ;;  %1429 = vmatprep.mubr.f32.mxu1 %v8797_v0 }
  0xcb   : > { %v1845_v12 = vpop.permute.xlu1 %1844  ;;  %v1843_v13 = vpop.permute.xlu0 %1842 }
  0xcc   : > { %v1851_v15 = vsel %vm1846_vm6, %v1845_v12, %v1843_v13  ;;  %v1847_v27 = vsel %vm1846_vm6, %v1843_v13, %v1845_v12 }
  0xcd   : > { %6336 = vmatmul.mubr.msk.f32.vlgmr.msra.gmra.mxu0 %vm969_vm3, %v935_v7  ;;  %6356 = vmatmul.mubr.msk.f32.gmra.mxu1 %vm969_vm3, %v6352_v9  ;;  %v1866_v16 = vmul.f32 %v7379_v6, %v1851_v15  ;;  %v1865_v30 = vmul.f32 %v7403_v26, %v1847_v27 }
  0xce   : > { %1153 = vmatprep.mubr.f32.mxu0 %v8797_v0  ;;  %1245 = vmatpush1.msra.mxu0 %v1195_v8 }
  0xcf   : > { %1435 = vmatprep.mubr.f32.mxu1 %v8797_v0  ;;  %1497 = vmatprep.subr.mxu0 %v7249_v1  ;;  %v6341_v1 = vld [vmem:[%s7103_s17 + $0x40] sm:$0xff]  ;;  %v1984_v35 = vpop.permute.xlu1 %1983  ;;  %v1982_v36 = vpop.permute.xlu0 %1981 }
  0xd0   : > { %1914 = vmatprep.subr.mxu1 %v1866_v16  ;;  %v1990_v44 = vsel %vm1985_vm8, %v1984_v35, %v1982_v36  ;;  %v1986_v57 = vsel %vm1985_vm8, %v1982_v36, %v1984_v35 }
  0xd1   : > { %6337 = vmatmul.mubr.msk.f32.gmra.mxu0 %vm969_vm3, %v936_v21  ;;  %6357 = vmatmul.mubr.msk.f32.gmra.mxu1 %vm969_vm3, %v6353_v22 }
  0xd2   : > { %1278 = vmatprep.mubr.f32.mxu0 %v8797_v0  ;;  %1670 = vmatprep.mubr.f32.mxu1 %v8797_v0 }
  0xd5   : > { %6345 = vmatmul.mubr.msk.f32.vlgmr.msra.gmra.mxu0 %vm969_vm3, %v6341_v1  ;;  %6371 = vmatmul.mubr.msk.f32.vlgmr.msra.gmra.mxu1 %vm969_vm3, %v6367_v28 }
  0xd6   : > { %1284 = vmatprep.mubr.f32.mxu0 %v8797_v0  ;;  %1498 = vmatpush1.msra.mxu0 %v7255_v2  ;;  %v6393_v2 = vld [vmem:[%s7093_s9 + $0x10] sm:$0x3] }
  0xd7   : > { %1676 = vmatprep.mubr.f32.mxu1 %v8797_v0  ;;  %1775 = vmatprep.subr.mxu0 %v1727_v29  ;;  %v7442_v43 = vrot.slane %v6393_v2, %v7289_v10  ;;  %v6359_v10 = vld [vmem:[%s7103_s17 + $0x88] sm:$0xff]  ;;  %v7470_v55 = vrot.slane %v6393_v2, %v7291_v11 }
  0xd8   : > { %1915 = vmatpush1.msra.mxu1 %v1865_v30  ;;  %v6377_v11 = vld [vmem:[%s7103_s17 + $0xc8] sm:$0xff] }
  0xd9   : > { %6346 = vmatmul.mubr.msk.f32.gmra.mxu0 %vm969_vm3, %v6342_v31  ;;  %6372 = vmatmul.mubr.msk.f32.gmra.mxu1 %vm969_vm3, %v6368_v32  ;;  %8859 = vst [vmem:[#allocation28_spill] sm:$0xff] %v7442_v43  ;;  %v2005_v49 = vmul.f32 %v7442_v43, %v1990_v44  ;;  %8860 = vst [vmem:[#allocation29_spill] sm:$0xff] %v7470_v55  ;;  %v2004_v59 = vmul.f32 %v7470_v55, %v1986_v57 }
  0xda   : > { %1290 = vmatprep.mubr.f32.mxu0 %v8797_v0  ;;  %1682 = vmatprep.mubr.f32.mxu1 %v8797_v0 }
  0xdb   : > { %6734 = vmatprep.subr.mxu1 %v8797_v0 }
  0xdd   : > { %6347 = vmatmul.mubr.msk.f32.gmra.mxu0 %vm969_vm3, %v6343_v33  ;;  %6373 = vmatmul.mubr.msk.f32.gmra.mxu1 %vm969_vm3, %v6369_v34 }
  0xde   : > { %1296 = vmatprep.mubr.f32.mxu0 %v8797_v0  ;;  %1688 = vmatprep.mubr.f32.mxu1 %v8797_v0 }
  0xe1   : > { %6348 = vmatmul.mubr.msk.f32.gmra.mxu0 %vm969_vm3, %v6344_v37  ;;  %6374 = vmatmul.mubr.msk.f32.gmra.mxu1 %vm969_vm3, %v6370_v41 }
  0xe2   : > { %1531 = vmatprep.mubr.f32.mxu0 %v8797_v0  ;;  %1948 = vmatprep.mubr.f32.mxu1 %v8797_v0 }
  0xe5   : > { %6362 = vmatmul.mubr.msk.f32.vlgmr.msra.gmra.mxu0 %vm969_vm3, %v6358_v45  ;;  %6389 = vmatmul.mubr.msk.f32.vlgmr.msra.gmra.mxu1 %vm969_vm3, %v6385_v47 }
  0xe6   : > { %1537 = vmatprep.mubr.f32.mxu0 %v8797_v0  ;;  %1776 = vmatpush1.msra.mxu0 %v1726_v46 }
  0xe7   : > { %1954 = vmatprep.mubr.f32.mxu1 %v8797_v0  ;;  %2053 = vmatprep.subr.mxu0 %v2005_v49 }
  0xe9   : > { %6363 = vmatmul.mubr.msk.f32.gmra.mxu0 %vm969_vm3, %v6359_v10  ;;  %6390 = vmatmul.mubr.msk.f32.gmra.mxu1 %vm969_vm3, %v6386_v50 }
  0xea   : > { %1543 = vmatprep.mubr.f32.mxu0 %v8797_v0  ;;  %1960 = vmatprep.mubr.f32.mxu1 %v8797_v0 }
  0xed   : > { %6364 = vmatmul.mubr.msk.f32.gmra.mxu0 %vm969_vm3, %v6360_v52  ;;  %6391 = vmatmul.mubr.msk.f32.gmra.mxu1 %vm969_vm3, %v6387_v53 }
  0xee   : > { %1549 = vmatprep.mubr.f32.mxu0 %v8797_v0  ;;  %1966 = vmatprep.mubr.f32.mxu1 %v8797_v0 }
  0xf1   : > { %6365 = vmatmul.mubr.msk.f32.gmra.mxu0 %vm969_vm3, %v6361_v54  ;;  %6392 = vmatmul.mubr.msk.f32.gmra.mxu1 %vm969_vm3, %v6388_v56 }
  0xf2   : > { %1809 = vmatprep.mubr.f32.mxu0 %v8797_v0 }
  0xf5   : > { %6380 = vmatmul.mubr.msk.f32.vlgmr.msra.gmra.mxu0 %vm969_vm3, %v6376_v58 }
  0xf6   : > { %1815 = vmatprep.mubr.f32.mxu0 %v8797_v0  ;;  %2054 = vmatpush1.msra.mxu0 %v2004_v59 }
  0xf9   : > { %6381 = vmatmul.mubr.msk.f32.gmra.mxu0 %vm969_vm3, %v6377_v11 }
  0xfa   : > { %1821 = vmatprep.mubr.f32.mxu0 %v8797_v0 }
  0xfd   : > { %6382 = vmatmul.mubr.msk.f32.gmra.mxu0 %vm969_vm3, %v6378_v60 }
  0xfe   : > { %1827 = vmatprep.mubr.f32.mxu0 %v8797_v0 }
 0x101   : > { %6383 = vmatmul.mubr.msk.f32.gmra.mxu0 %vm969_vm3, %v6379_v62 }
 0x102   : > { %2087 = vmatprep.mubr.f32.mxu0 %v8797_v0 }
 0x105   : > { %6398 = vmatmul.mubr.msk.f32.vlgmr.msra.gmra.mxu0 %vm969_vm3, %v6394_v63 }
 0x106   : > { %2093 = vmatprep.mubr.f32.mxu0 %v8797_v0 }
 0x109   : > { %6399 = vmatmul.mubr.msk.f32.gmra.mxu0 %vm969_vm3, %v6395_v3 }
 0x10a   : > { %2099 = vmatprep.mubr.f32.mxu0 %v8797_v0 }
 0x10d   : > { %6400 = vmatmul.mubr.msk.f32.gmra.mxu0 %vm969_vm3, %v6396_v4 }
 0x10e   : > { %2105 = vmatprep.mubr.f32.mxu0 %v8797_v0 }
 0x111   : > { %6401 = vmatmul.mubr.msk.f32.gmra.mxu0 %vm969_vm3, %v6397_v5 }
 0x17d   : > { %v7502_v7 = vpop.f32.mrf.mxu0  ;;  %v1161_v8 = vpop.f32.mrf.mxu1 }
 0x17f   : > { %v7504_v9 = vpop.f32.mrf.mxu0  ;;  %v1163_v12 = vpop.f32.mrf.mxu1 }
 0x181   : > { %v1054_v13 = vpop.f32.mrf.mxu0  ;;  %v1167_v14 = vpop.f32.mrf.mxu1 }
 0x183   : > { %v1056_v15 = vpop.f32.mrf.mxu0  ;;  %v7506_v16 = vpop.f32.mrf.mxu1 }
 0x185   : > { %v1060_v21 = vpop.f32.mrf.mxu0  ;;  %v7508_v22 = vpop.f32.mrf.mxu1 }
 0x186   : > { %v1162_v40 = vadd.f32 %v1161_v8, %v1060_v21 }
 0x187   : > { %v1062_v25 = vpop.f32.mrf.mxu0  ;;  %v7510_v27 = vpop.f32.mrf.mxu1 }
 0x188   : > { %v1164_v23 = vadd.f32 %v1163_v12, %v1062_v25 }
 0x189   : > { %v1066_v1 = vpop.f32.mrf.mxu0  ;;  %v1425_v28 = vpop.f32.mrf.mxu1 }
 0x18b   : > { %v1068_v29 = vpop.f32.mrf.mxu0  ;;  %v1427_v30 = vpop.f32.mrf.mxu1 }
 0x18d   : > { %v1149_v31 = vpop.f32.mrf.mxu0  ;;  %v1431_v32 = vpop.f32.mrf.mxu1 }
 0x18f   : > { %v1151_v33 = vpop.f32.mrf.mxu0  ;;  %v1433_v34 = vpop.f32.mrf.mxu1 }
 0x191   : > { %v1155_v2 = vpop.f32.mrf.mxu0  ;;  %v7512_v35 = vpop.f32.mrf.mxu1 }
 0x192   : > { %v1156_v6 = vadd.f32 %v1155_v2, %v1054_v13  ;;  %v1152_v13 = vadd.f32 %v1151_v33, %v7504_v9 }
 0x193   : > { %v1157_v36 = vpop.f32.mrf.mxu0  ;;  %v7514_v37 = vpop.f32.mrf.mxu1 }
 0x194   : > { %v1158_v24 = vadd.f32 %v1157_v36, %v1056_v15  ;;  %v1170_v15 = vadd.f32 %v7506_v16, %v1068_v29  ;;  %v2137_v16 = vpop.permute.xlu1 %2136 }
 0x195   : > { %v1280_v41 = vpop.f32.mrf.mxu0  ;;  %v7516_v42 = vpop.f32.mrf.mxu1 }
 0x196   : > { %8861 = vst [vmem:[#allocation30_spill] sm:$0xff] %v7516_v42 }
 0x197   : > { %v1282_v44 = vpop.f32.mrf.mxu0  ;;  %v7518_v45 = vpop.f32.mrf.mxu1 }
 0x198   : > { %v1304_v12 = vadd.f32 %v1282_v44, %v1152_v13 }
 0x199   : > { %v1286_v46 = vpop.f32.mrf.mxu0  ;;  %v1678_v49 = vpop.f32.mrf.mxu1 }
 0x19a   : > { %v1305_v51 = vadd.f32 %v1286_v46, %v1156_v6 }
 0x19b   : > { %v1288_v47 = vpop.f32.mrf.mxu0  ;;  %v1680_v52 = vpop.f32.mrf.mxu1 }
 0x19c   : > { %v1306_v38 = vadd.f32 %v1288_v47, %v1158_v24  ;;  %v1444_v20 = vadd.f32 %v1425_v28, %v1305_v51  ;;  %v1150_v24 = vadd.f32 %v1149_v31, %v7502_v7 }
 0x19d   : > { %v1292_v10 = vpop.f32.mrf.mxu0  ;;  %v1684_v56 = vpop.f32.mrf.mxu1 }
 0x19e   : > { %v1307_v17 = vadd.f32 %v1292_v10, %v1162_v40 }
 0x19f   : > { %v1294_v50 = vpop.f32.mrf.mxu0  ;;  %v1686_v59 = vpop.f32.mrf.mxu1 }
 0x1a0   : > { %v1308_v18 = vadd.f32 %v1294_v50, %v1164_v23  ;;  %v1446_v6 = vadd.f32 %v1431_v32, %v1307_v17  ;;  %v1443_v17 = vadd.f32 %v7510_v27, %v1304_v12  ;;  %v2132_v50 = vpop.permute.xlu1 %2131 }
 0x1a1   : > { %v1298_v53 = vpop.f32.mrf.mxu0  ;;  %v7522_v62 = vpop.f32.mrf.mxu1 }
 0x1a2   : > { %v1447_v21 = vadd.f32 %v1433_v34, %v1308_v18 }
 0x1a3   : > { %v1300_v54 = vpop.f32.mrf.mxu0  ;;  %v7524_v4 = vpop.f32.mrf.mxu1 }
 0x1a4   : > { %8862 = vst [vmem:[#allocation31_spill] sm:$0xff] %v7524_v4  ;;  %v1445_v4 = vadd.f32 %v1427_v30, %v1306_v38  ;;  %v1310_v40 = vadd.f32 %v1300_v54, %v1170_v15 }
 0x1a5   : > { %v7520_v57 = vpop.f32.mrf.mxu0  ;;  %v7526_v55 = vpop.f32.mrf.mxu1 }
 0x1a6   : > { %8863 = vst [vmem:[#allocation32_spill] sm:$0xff] %v7526_v55  ;;  %v1168_v55 = vadd.f32 %v1167_v14, %v1066_v1  ;;  %v1303_v14 = vadd.f32 %v1280_v41, %v1150_v24  ;;  %v1449_v7 = vadd.f32 %v7514_v37, %v1310_v40 }
 0x1a7   : > { %v1535_v58 = vpop.f32.mrf.mxu0  ;;  %v7532_v39 = vpop.f32.mrf.mxu1 }
 0x1a8   : > { %v1309_v36 = vadd.f32 %v1298_v53, %v1168_v55  ;;  %v1557_v32 = vadd.f32 %v1535_v58, %v1443_v17 }
 0x1a9   : > { %v1539_v11 = vpop.f32.mrf.mxu0  ;;  %v1956_v19 = vpop.f32.mrf.mxu1 }
 0x1aa   : > { %v1448_v9 = vadd.f32 %v7512_v35, %v1309_v36 }
 0x1ab   : > { %v1541_v60 = vpop.f32.mrf.mxu0  ;;  %v1958_v2 = vpop.f32.mrf.mxu1  ;;  %v8866_v53 = vld [vmem:[#allocation31_spill] sm:$0xff] }
 0x1ac   : > { %v1559_v8 = vadd.f32 %v1541_v60, %v1445_v4 }
 0x1ad   : > { %v1545_v63 = vpop.f32.mrf.mxu0 }
 0x1ae   : > { %v1560_v25 = vadd.f32 %v1545_v63, %v1446_v6  ;;  %v1698_v28 = vadd.f32 %v1680_v52, %v1559_v8  ;;  %v2142_v8 = vpop.permute.xlu0 %2141 }
 0x1af   : > { %v1547_v3 = vpop.f32.mrf.mxu0 }
 0x1b0   : > { %v1561_v38 = vadd.f32 %v1547_v3, %v1447_v21  ;;  %v1699_v29 = vadd.f32 %v1684_v56, %v1560_v25  ;;  %v8870_v25 = vld [vmem:[#allocation32_spill] sm:$0xff] }
 0x1b1   : > { %v1551_v5 = vpop.f32.mrf.mxu0 }
 0x1b2   : > { %v1562_v18 = vadd.f32 %v1551_v5, %v1448_v9  ;;  %v1700_v33 = vadd.f32 %v1686_v59, %v1561_v38 }
 0x1b3   : > { %v1553_v0 = vpop.f32.mrf.mxu0 }
 0x1b4   : > { %v1563_v44 = vadd.f32 %v1553_v0, %v1449_v7  ;;  %v1701_v27 = vadd.f32 %v7522_v62, %v1562_v18 }
 0x1b5   : > { %v7528_v43 = vpop.f32.mrf.mxu0 }
 0x1b6   : > { %8864 = vst [vmem:[#allocation33_spill] sm:$0xff] %v7528_v43  ;;  %v1558_v43 = vadd.f32 %v1539_v11, %v1444_v20  ;;  %v1962_v20 = vpop.f32.mrf.mxu1  ;;  %v1702_v54 = vadd.f32 %v8866_v53, %v1563_v44  ;;  %v2185_v53 = vld [vmem:[%s7113_s25] sm:$0x3] }
 0x1b7   : > { %v7530_v26 = vpop.f32.mrf.mxu0 }
 0x1b8   : > { %8865 = vst [vmem:[#allocation34_spill] sm:$0xff] %v7530_v26  ;;  %v1697_v23 = vadd.f32 %v1678_v49, %v1558_v43  ;;  %v1442_v43 = vadd.f32 %v7508_v22, %v1303_v14  ;;  %v1964_v34 = vpop.f32.mrf.mxu1 }
 0x1b9   : > { %v1817_v48 = vpop.f32.mrf.mxu0 }
 0x1ba   : > { %v1836_v30 = vadd.f32 %v1817_v48, %v1697_v23  ;;  %v1556_v48 = vadd.f32 %v7520_v57, %v1442_v43  ;;  %v1968_v52 = vpop.f32.mrf.mxu1 }
 0x1bb   : > { %v1819_v61 = vpop.f32.mrf.mxu0 }
 0x1bc   : > { %v1837_v31 = vadd.f32 %v1819_v61, %v1698_v28  ;;  %v1975_v46 = vadd.f32 %v1956_v19, %v1836_v30  ;;  %v1696_v61 = vadd.f32 %v7518_v45, %v1557_v32  ;;  %v8867_v19 = vld [vmem:[#allocation30_spill] sm:$0xff]  ;;  %v1970_v45 = vpop.f32.mrf.mxu1  ;;  %v2127_v30 = vpop.permute.xlu0 %2126  ;;  %v8871_v32 = vmov 0.0  }
 0x1bd   : > { %v1823_v42 = vpop.f32.mrf.mxu0  ;;  %v8869_v5 = vld [vmem:[#allocation33_spill] sm:$0xff]  ;;  %6742 = vmatprep.mubr.msk.f32.mxu1 %vm7079_vm9, %v8871_v32 }
 0x1be   : > { %v1838_v35 = vadd.f32 %v1823_v42, %v1699_v29  ;;  %v1976_v10 = vadd.f32 %v1958_v2, %v1837_v31  ;;  %v1695_v42 = vadd.f32 %v8867_v19, %v1556_v48 }
 0x1bf   : > { %v1825_v26 = vpop.f32.mrf.mxu0  ;;  %v8868_v59 = vld [vmem:[#allocation34_spill] sm:$0xff] }
 0x1c0   : > { %v1839_v47 = vadd.f32 %v1825_v26, %v1700_v33  ;;  %v1977_v56 = vadd.f32 %v1962_v20, %v1838_v35  ;;  %v1835_v57 = vadd.f32 %v8868_v59, %v1696_v61  ;;  %v1834_v13 = vadd.f32 %v8869_v5, %v1695_v42  ;;  %v2263_v59 = vld [vmem:[%s7123_s3 + $0x8] sm:$0xff]  ;;  %v2269_v5 = vld [vmem:[%s7128_s8 + $0x18] sm:$0xff] }
 0x1c1   : > { %v1829_v51 = vpop.f32.mrf.mxu0 }
 0x1c2   : > { %v1840_v58 = vadd.f32 %v1829_v51, %v1701_v27  ;;  %v1978_v26 = vadd.f32 %v1964_v34, %v1839_v47  ;;  %v1974_v36 = vadd.f32 %v7532_v39, %v1835_v57  ;;  %v1973_v14 = vadd.f32 %v8870_v25, %v1834_v13  ;;  %v2264_v57 = vld [vmem:[%s7123_s3 + $0x10] sm:$0xff] }
 0x1c3   : > { %v1831_v1 = vpop.f32.mrf.mxu0 }
 0x1c4   : > { %v1841_v60 = vadd.f32 %v1831_v1, %v1702_v54  ;;  %v1979_v2 = vadd.f32 %v1968_v52, %v1840_v58  ;;  %v2262_v54 = vld [vmem:[%s7123_s3] sm:$0xff] }
 0x1c5   : > { %v2089_v55 = vpop.f32.mrf.mxu0 }
 0x1c6   : > { %v1980_v12 = vadd.f32 %v1970_v45, %v1841_v60  ;;  %v2112_v9 = vadd.f32 %v2089_v55, %v1973_v14 }
 0x1c7   : > { %v2091_v41 = vpop.f32.mrf.mxu0 }
 0x1c8   : > { %v2113_v38 = vadd.f32 %v2091_v41, %v1974_v36  ;;  %v7572_v29 = vadd.f32 %v2127_v30, %v2112_v9 }
 0x1c9   : > { %v2095_v49 = vpop.f32.mrf.mxu0 }
 0x1ca   : > { %v2114_v37 = vadd.f32 %v2095_v49, %v1975_v46  ;;  %v7566_v17 = vadd.f32 %v2127_v30, %v2113_v38 }
 0x1cb   : > { %v2097_v22 = vpop.f32.mrf.mxu0 }
 0x1cc   : > { %v2115_v0 = vadd.f32 %v2097_v22, %v1976_v10  ;;  %v7547_v62 = vadd.f32 %v2132_v50, %v2114_v37  ;;  %v2152_v18 = vadd.f32 %v7566_v17, %v7572_v29  ;;  %v2169_v43 = vmax.f32 %v7572_v29, %v7566_v17 }
 0x1cd   : > { %v2101_v11 = vpop.f32.mrf.mxu0 }
 0x1ce   : > { %v7549_v63 = vadd.f32 %v2132_v50, %v2115_v0  ;;  %v2116_v3 = vadd.f32 %v2101_v11, %v1977_v56  ;;  %v2186_v56 = vld [vmem:[%s7118_s29] sm:$0x3]  ;;  %v2267_v11 = vld [vmem:[%s7128_s8 + $0x8] sm:$0xff] }
 0x1cf   : > { %v2103_v4 = vpop.f32.mrf.mxu0 }
 0x1d0   : > { %v2117_v15 = vadd.f32 %v2103_v4, %v1978_v26  ;;  %v2155_v6 = vadd.f32 %v7549_v63, %v7547_v62  ;;  %v7555_v21 = vadd.f32 %v2137_v16, %v2116_v3  ;;  %v2172_v31 = vmax.f32 %v7547_v62, %v7549_v63  ;;  %v2265_v26 = vld [vmem:[%s7123_s3 + $0x18] sm:$0xff]  ;;  %v2266_v3 = vld [vmem:[%s7128_s8] sm:$0xff] }
 0x1d1   : > { %v2107_v24 = vpop.f32.mrf.mxu0 }
 0x1d2   : > { %v7557_v51 = vadd.f32 %v2137_v16, %v2117_v15  ;;  %v2118_v40 = vadd.f32 %v2107_v24, %v1979_v2  ;;  %2156 = vadd.xlane.f32.xlu1 %v2155_v6  ;;  %v2268_v15 = vld [vmem:[%s7128_s8 + $0x10] sm:$0xff] }
 0x1d3   : > { %v2109_v23 = vpop.f32.mrf.mxu0 }
 0x1d4   : > { %v2119_v20 = vadd.f32 %v2109_v23, %v1980_v12  ;;  %v2158_v1 = vadd.f32 %v7557_v51, %v7555_v21  ;;  %v7562_v28 = vadd.f32 %v2142_v8, %v2118_v40  ;;  %v2175_v16 = vmax.f32 %v7555_v21, %v7557_v51 }
 0x1d6   : > { %v7564_v39 = vadd.f32 %v2142_v8, %v2119_v20  ;;  %2159 = vadd.xlane.f32.xlu0 %v2158_v1 }
 0x1d8   : > { %v2161_v7 = vadd.f32 %v7564_v39, %v7562_v28  ;;  %v2178_v55 = vmax.f32 %v7562_v28, %v7564_v39 }
 0x1da   : > { %2176 = vmax.xlane.f32.xlu0 %v2175_v16  ;;  %2162 = vadd.xlane.f32.xlu1 %v2161_v7 }
 0x1de   : > { %2179 = vmax.xlane.f32.xlu0 %v2178_v55  ;;  %2153 = vadd.xlane.f32.xlu1 %v2152_v18 }
 0x1e2   : > { %2173 = vmax.xlane.f32.xlu0 %v2172_v31  ;;  %2170 = vmax.xlane.f32.xlu1 %v2169_v43  ;;  %v904_v43 = vld [vmem:[%s7098_s13 + $0x8] sm:$0xff] }
 0x1e3   : > { %2496 = vmatprep.mubr.f32.mxu0 %v904_v43 }
 0x25b   : > { %v2157_v33 = vpop.xlane.xlu1 %2156 }
 0x25c   : > { %v2166_v27 = vmul.f32 0.00390625, %v2157_v33  ;;  %v2510_v33 = vld [vmem:[%s7133_s14 + $0x18] sm:$0xff] }
 0x25f   : > { %v2160_v34 = vpop.xlane.xlu0 %2159 }
 0x260   : > { %v2167_v47 = vmul.f32 0.00390625, %v2160_v34  ;;  %v2509_v34 = vld [vmem:[%s7133_s14 + $0x10] sm:$0xff] }
 0x263   : > { %v2163_v41 = vpop.xlane.xlu1 %2162  ;;  %v2177_v44 = vpop.xlane.xlu0 %2176 }
 0x264   : > { %v2168_v46 = vmul.f32 0.00390625, %v2163_v41  ;;  %v2183_v10 = vadd.f32 %v2177_v44, %v2167_v47 }
 0x267   : > { %v2154_v35 = vpop.xlane.xlu1 %2153  ;;  %v2180_v48 = vpop.xlane.xlu0 %2179 }
 0x268   : > { %v2184_v49 = vadd.f32 %v2180_v48, %v2168_v46  ;;  %v2165_v61 = vmul.f32 0.00390625, %v2154_v35 }
 0x26a   : > { %6735 = vmatpush3.msra.mxu1 %v2184_v49 }
 0x26b   : > { %v2171_v37 = vpop.xlane.xlu1 %2170  ;;  %6736 = vmatprep.subr.mxu1 %v8871_v32  ;;  %v2174_v50 = vpop.xlane.xlu0 %2173 }
 0x26c   : > { %v2182_v52 = vadd.f32 %v2174_v50, %v2166_v27  ;;  %6737 = vmatpush3.msra.mxu1 %v2183_v10  ;;  %v2181_v22 = vadd.f32 %v2171_v37, %v2165_v61 }
 0x26d   : > { %6738 = vmatprep.subr.mxu1 %v8871_v32 }
 0x26e   : > { %6739 = vmatpush3.msra.mxu1 %v2182_v52 }
 0x26f   : > { %6740 = vmatprep.subr.mxu1 %v8871_v32 }
 0x270   : > { %6741 = vmatpush3.msra.mxu1 %v2181_v22  ;;  %v903_v22 = vld [vmem:[%s7098_s13] sm:$0xff] }
 0x271   : > { %6743 = vmatmul.mubr.msk.f32.vlgmr.msra.gmra.mxu1 %vm2187_vm10, %v2185_v53  ;;  %v905_v53 = vld [vmem:[%s7098_s13 + $0x10] sm:$0xff] }
 0x272   : > { %6747 = vmatprep.mubr.msk.f32.mxu1 %vm2270_vm11, %v2262_v54  ;;  %v2508_v54 = vld [vmem:[%s7133_s14 + $0x8] sm:$0xff] }
 0x331   : > { %v2257_v58 = vpop.f32.mrf.mxu1 }
 0x332   : > { %v2258_v0 = vadd.f32 %v2257_v58, %v2186_v56  ;;  %v2507_v56 = vld [vmem:[%s7133_s14] sm:$0xff]  ;;  %v2602_v58 = vld [vmem:[%s7143_s24 + $0x18] sm:$0xff] }
 0x333   : > { %v6744_v19 = vpop.f32.mrf.mxu1 }
 0x334   : > { %v2261_v42 = vmax.f32 %v2258_v0, 0.0 }
 0x336   : > { %6745 = vmatprep.subr.msk.mxu1 %vm2283_vm12, %v2261_v42 }
 0x337   : > { %6746 = vmatpush3.msk.msra.mxu1 %vm2283_vm12, %v2261_v42 }
 0x338   : > { %6748 = vmatmul.mubr.msk.f32.vlgmr.msra.gmra.mxu1 %vm2270_vm11, %v2263_v59  ;;  %6753 = vmatprep.subr.mxu1 %v2510_v33  ;;  %v2601_v59 = vld [vmem:[%s7143_s24 + $0x10] sm:$0xff] }
 0x339   : > { %6750 = vmatprep.mubr.msk.f32.mxu1 %vm2270_vm11, %v2264_v57  ;;  %6754 = vmatpush3.msra.mxu1 %v2510_v33 }
 0x33a   : > { %6755 = vmatprep.subr.mxu1 %v2509_v34 }
 0x33b   : > { %6756 = vmatpush3.msra.mxu1 %v2509_v34  ;;  %v2691_v34 = vld [vmem:[%s8872_s2 + $0x10] sm:$0xff] }
 0x33c   : > { %6751 = vmatmul.mubr.msk.f32.gmra.mxu1 %vm2270_vm11, %v2265_v26  ;;  %6757 = vmatprep.subr.mxu1 %v2508_v54  ;;  %v2600_v26 = vld [vmem:[%s7143_s24 + $0x8] sm:$0xff] }
 0x33d   : > { %6758 = vmatpush3.msra.mxu1 %v2508_v54 }
 0x33e   : > { %6759 = vmatprep.subr.mxu1 %v2507_v56 }
 0x33f   : > { %6760 = vmatpush3.msra.mxu1 %v2507_v56 }
 0x340   : > { %6764 = vmatprep.subr.mxu1 %v2602_v58 }
 0x3f8   : > { %v6749_v60 = vpop.f32.mrf.mxu1 }
 0x3f9   : > { %v2359_v45 = vadd.f32 %v6749_v60, %v2267_v11  ;;  %v2599_v11 = vld [vmem:[%s7143_s24] sm:$0xff] }
 0x3fa   : > { %v2353_v4 = vpop.f32.mrf.mxu1  ;;  %v2685_v60 = vld [vmem:[%s7153_s6] sm:$0xff] }
 0x3fb   : > { %v2354_v13 = vadd.f32 %v2353_v4, %v2266_v3  ;;  %v6409_v8 = vmul.f32 -1.442695, %v2359_v45  ;;  %v2686_v3 = vld [vmem:[%s7153_s6 + $0x8] sm:$0xff]  ;;  %v6412_v4 = vld [vmem:[%s7138_s19] ss:$0 sm:$0xff] }
 0x3fc   : > { %v6752_v2 = vpop.f32.mrf.mxu1 }
 0x3fd   : > { %v6408_v6 = vmul.f32 -1.442695, %v2354_v13  ;;  %v2369_v36 = vadd.f32 %v6752_v2, %v2269_v5  ;;  %v6415_v2 = vld [vmem:[%s7148_s30] ss:$0 sm:$0xff] }
 0x3fe   : > { %v2363_v24 = vpop.f32.mrf.mxu1 }
 0x3ff   : > { %v6411_v12 = vmul.f32 -1.442695, %v2369_v36  ;;  %v2364_v40 = vadd.f32 %v2363_v24, %v2268_v15  ;;  %6964 = vpow2.f32 %v6408_v6 }
 0x401   : > { %6966 = vpow2.f32 %v6411_v12  ;;  %v6410_v23 = vmul.f32 -1.442695, %v2364_v40  ;;  %v2687_v12 = vld [vmem:[%s7153_s6 + $0x10] sm:$0xff]  ;;  %v2688_v40 = vld [vmem:[%s7153_s6 + $0x18] sm:$0xff] }
 0x402   : > { %6968 = vpow2.f32 %v6409_v8 }
 0x403   : > { %6970 = vpow2.f32 %v6410_v23 }
 0x40c   : > { %v6965_v25 = vpop.eup %6964 }
 0x40d   : > { %v2384_v9 = vadd.f32 1.0, %v6965_v25 }
 0x40e   : > { %v6967_v14 = vpop.eup %6966 }
 0x40f   : > { %v6969_v38 = vpop.eup %6968  ;;  %v2387_v20 = vadd.f32 1.0, %v6967_v14 }
 0x410   : > { %v6971_v1 = vpop.eup %6970  ;;  %v2385_v16 = vadd.f32 1.0, %v6969_v38 }
 0x411   : > { %6972 = vrcp.f32 %v2387_v20  ;;  %v2386_v30 = vadd.f32 1.0, %v6971_v1  ;;  %v2690_v20 = vld [vmem:[%s8872_s2 + $0x8] sm:$0xff] }
 0x413   : > { %6974 = vrcp.f32 %v2386_v30 }
 0x414   : > { %6976 = vrcp.f32 %v2384_v9 }
 0x415   : > { %6978 = vrcp.f32 %v2385_v16 }
 0x41e   : > { %v6973_v7 = vpop.eup %6972 }
 0x41f   : > { %2413 = vperm.xlu0 %6962, %v6973_v7  }
 0x420   : > { %v6975_v55 = vpop.eup %6974 }
 0x421   : > { %2408 = vperm.xlu1 %6963, %v6975_v55   ;;  %v6977_v18 = vpop.eup %6976 }
 0x422   : > { %v6979_v31 = vpop.eup %6978 }
 0x423   : > { %2398 = vperm.xlu0 %6962, %v6977_v18  }
 0x425   : > { %2403 = vperm.xlu1 %6963, %v6979_v31  }
 0x49a   : > { %v2414_v41 = vpop.permute.xlu0 %2413 }
 0x49b   : > { %v7602_v44 = vmul.f32 %v2414_v41, %v7562_v28  ;;  %v7605_v46 = vmul.f32 %v2414_v41, %v7564_v39  ;;  %v2689_v41 = vld [vmem:[%s8872_s2] sm:$0xff] }
 0x49c   : > { %v2409_v35 = vpop.permute.xlu1 %2408 }
 0x49d   : > { %v2430_v48 = vmax.f32 %v7602_v44, 0.0  ;;  %v7609_v47 = vmul.f32 %v2409_v35, %v7557_v51  ;;  %v2431_v49 = vmax.f32 %v7605_v46, 0.0  ;;  %v7613_v27 = vmul.f32 %v2409_v35, %v7555_v21  ;;  %v2692_v35 = vld [vmem:[%s8872_s2 + $0x18] sm:$0xff] }
 0x49e   : > { %v2399_v10 = vpop.permute.xlu0 %2398 }
 0x49f   : > { %2456 = vmatprep.subr.mxu0 %v2431_v49  ;;  %v2429_v28 = vmax.f32 %v7609_v47, 0.0  ;;  %v2428_v21 = vmax.f32 %v7613_v27, 0.0  ;;  %v7630_v50 = vmul.f32 %v2399_v10, %v7566_v17 }
 0x4a0   : > { %2457 = vmatpush1.xpose.msra.mxu0 %v2430_v48  ;;  %v2404_v39 = vpop.permute.xlu1 %2403 }
 0x4a1   : > { %v7621_v37 = vmul.f32 %v2404_v39, %v7549_v63  ;;  %2458 = vmatprep.subr.mxu0 %v2429_v28  ;;  %v7627_v51 = vmul.f32 %v2404_v39, %v7547_v62  ;;  %v7638_v63 = vmul.f32 %v2399_v10, %v7572_v29  ;;  %v2425_v52 = vmax.f32 %v7630_v50, 0.0  ;;  %v906_v29 = vld [vmem:[%s7098_s13 + $0x18] sm:$0xff] }
 0x4a2   : > { %v3026_v10 = vld [vmem:[%s8873_s0 + $0x18] sm:$0xff] }
 0x4a3   : > { %v2427_v61 = vmax.f32 %v7621_v37, 0.0  ;;  %v2426_v62 = vmax.f32 %v7627_v51, 0.0  ;;  %v2424_v17 = vmax.f32 %v7638_v63, 0.0 }
 0x4a4   : > { %2459 = vmatpush1.xpose.msra.mxu0 %v2428_v21 }
 0x4a5   : > { %2460 = vmatprep.subr.mxu0 %v2427_v61 }
 0x4a8   : > { %2461 = vmatpush1.xpose.msra.mxu0 %v2426_v62 }
 0x4a9   : > { %2462 = vmatprep.subr.mxu0 %v2425_v52 }
 0x4ac   : > { %2463 = vmatpush1.xpose.msra.mxu0 %v2424_v17 }
 0x4af   : > { %2497 = vmatmul.mubr.f32.vlgmr.msra.gmra.mxu0 %v903_v22 }
 0x4b0   : > { %2501 = vmatprep.mubr.f32.mxu0 %v906_v29 }
 0x4b3   : > { %2502 = vmatmul.mubr.f32.gmra.mxu0 %v905_v53 }
 0x4b4   : > { %6779 = vmatprep.mubr.msk.f32.mxu0 %vm2187_vm10, %v2685_v60 }
 0x56f   : > { %v2498_v0 = vpop.f32.mrf.mxu0 }
 0x570   : > { %6761 = vmatprep.mubr.msk.f32.mxu1 %vm2187_vm10, %v2498_v0 }
 0x571   : > { %v2500_v19 = vpop.f32.mrf.mxu0 }
 0x573   : > { %v2503_v42 = vpop.f32.mrf.mxu0 }
 0x574   : > { %6762 = vmatmul.mubr.msk.f32.vlgmr.msra.gmra.mxu1 %vm2187_vm10, %v2503_v42  ;;  %6775 = vmatprep.subr.msk.mxu0 %vm2187_vm10, %v2503_v42 }
 0x575   : > { %6765 = vmatpush3.msra.mxu1 %v2602_v58  ;;  %v2505_v57 = vpop.f32.mrf.mxu0  ;;  %6772 = vmatprep.mubr.msk.f32.mxu1 %vm2187_vm10, %v2498_v0 }
 0x576   : > { %6766 = vmatprep.subr.mxu1 %v2601_v59  ;;  %6776 = vmatpush3.xpose.msk.msra.mxu0 %vm2187_vm10, %v2503_v42 }
 0x577   : > { %6767 = vmatpush3.msra.mxu1 %v2601_v59  ;;  %6777 = vmatprep.subr.msk.mxu0 %vm2187_vm10, %v2498_v0 }
 0x578   : > { %6768 = vmatprep.subr.mxu1 %v2600_v26 }
 0x579   : > { %6769 = vmatpush3.msra.mxu1 %v2600_v26 }
 0x57a   : > { %6770 = vmatprep.subr.mxu1 %v2599_v11  ;;  %6778 = vmatpush3.xpose.msk.msra.mxu0 %vm2187_vm10, %v2498_v0 }
 0x57b   : > { %6771 = vmatpush3.msra.mxu1 %v2599_v11 }
 0x57c   : > { %6773 = vmatmul.mubr.msk.f32.vlgmr.msra.gmra.mxu1 %vm2187_vm10, %v2503_v42 }
 0x57d   : > { %6780 = vmatmul.mubr.msk.f32.vlgmr.msra.gmra.mxu0 %vm2187_vm10, %v2686_v3 }
 0x57e   : > { %6782 = vmatprep.mubr.msk.f32.mxu0 %vm2187_vm10, %v2687_v12 }
 0x581   : > { %6783 = vmatmul.mubr.msk.f32.gmra.mxu0 %vm2187_vm10, %v2688_v40 }
 0x634   : > { %v6763_v45 = vpop.f32.mrf.mxu1 }
 0x635   : > { %v2596_v24 = vadd.f32 %v6763_v45, %v6412_v4 }
 0x636   : > { %v2590_v5 = vpop.f32.mrf.mxu1 }
 0x637   : > { %v2591_v13 = vadd.f32 %v6412_v4, %v2590_v5  ;;  %v3025_v5 = vld [vmem:[%s8873_s0 + $0x10] sm:$0xff] }
 0x639   : > { %6789 = vmatprep.mubr.msk.f32.mxu1 %vm2810_vm13, %v2591_v13  ;;  %v3024_v13 = vld [vmem:[%s8873_s0 + $0x8] sm:$0xff] }
 0x63c   : > { %v6774_v15 = vpop.f32.mrf.mxu1 }
 0x63d   : > { %v2682_v6 = vadd.f32 %v6774_v15, %v6415_v2  ;;  %v6781_v53 = vpop.f32.mrf.mxu0 }
 0x63e   : > { %v2676_v36 = vpop.f32.mrf.mxu1 }
 0x63f   : > { %v2677_v8 = vadd.f32 %v6415_v2, %v2676_v36  ;;  %6785 = vmatprep.subr.msk.mxu1 %vm2810_vm13, %v2682_v6  ;;  %v2791_v54 = vpop.f32.mrf.mxu0  ;;  %v3023_v2 = vld [vmem:[%s8873_s0] sm:$0xff] }
 0x640   : > { %6786 = vmatpush3.xpose.msk.msra.mxu1 %vm2810_vm13, %v2682_v6 }
 0x641   : > { %6787 = vmatprep.subr.msk.mxu1 %vm2810_vm13, %v2677_v8  ;;  %v6784_v59 = vpop.f32.mrf.mxu0 }
 0x643   : > { %v2801_v11 = vpop.f32.mrf.mxu0 }
 0x644   : > { %6788 = vmatpush3.xpose.msk.msra.mxu1 %vm2810_vm13, %v2677_v8 }
 0x645   : > { %3067 = vmatprep.subr.mxu1 %v3026_v10 }
 0x647   : > { %6790 = vmatmul.mubr.msk.f32.vlgmr.msra.gmra.mxu1 %vm2810_vm13, %v2596_v24 }
 0x648   : > { %3103 = vmatprep.mubr.f32.mxu1 %v8871_v32  ;;  %3068 = vmatpush1.msra.mxu1 %v3025_v5  ;;  %v4914_v5 = vld [vmem:[%s8874_s11 + $0x8] sm:$0xff] }
 0x649   : > { %3069 = vmatprep.subr.mxu1 %v3024_v13 }
 0x64a   : > { %3070 = vmatpush1.msra.mxu1 %v3023_v2 }
 0x707   : > { %v6791_v23 = vpop.f32.mrf.mxu1 }
 0x708   : > { %v2901_v25 = vsel %vm944_vm0, %v6791_v23, -inf }
 0x709   : > { %2902 = vmax.xlane.f32.xlu1 %v2901_v25  ;;  %v2889_v14 = vpop.f32.mrf.mxu1 }
 0x70a   : > { %v2898_v38 = vsel %vm944_vm0, %v2889_v14, -inf }
 0x70b   : > { %2899 = vmax.xlane.f32.xlu0 %v2898_v38 }
 0x71a   : > { %2700 = vperm.xlu1 %6963, %v2690_v20  }
 0x792   : > { %v2903_v1 = vpop.xlane.xlu1 %2902 }
 0x793   : > { %v2905_v9 = vsub.f32 %v6791_v23, %v2903_v1 }
 0x794   : > { %v2900_v30 = vpop.xlane.xlu0 %2899 }
 0x795   : > { %v2908_v16 = vmul.f32 1.442695, %v2905_v9  ;;  %v2904_v7 = vsub.f32 %v2889_v14, %v2900_v30 }
 0x796   : > { %v2701_v39 = vpop.permute.xlu1 %2700 }
 0x797   : > { %6980 = vpow2.f32 %v2908_v16  ;;  %v2906_v55 = vmul.f32 1.442695, %v2904_v7  ;;  %v2797_v60 = vadd.f32 %v6781_v53, %v2701_v39  ;;  %v8876_v16 = vld [vmem:[#allocation14_spill] sm:$0xff]  ;;  %v4920_v39 = vld [vmem:[%s8874_s11 + $0x38] sm:$0xff] }
 0x799   : > { %6982 = vpow2.f32 %v2906_v55 }
 0x7a4   : > { %v6981_v18 = vpop.eup %6980 }
 0x7a5   : > { %v2913_v31 = vsel %vm944_vm0, %v6981_v18, 0.0 }
 0x7a6   : > { %v6983_v43 = vpop.eup %6982  ;;  %2914 = vadd.xlane.f32.xlu0 %v2913_v31 }
 0x7a7   : > { %v2910_v33 = vsel %vm944_vm0, %v6983_v43, 0.0 }
 0x7a8   : > { %2911 = vadd.xlane.f32.xlu1 %v2910_v33 }
 0x7b9   : > { %2705 = vperm.xlu1 %6963, %v2691_v34   ;;  %v4919_v34 = vld [vmem:[%s8874_s11 + $0x30] sm:$0xff] }
 0x7bc   : > { %2695 = vperm.xlu0 %6962, %v2689_v41  }
 0x7c0   : > { %2710 = vperm.xlu0 %6962, %v2692_v35  }
 0x82f   : > { %v2915_v22 = vpop.xlane.xlu0 %2914 }
 0x830   : > { %6984 = vrcp.f32 %v2915_v22 }
 0x831   : > { %v2912_v29 = vpop.xlane.xlu1 %2911 }
 0x832   : > { %6986 = vrcp.f32 %v2912_v29 }
 0x835   : > { %v2706_v26 = vpop.permute.xlu1 %2705 }
 0x836   : > { %v2802_v3 = vadd.f32 %v2801_v11, %v2706_v26  ;;  %v4916_v11 = vld [vmem:[%s8874_s11 + $0x18] sm:$0xff] }
 0x837   : > { %v2696_v56 = vpop.permute.xlu0 %2695 }
 0x838   : > { %v2792_v58 = vadd.f32 %v2791_v54, %v2696_v56  ;;  %v4917_v54 = vld [vmem:[%s8874_s11 + $0x20] sm:$0xff] }
 0x83a   : > { %6796 = vmatprep.mubr.msk.f32.mxu0 %vm944_vm0, %v2792_v58 }
 0x83b   : > { %v2711_v45 = vpop.permute.xlu0 %2710 }
 0x83c   : > { %v2807_v4 = vadd.f32 %v6784_v59, %v2711_v45  ;;  %v4913_v45 = vld [vmem:[%s8874_s11] sm:$0xff] }
 0x83d   : > { %v6985_v0 = vpop.eup %6984 }
 0x83e   : > { %v2919_v19 = vmul.f32 %v6985_v0, %v6981_v18 }
 0x83f   : > { %v6987_v42 = vpop.eup %6986 }
 0x840   : > { %6792 = vmatprep.subr.msk.mxu0 %vm944_vm0, %v2919_v19  ;;  %v2918_v57 = vmul.f32 %v6987_v42, %v6983_v43 }
 0x841   : > { %6793 = vmatpush3.xpose.msk.msra.mxu0 %vm944_vm0, %v2919_v19  ;;  %v4918_v19 = vld [vmem:[%s8874_s11 + $0x28] sm:$0xff] }
 0x842   : > { %6794 = vmatprep.subr.msk.mxu0 %vm944_vm0, %v2918_v57 }
 0x845   : > { %6795 = vmatpush3.xpose.msk.msra.mxu0 %vm944_vm0, %v2918_v57  ;;  %v4915_v57 = vld [vmem:[%s8874_s11 + $0x10] sm:$0xff] }
 0x848   : > { %6797 = vmatmul.mubr.msk.f32.vlgmr.msra.gmra.mxu0 %vm944_vm0, %v2797_v60 }
 0x849   : > { %6799 = vmatprep.mubr.msk.f32.mxu0 %vm944_vm0, %v2802_v3 }
 0x84c   : > { %6800 = vmatmul.mubr.msk.f32.gmra.mxu0 %vm944_vm0, %v2807_v4 }
 0x84d   : > { %3329 = vmatprep.mubr.f32.mxu0 %v8871_v32 }
 0x908   : > { %v6798_v15 = vpop.f32.mrf.mxu0 }
 0x90a   : > { %v3004_v6 = vpop.f32.mrf.mxu0 }
 0x90b   : > { %6434 = vmatmul.mubr.msk.f32.vlgmr.msra.gmra.mxu1 %vm944_vm0, %v3004_v6 }
 0x90c   : > { %3109 = vmatprep.mubr.f32.mxu1 %v8871_v32  ;;  %v6801_v36 = vpop.f32.mrf.mxu0 }
 0x90e   : > { %v3014_v8 = vpop.f32.mrf.mxu0 }
 0x90f   : > { %6435 = vmatmul.mubr.msk.f32.gmra.mxu1 %vm944_vm0, %v6798_v15 }
 0x910   : > { %3115 = vmatprep.mubr.f32.mxu1 %v8871_v32 }
 0x913   : > { %6436 = vmatmul.mubr.msk.f32.gmra.mxu1 %vm944_vm0, %v3014_v8 }
 0x914   : > { %3121 = vmatprep.mubr.f32.mxu1 %v8871_v32 }
 0x917   : > { %6437 = vmatmul.mubr.msk.f32.gmra.mxu1 %vm944_vm0, %v6801_v36 }
 0x918   : > { %3466 = vmatprep.mubr.f32.mxu1 %v8871_v32 }
 0x9cb   : > { %v3105_v24 = vpop.f32.mrf.mxu1 }
 0x9cc   : > { %v7748_v46 = vadd.f32 %v3105_v24, %v2424_v17 }
 0x9cd   : > { %v3107_v12 = vpop.f32.mrf.mxu1 }
 0x9cf   : > { %v3111_v40 = vpop.f32.mrf.mxu1 }
 0x9d0   : > { %v7736_v47 = vadd.f32 %v3111_v40, %v2426_v62  ;;  %v8875_v62 = vld [vmem:[#allocation15_spill] sm:$0xff] }
 0x9d1   : > { %v3113_v23 = vpop.f32.mrf.mxu1 }
 0x9d2   : > { %v7742_v44 = vadd.f32 %v3113_v23, %v2427_v61 }
 0x9d3   : > { %v3117_v25 = vpop.f32.mrf.mxu1 }
 0x9d4   : > { %v7714_v14 = vadd.f32 %v3117_v25, %v2428_v21 }
 0x9d5   : > { %v3119_v38 = vpop.f32.mrf.mxu1 }
 0x9d6   : > { %v7718_v20 = vadd.f32 %v3119_v38, %v2429_v28  ;;  %3204 = vrot.lane.b32.xlu0 %v7714_v14, %s7070_s15 }
 0x9d7   : > { %v3123_v1 = vpop.f32.mrf.mxu1 }
 0x9d8   : > { %v7724_v9 = vadd.f32 %v3123_v1, %v2430_v48  ;;  %3192 = vrot.lane.b32.xlu1 %v7718_v20, %s7070_s15  ;;  %v7754_v48 = vadd.f32 %v3107_v12, %v2425_v52 }
 0x9d9   : > { %v3125_v30 = vpop.f32.mrf.mxu1 }
 0x9da   : > { %v7730_v27 = vadd.f32 %v3125_v30, %v2431_v49  ;;  %3206 = vrot.lane.b32.xlu0 %v7724_v9, %s7070_s15  ;;  %v8878_v30 = vld [vmem:[#allocation17_spill] sm:$0xff] }
 0x9dc   : > { %3194 = vrot.lane.b32.xlu1 %v7730_v27, %s7070_s15 }
 0x9de   : > { %3202 = vrot.lane.b32.xlu0 %v7736_v47, %s7070_s15 }
 0x9e0   : > { %3190 = vrot.lane.b32.xlu1 %v7742_v44, %s7070_s15 }
 0x9e2   : > { %3200 = vrot.lane.b32.xlu0 %v7748_v46, %s7070_s15 }
 0x9e4   : > { %3188 = vrot.lane.b32.xlu1 %v7754_v48, %s7070_s15  ;;  %s8877_s15 = sld [smem:[#allocation4_spill]] }
 0x9e6   : > { %3154 = vrot.lane.b32.xlu0 %v7724_v9, %s7071_s16 }
 0x9e8   : > { %3136 = vrot.lane.b32.xlu1 %v7718_v20, %s7071_s16 }
 0x9ea   : > { %3152 = vrot.lane.b32.xlu0 %v7714_v14, %s7071_s16  ;;  %v6438_v42 = vld [vmem:[%s8877_s15 + $0x40] sm:$0xff]  ;;  %v6439_v60 = vld [vmem:[%s8877_s15 + $0x48] sm:$0xff]  ;;  %v6440_v13 = vld [vmem:[%s8877_s15 + $0x50] sm:$0xff] }
 0x9eb   : > { %v6441_v6 = vld [vmem:[%s8877_s15 + $0x58] sm:$0xff]  ;;  %v6442_v24 = vld [vmem:[%s8877_s15 + $0x60] sm:$0xff] }
 0x9ec   : > { %3134 = vrot.lane.b32.xlu1 %v7742_v44, %s7071_s16 }
 0x9ee   : > { %3533 = vrot.lane.b32.xlu0 %v7724_v9, %s7072_s18 }
 0x9f0   : > { %3519 = vrot.lane.b32.xlu1 %v7718_v20, %s7072_s18 }
 0x9f2   : > { %3150 = vrot.lane.b32.xlu0 %v7736_v47, %s7071_s16 }
 0x9f4   : > { %3132 = vrot.lane.b32.xlu1 %v7754_v48, %s7071_s16 }
 0x9f6   : > { %3531 = vrot.lane.b32.xlu0 %v7714_v14, %s7072_s18 }
 0x9f8   : > { %3138 = vrot.lane.b32.xlu1 %v7730_v27, %s7071_s16 }
 0x9fa   : > { %3148 = vrot.lane.b32.xlu0 %v7748_v46, %s7071_s16  ;;  %s8937_s16 = sld [smem:[#allocation6_spill]] }
 0x9fc   : > { %3521 = vrot.lane.b32.xlu1 %v7730_v27, %s7072_s18 }
 0x9fe   : > { %3529 = vrot.lane.b32.xlu0 %v7736_v47, %s7072_s18 }
 0xa00   : > { %3517 = vrot.lane.b32.xlu1 %v7742_v44, %s7072_s18 }
 0xa02   : > { %3527 = vrot.lane.b32.xlu0 %v7748_v46, %s7072_s18 }
 0xa04   : > { %3515 = vrot.lane.b32.xlu1 %v7754_v48, %s7072_s18  ;;  %s8938_s18 = sld [smem:[#allocation8_spill]] }
 0xa06   : > { %3739 = vrot.lane.b32.xlu0 %v7724_v9, %s7073_s22 }
 0xa08   : > { %3725 = vrot.lane.b32.xlu1 %v7718_v20, %s7073_s22 }
 0xa0a   : > { %3737 = vrot.lane.b32.xlu0 %v7714_v14, %s7073_s22 }
 0xa0c   : > { %3727 = vrot.lane.b32.xlu1 %v7730_v27, %s7073_s22 }
 0xa0e   : > { %3735 = vrot.lane.b32.xlu0 %v7736_v47, %s7073_s22 }
 0xa10   : > { %3723 = vrot.lane.b32.xlu1 %v7742_v44, %s7073_s22 }
 0xa12   : > { %3733 = vrot.lane.b32.xlu0 %v7748_v46, %s7073_s22 }
 0xa14   : > { %3721 = vrot.lane.b32.xlu1 %v7754_v48, %s7073_s22  ;;  %s8939_s22 = sld [smem:[#allocation7_spill]] }
 0xa16   : > { %4099 = vrot.lane.b32.xlu0 %v7718_v20, %s7074_s23 }
 0xa18   : > { %4101 = vrot.lane.b32.xlu1 %v7724_v9, %s7074_s23 }
 0xa1a   : > { %4095 = vrot.lane.b32.xlu0 %v7742_v44, %s7074_s23 }
 0xa1c   : > { %4097 = vrot.lane.b32.xlu1 %v7714_v14, %s7074_s23 }
 0xa1e   : > { %4305 = vrot.lane.b32.xlu0 %v7718_v20, %s7075_s26 }
 0xa20   : > { %4307 = vrot.lane.b32.xlu1 %v7724_v9, %s7075_s26 }
 0xa22   : > { %4091 = vrot.lane.b32.xlu0 %v7754_v48, %s7074_s23 }
 0xa24   : > { %4093 = vrot.lane.b32.xlu1 %v7736_v47, %s7074_s23 }
 0xa26   : > { %4103 = vrot.lane.b32.xlu0 %v7730_v27, %s7074_s23 }
 0xa28   : > { %4303 = vrot.lane.b32.xlu1 %v7714_v14, %s7075_s26 }
 0xa2a   : > { %4309 = vrot.lane.b32.xlu0 %v7730_v27, %s7075_s26 }
 0xa2c   : > { %4089 = vrot.lane.b32.xlu1 %v7748_v46, %s7074_s23  ;;  %s8940_s23 = sld [smem:[#allocation9_spill]] }
 0xa2e   : > { %4301 = vrot.lane.b32.xlu0 %v7742_v44, %s7075_s26 }
 0xa30   : > { %4299 = vrot.lane.b32.xlu1 %v7736_v47, %s7075_s26 }
 0xa32   : > { %4297 = vrot.lane.b32.xlu0 %v7754_v48, %s7075_s26 }
 0xa34   : > { %4295 = vrot.lane.b32.xlu1 %v7748_v46, %s7075_s26  ;;  %s8941_s26 = sld [smem:[#allocation10_spill]] }
 0xa36   : > { %4511 = vrot.lane.b32.xlu0 %v7718_v20, %s7076_s28 }
 0xa38   : > { %4513 = vrot.lane.b32.xlu1 %v7724_v9, %s7076_s28 }
 0xa3a   : > { %4507 = vrot.lane.b32.xlu0 %v7742_v44, %s7076_s28 }
 0xa3c   : > { %4509 = vrot.lane.b32.xlu1 %v7714_v14, %s7076_s28 }
 0xa3e   : > { %4717 = vrot.lane.b32.xlu0 %v7718_v20, %s7077_s1 }
 0xa40   : > { %4719 = vrot.lane.b32.xlu1 %v7724_v9, %s7077_s1 }
 0xa42   : > { %4503 = vrot.lane.b32.xlu0 %v7754_v48, %s7076_s28 }
 0xa44   : > { %4505 = vrot.lane.b32.xlu1 %v7736_v47, %s7076_s28 }
 0xa46   : > { %4515 = vrot.lane.b32.xlu0 %v7730_v27, %s7076_s28 }
 0xa48   : > { %4715 = vrot.lane.b32.xlu1 %v7714_v14, %s7077_s1  ;;  %v3205_v49 = vpop.permute.xlu0 %3204 }
 0xa4a   : > { %v3193_v28 = vpop.permute.xlu1 %3192  ;;  %4721 = vrot.lane.b32.xlu0 %v7730_v27, %s7077_s1 }
 0xa4b   : > { %v3210_v51 = vsel %vm944_vm0, %v3205_v49, %v3193_v28  ;;  %v3222_v63 = vsel %vm944_vm0, %v3193_v28, %v3205_v49  ;;  %v8879_v28 = vld [vmem:[#allocation16_spill] sm:$0xff] }
 0xa4c   : > { %4501 = vrot.lane.b32.xlu1 %v7748_v46, %s7076_s28  ;;  %v3207_v37 = vpop.permute.xlu0 %3206  ;;  %v3229_v18 = vmul.f32 %v3210_v51, %v8876_v16  ;;  %v3228_v31 = vmul.f32 %v3222_v63, %v8875_v62  ;;  %v6443_v51 = vld [vmem:[%s8877_s15 + $0x68] sm:$0xff]  ;;  %s8942_s28 = sld [smem:[#allocation12_spill]] }
 0xa4e   : > { %v3195_v21 = vpop.permute.xlu1 %3194  ;;  %4713 = vrot.lane.b32.xlu0 %v7742_v44, %s7077_s1 }
 0xa4f   : > { %v3211_v50 = vsel %vm944_vm0, %v3207_v37, %v3195_v21  ;;  %v3223_v61 = vsel %vm944_vm0, %v3195_v21, %v3207_v37 }
 0xa50   : > { %v3230_v52 = vmul.f32 %v3223_v61, %v8875_v62  ;;  %4711 = vrot.lane.b32.xlu1 %v7736_v47, %s7077_s1  ;;  %v3203_v17 = vpop.permute.xlu0 %3202  ;;  %v3231_v7 = vmul.f32 %v3211_v50, %v8876_v16 }
 0xa52   : > { %v3191_v55 = vpop.permute.xlu1 %3190  ;;  %4709 = vrot.lane.b32.xlu0 %v7754_v48, %s7077_s1  ;;  %3289 = vmatprep.subr.mxu0 %v3231_v7 }
 0xa53   : > { %v3209_v43 = vsel %vm944_vm0, %v3203_v17, %v3191_v55  ;;  %v3221_v33 = vsel %vm944_vm0, %v3191_v55, %v3203_v17  ;;  %3290 = vmatpush1.msra.mxu0 %v3230_v52 }
 0xa54   : > { %v3226_v41 = vmul.f32 %v3221_v33, %v8875_v62  ;;  %4707 = vrot.lane.b32.xlu1 %v7748_v46, %s7077_s1  ;;  %3291 = vmatprep.subr.mxu0 %v3229_v18  ;;  %v3201_v35 = vpop.permute.xlu0 %3200  ;;  %v3227_v10 = vmul.f32 %v3209_v43, %v8876_v16  ;;  %v8881_v33 = vld [vmem:[#allocation18_spill] sm:$0xff]  ;;  %s8943_s1 = sld [smem:[#allocation11_spill]] }
 0xa55   : > { %3292 = vmatpush1.msra.mxu0 %v3228_v31  ;;  %v8880_v31 = vld [vmem:[#allocation23_spill] sm:$0xff] }
 0xa56   : > { %v3189_v22 = vpop.permute.xlu1 %3188  ;;  %4953 = vperm.xlu0 %6962, %v4919_v34   ;;  %3293 = vmatprep.subr.mxu0 %v3227_v10 }
 0xa57   : > { %v3208_v29 = vsel %vm944_vm0, %v3201_v35, %v3189_v22  ;;  %v3220_v53 = vsel %vm944_vm0, %v3189_v22, %v3201_v35  ;;  %3294 = vmatpush1.msra.mxu0 %v3226_v41 }
 0xa58   : > { %v3224_v56 = vmul.f32 %v3220_v53, %v8875_v62  ;;  %4958 = vperm.xlu1 %6963, %v4920_v39   ;;  %v3155_v58 = vpop.permute.xlu0 %3154  ;;  %v3225_v0 = vmul.f32 %v3208_v29, %v8876_v16  ;;  %v6444_v39 = vld [vmem:[%s8877_s15 + $0x70] sm:$0xff] }
 0xa5a   : > { %v3137_v59 = vpop.permute.xlu1 %3136  ;;  %4943 = vperm.xlu0 %6962, %v4917_v54   ;;  %3295 = vmatprep.subr.mxu0 %v3225_v0  ;;  %v3180_v0 = vld [vmem:[%s8877_s15] sm:$0xff] }
 0xa5b   : > { %3296 = vmatpush1.msra.mxu0 %v3224_v56 }
 0xa5c   : > { %4948 = vperm.xlu1 %6963, %v4918_v19   ;;  %6446 = vmatmul.mubr.msk.f32.vlgmr.msra.gmra.mxu0 %vm2187_vm10, %v6438_v42  ;;  %v3153_v26 = vpop.permute.xlu0 %3152 }
 0xa5d   : > { %3335 = vmatprep.mubr.f32.mxu0 %v8871_v32  ;;  %v3158_v12 = vsel %vm916_vm1, %v3153_v26, %v3137_v59  ;;  %v3170_v23 = vsel %vm916_vm1, %v3137_v59, %v3153_v26 }
 0xa5e   : > { %v3135_v3 = vpop.permute.xlu1 %3134  ;;  %4933 = vperm.xlu0 %6962, %v4915_v57   ;;  %v3176_v50 = vmul.f32 %v3170_v23, %v8878_v30  ;;  %v3177_v61 = vmul.f32 %v3158_v12, %v8879_v28 }
 0xa60   : > { %4938 = vperm.xlu1 %6963, %v4916_v11   ;;  %6447 = vmatmul.mubr.msk.f32.gmra.mxu0 %vm2187_vm10, %v6439_v60  ;;  %v3534_v4 = vpop.permute.xlu0 %3533  ;;  %v6445_v11 = vld [vmem:[%s8877_s15 + $0x78] sm:$0xff] }
 0xa61   : > { %3341 = vmatprep.mubr.f32.mxu0 %v8871_v32 }
 0xa62   : > { %v3520_v2 = vpop.permute.xlu1 %3519  ;;  %4923 = vperm.xlu0 %6962, %v4913_v45   ;;  %v3181_v45 = vld [vmem:[%s8877_s15 + $0x8] sm:$0xff] }
 0xa64   : > { %4928 = vperm.xlu1 %6963, %v4914_v5   ;;  %6448 = vmatmul.mubr.msk.f32.gmra.mxu0 %vm2187_vm10, %v6440_v13  ;;  %v3151_v15 = vpop.permute.xlu0 %3150 }
 0xa65   : > { %3347 = vmatprep.mubr.f32.mxu0 %v8871_v32  ;;  %v3157_v25 = vsel %vm916_vm1, %v3151_v15, %v3135_v3  ;;  %v3169_v63 = vsel %vm916_vm1, %v3135_v3, %v3151_v15  ;;  %v6462_v15 = vld [vmem:[%s8877_s15 + $0x80] sm:$0xff] }
 0xa66   : > { %v3133_v36 = vpop.permute.xlu1 %3132  ;;  %v3175_v62 = vmul.f32 %v3157_v25, %v8879_v28  ;;  %v3174_v35 = vmul.f32 %v3169_v63, %v8878_v30  ;;  %v8882_v25 = vld [vmem:[#allocation19_spill] sm:$0xff] }
 0xa68   : > { %6449 = vmatmul.mubr.msk.f32.gmra.mxu0 %vm2187_vm10, %v6441_v6  ;;  %v3532_v8 = vpop.permute.xlu0 %3531  ;;  %v3182_v6 = vld [vmem:[%s8877_s15 + $0x10] sm:$0xff] }
 0xa69   : > { %3353 = vmatprep.mubr.f32.mxu0 %v8871_v32  ;;  %v3537_v17 = vsel %vm1177_vm2, %v3532_v8, %v3520_v2  ;;  %v3549_v10 = vsel %vm1177_vm2, %v3520_v2, %v3532_v8 }
 0xa6a   : > { %v3139_v40 = vpop.permute.xlu1 %3138  ;;  %v3556_v22 = vmul.f32 %v3537_v17, %v8881_v33  ;;  %v3555_v19 = vmul.f32 %v3549_v10, %v8880_v31 }
 0xa6b   : > { %v3159_v38 = vsel %vm916_vm1, %v3155_v58, %v3139_v40  ;;  %v3171_v1 = vsel %vm916_vm1, %v3139_v40, %v3155_v58 }
 0xa6c   : > { %v3178_v49 = vmul.f32 %v3171_v1, %v8878_v30  ;;  %v3179_v37 = vmul.f32 %v3159_v38, %v8879_v28  ;;  %6450 = vmatmul.mubr.msk.f32.gmra.mxu0 %vm2187_vm10, %v6442_v24  ;;  %v3149_v21 = vpop.permute.xlu0 %3148  ;;  %v6463_v24 = vld [vmem:[%s8877_s15 + $0x88] sm:$0xff]  ;;  %v8883_v1 = vld [vmem:[#allocation20_spill] sm:$0xff] }
 0xa6d   : > { %3359 = vmatprep.mubr.f32.mxu0 %v8871_v32  ;;  %v3156_v16 = vsel %vm916_vm1, %v3149_v21, %v3133_v36  ;;  %v3168_v18 = vsel %vm916_vm1, %v3133_v36, %v3149_v21  ;;  %v6464_v21 = vld [vmem:[%s8877_s15 + $0x90] sm:$0xff] }
 0xa6e   : > { %v3522_v52 = vpop.permute.xlu1 %3521  ;;  %3426 = vmatprep.subr.mxu1 %v3179_v37  ;;  %v3173_v29 = vmul.f32 %v3156_v16, %v8879_v28  ;;  %v3172_v54 = vmul.f32 %v3168_v18, %v8878_v30  ;;  %v6466_v18 = vld [vmem:[%s8877_s15 + $0xa0] sm:$0xff] }
 0xa6f   : > { %v3538_v7 = vsel %vm1177_vm2, %v3534_v4, %v3522_v52  ;;  %v3550_v55 = vsel %vm1177_vm2, %v3522_v52, %v3534_v4  ;;  %3427 = vmatpush1.msra.mxu1 %v3178_v49  ;;  %v6465_v52 = vld [vmem:[%s8877_s15 + $0x98] sm:$0xff] }
 0xa70   : > { %v3557_v43 = vmul.f32 %v3550_v55, %v8880_v31  ;;  %v3558_v34 = vmul.f32 %v3538_v7, %v8881_v33  ;;  %6451 = vmatmul.mubr.msk.f32.gmra.mxu0 %vm2187_vm10, %v6443_v51  ;;  %3428 = vmatprep.subr.mxu1 %v3177_v61  ;;  %v3530_v41 = vpop.permute.xlu0 %3529  ;;  %v3184_v61 = vld [vmem:[%s8877_s15 + $0x20] sm:$0xff]  ;;  %v3185_v7 = vld [vmem:[%s8877_s15 + $0x28] sm:$0xff] }
 0xa71   : > { %3429 = vmatpush1.msra.mxu1 %v3176_v50  ;;  %3365 = vmatprep.mubr.f32.mxu0 %v8871_v32 }
 0xa72   : > { %v3518_v53 = vpop.permute.xlu1 %3517  ;;  %3430 = vmatprep.subr.mxu1 %v3175_v62  ;;  %3616 = vmatprep.subr.mxu0 %v3558_v34  ;;  %v6467_v34 = vld [vmem:[%s8877_s15 + $0xa8] sm:$0xff] }
 0xa73   : > { %v3536_v56 = vsel %vm1177_vm2, %v3530_v41, %v3518_v53  ;;  %v3548_v58 = vsel %vm1177_vm2, %v3518_v53, %v3530_v41  ;;  %3431 = vmatpush1.msra.mxu1 %v3174_v35  ;;  %3617 = vmatpush1.msra.mxu0 %v3557_v43  ;;  %v3186_v43 = vld [vmem:[%s8877_s15 + $0x30] sm:$0xff]  ;;  %v3187_v35 = vld [vmem:[%s8877_s15 + $0x38] sm:$0xff] }
 0xa74   : > { %v3553_v42 = vmul.f32 %v3548_v58, %v8880_v31  ;;  %v3554_v59 = vmul.f32 %v3536_v56, %v8881_v33  ;;  %6452 = vmatmul.mubr.msk.f32.gmra.mxu0 %vm2187_vm10, %v6444_v39  ;;  %3432 = vmatprep.subr.mxu1 %v3173_v29  ;;  %v3528_v57 = vpop.permute.xlu0 %3527  ;;  %v6468_v39 = vld [vmem:[%s8877_s15 + $0xb0] sm:$0xff]  ;;  %v6478_v29 = vld [vmem:[%s8877_s15 + $0xc0] sm:$0xff] }
 0xa75   : > { %3618 = vmatprep.subr.mxu0 %v3556_v22  ;;  %3433 = vmatpush1.msra.mxu1 %v3172_v54  ;;  %v6469_v54 = vld [vmem:[%s8877_s15 + $0xb8] sm:$0xff] }
 0xa76   : > { %3619 = vmatpush1.msra.mxu0 %v3555_v19  ;;  %v3516_v26 = vpop.permute.xlu1 %3515  ;;  %6454 = vmatmul.mubr.msk.f32.vlgmr.msra.gmra.mxu1 %vm2187_vm10, %v3180_v0 }
 0xa77   : > { %v3535_v60 = vsel %vm1177_vm2, %v3528_v57, %v3516_v26  ;;  %v3547_v3 = vsel %vm1177_vm2, %v3516_v26, %v3528_v57  ;;  %3620 = vmatprep.subr.mxu0 %v3554_v59  ;;  %3371 = vmatprep.mubr.f32.mxu0 %v8871_v32  ;;  %v6479_v59 = vld [vmem:[%s8877_s15 + $0xc8] sm:$0xff]  ;;  %v8884_v57 = vld [vmem:[#allocation21_spill] sm:$0xff] }
 0xa78   : > { %v3551_v4 = vmul.f32 %v3547_v3, %v8880_v31  ;;  %v3552_v5 = vmul.f32 %v3535_v60, %v8881_v33  ;;  %3621 = vmatpush1.msra.mxu0 %v3553_v42  ;;  %v3740_v13 = vpop.permute.xlu0 %3739  ;;  %3472 = vmatprep.mubr.f32.mxu1 %v8871_v32 }
 0xa79   : > { %6453 = vmatmul.mubr.msk.f32.gmra.mxu0 %vm2187_vm10, %v6445_v11  ;;  %v8885_v11 = vld [vmem:[#allocation22_spill] sm:$0xff] }
 0xa7a   : > { %v3726_v2 = vpop.permute.xlu1 %3725  ;;  %6455 = vmatmul.mubr.msk.f32.gmra.mxu1 %vm2187_vm10, %v3181_v45  ;;  %3622 = vmatprep.subr.mxu0 %v3552_v5 }
 0xa7b   : > { %3623 = vmatpush1.msra.mxu0 %v3551_v4  ;;  %3656 = vmatprep.mubr.f32.mxu0 %v8871_v32  ;;  %v6494_v4 = vld [vmem:[%s8877_s15 + $0x100] sm:$0xff] }
 0xa7c   : > { %3984 = vmatprep.subr.mxu0 %v7730_v27  ;;  %v3738_v36 = vpop.permute.xlu0 %3737  ;;  %3478 = vmatprep.mubr.f32.mxu1 %v8871_v32  ;;  %v3183_v27 = vld [vmem:[%s8877_s15 + $0x18] sm:$0xff] }
 0xa7d   : > { %6470 = vmatmul.mubr.msk.f32.vlgmr.msra.gmra.mxu0 %vm2187_vm10, %v6462_v15  ;;  %v3743_v23 = vsel %vm1316_vm4, %v3738_v36, %v3726_v2 }
 0xa7e   : > { %3985 = vmatpush1.msra.mxu0 %v7724_v9  ;;  %v3728_v8 = vpop.permute.xlu1 %3727  ;;  %6456 = vmatmul.mubr.msk.f32.gmra.mxu1 %vm2187_vm10, %v3182_v6  ;;  %v3762_v28 = vmul.f32 %v3743_v23, %v8883_v1 }
 0xa7f   : > { %v3744_v12 = vsel %vm1316_vm4, %v3740_v13, %v3728_v8  ;;  %v3756_v40 = vsel %vm1316_vm4, %v3728_v8, %v3740_v13  ;;  %3986 = vmatprep.subr.mxu0 %v7718_v20  ;;  %3662 = vmatprep.mubr.f32.mxu0 %v8871_v32  ;;  %v3755_v20 = vsel %vm1316_vm4, %v3726_v2, %v3738_v36  ;;  %v6480_v8 = vld [vmem:[%s8877_s15 + $0xd0] sm:$0xff] }
 0xa80   : > { %v3763_v38 = vmul.f32 %v3756_v40, %v8882_v25  ;;  %v3764_v9 = vmul.f32 %v3744_v12, %v8883_v1  ;;  %3987 = vmatpush1.msra.mxu0 %v7714_v14  ;;  %v3736_v30 = vpop.permute.xlu0 %3735  ;;  %3484 = vmatprep.mubr.f32.mxu1 %v8871_v32  ;;  %v3761_v51 = vmul.f32 %v3755_v20, %v8882_v25  ;;  %v8886_v40 = vld [vmem:[#allocation25_spill] sm:$0xff] }
 0xa81   : > { %6471 = vmatmul.mubr.msk.f32.gmra.mxu0 %vm2187_vm10, %v6463_v24  ;;  %3988 = vmatprep.subr.mxu0 %v7742_v44 }
 0xa82   : > { %3989 = vmatpush1.msra.mxu0 %v7736_v47  ;;  %v3724_v49 = vpop.permute.xlu1 %3723  ;;  %6457 = vmatmul.mubr.msk.f32.gmra.mxu1 %vm2187_vm10, %v3183_v27 }
 0xa83   : > { %v3742_v37 = vsel %vm1316_vm4, %v3736_v30, %v3724_v49  ;;  %v3754_v14 = vsel %vm1316_vm4, %v3724_v49, %v3736_v30  ;;  %3822 = vmatprep.subr.mxu1 %v3764_v9  ;;  %3990 = vmatprep.subr.mxu0 %v7754_v48  ;;  %v6495_v30 = vld [vmem:[%s8877_s15 + $0x108] sm:$0xff] }
 0xa84   : > { %v3760_v44 = vmul.f32 %v3742_v37, %v8883_v1  ;;  %3668 = vmatprep.mubr.f32.mxu0 %v8871_v32  ;;  %3823 = vmatpush1.msra.mxu1 %v3763_v38  ;;  %v3734_v47 = vpop.permute.xlu0 %3733  ;;  %v3759_v50 = vmul.f32 %v3754_v14, %v8882_v25 }
 0xa85   : > { %3991 = vmatpush1.msra.mxu0 %v7748_v46  ;;  %3824 = vmatprep.subr.mxu1 %v3762_v28 }
 0xa86   : > { %6472 = vmatmul.mubr.msk.f32.gmra.mxu0 %vm2187_vm10, %v6464_v21  ;;  %3490 = vmatprep.mubr.f32.mxu1 %v8871_v32  ;;  %v3722_v48 = vpop.permute.xlu1 %3721  ;;  %v6481_v21 = vld [vmem:[%s8877_s15 + $0xd8] sm:$0xff] }
 0xa87   : > { %3825 = vmatpush1.msra.mxu1 %v3761_v51  ;;  %v3741_v63 = vsel %vm1316_vm4, %v3734_v47, %v3722_v48  ;;  %v3753_v62 = vsel %vm1316_vm4, %v3722_v48, %v3734_v47  ;;  %3674 = vmatprep.mubr.f32.mxu0 %v8871_v32 }
 0xa88   : > { %v3757_v17 = vmul.f32 %v3753_v62, %v8882_v25  ;;  %v3758_v46 = vmul.f32 %v3741_v63, %v8883_v1  ;;  %6458 = vmatmul.mubr.msk.f32.gmra.mxu1 %vm2187_vm10, %v3184_v61  ;;  %3826 = vmatprep.subr.mxu1 %v3760_v44  ;;  %v4100_v16 = vpop.permute.xlu0 %4099  ;;  %v8887_v25 = vld [vmem:[#allocation27_spill] sm:$0xff]  ;;  %v6496_v63 = vld [vmem:[%s8877_s15 + $0x110] sm:$0xff] }
 0xa89   : > { %3827 = vmatpush1.msra.mxu1 %v3759_v50  ;;  %3496 = vmatprep.mubr.f32.mxu1 %v8871_v32 }
 0xa8a   : > { %6473 = vmatmul.mubr.msk.f32.gmra.mxu0 %vm2187_vm10, %v6465_v52  ;;  %v4102_v55 = vpop.permute.xlu1 %4101  ;;  %3828 = vmatprep.subr.mxu1 %v3758_v46 }
 0xa8b   : > { %3680 = vmatprep.mubr.f32.mxu0 %v8871_v32  ;;  %3829 = vmatpush1.msra.mxu1 %v3757_v17  ;;  %v6482_v17 = vld [vmem:[%s8877_s15 + $0xe0] sm:$0xff] }
 0xa8c   : > { %6459 = vmatmul.mubr.msk.f32.gmra.mxu1 %vm2187_vm10, %v3185_v7  ;;  %v4096_v31 = vpop.permute.xlu0 %4095 }
 0xa8d   : > { %3502 = vmatprep.mubr.f32.mxu1 %v8871_v32 }
 0xa8e   : > { %6474 = vmatmul.mubr.msk.f32.gmra.mxu0 %vm2187_vm10, %v6466_v18  ;;  %v4098_v33 = vpop.permute.xlu1 %4097  ;;  %v6497_v18 = vld [vmem:[%s8877_s15 + $0x118] sm:$0xff] }
 0xa8f   : > { %3686 = vmatprep.mubr.f32.mxu0 %v8871_v32  ;;  %v4107_v58 = vsel %vm1568_vm5, %v4098_v33, %v4100_v16  ;;  %v4123_v0 = vsel %vm1568_vm5, %v4100_v16, %v4098_v33  ;;  %v6483_v33 = vld [vmem:[%s8877_s15 + $0xe8] sm:$0xff] }
 0xa90   : > { %6460 = vmatmul.mubr.msk.f32.gmra.mxu1 %vm2187_vm10, %v3186_v43  ;;  %v4306_v41 = vpop.permute.xlu0 %4305  ;;  %v4129_v5 = vmul.f32 %v4107_v58, %v8884_v57  ;;  %v4130_v13 = vmul.f32 %v4123_v0, %v8885_v11  ;;  %v6510_v0 = vld [vmem:[%s8877_s15 + $0x140] sm:$0xff] }
 0xa91   : > { %3508 = vmatprep.mubr.f32.mxu1 %v8871_v32 }
 0xa92   : > { %6475 = vmatmul.mubr.msk.f32.gmra.mxu0 %vm2187_vm10, %v6467_v34  ;;  %v4308_v10 = vpop.permute.xlu1 %4307 }
 0xa93   : > { %3692 = vmatprep.mubr.f32.mxu0 %v8871_v32 }
 0xa94   : > { %6461 = vmatmul.mubr.msk.f32.gmra.mxu1 %vm2187_vm10, %v3187_v35  ;;  %v4092_v22 = vpop.permute.xlu0 %4091 }
 0xa95   : > { %3862 = vmatprep.mubr.f32.mxu1 %v8871_v32 }
 0xa96   : > { %6476 = vmatmul.mubr.msk.f32.gmra.mxu0 %vm2187_vm10, %v6468_v39  ;;  %v4094_v53 = vpop.permute.xlu1 %4093 }
 0xa97   : > { %3698 = vmatprep.mubr.f32.mxu0 %v8871_v32  ;;  %v4122_v45 = vsel %vm1568_vm5, %v4096_v31, %v4094_v53  ;;  %v4106_v15 = vsel %vm1568_vm5, %v4094_v53, %v4096_v31  ;;  %v6485_v53 = vld [vmem:[%s8877_s15 + $0xf8] sm:$0xff] }
 0xa98   : > { %6486 = vmatmul.mubr.msk.f32.vlgmr.msra.gmra.mxu1 %vm2187_vm10, %v6478_v29  ;;  %v4104_v56 = vpop.permute.xlu0 %4103  ;;  %v4128_v24 = vmul.f32 %v4122_v45, %v8885_v11  ;;  %v4127_v20 = vmul.f32 %v4106_v15, %v8884_v57 }
 0xa99   : > { %v4108_v19 = vsel %vm1568_vm5, %v4102_v55, %v4104_v56  ;;  %v4124_v42 = vsel %vm1568_vm5, %v4104_v56, %v4102_v55  ;;  %3868 = vmatprep.mubr.f32.mxu1 %v8871_v32  ;;  %v6500_v56 = vld [vmem:[%s8877_s15 + $0x130] sm:$0xff] }
 0xa9a   : > { %6477 = vmatmul.mubr.msk.f32.gmra.mxu0 %vm2187_vm10, %v6469_v54  ;;  %v4131_v26 = vmul.f32 %v4108_v19, %v8884_v57  ;;  %v4132_v60 = vmul.f32 %v4124_v42, %v8885_v11  ;;  %v4304_v3 = vpop.permute.xlu1 %4303  ;;  %v6501_v42 = vld [vmem:[%s8877_s15 + $0x138] sm:$0xff] }
 0xa9b   : > { %4024 = vmatprep.mubr.f32.mxu0 %v8871_v32  ;;  %v4329_v12 = vsel %vm1707_vm7, %v4306_v41, %v4304_v3  ;;  %v4313_v37 = vsel %vm1707_vm7, %v4304_v3, %v4306_v41  ;;  %v6498_v41 = vld [vmem:[%s8877_s15 + $0x120] sm:$0xff] }
 0xa9c   : > { %6487 = vmatmul.mubr.msk.f32.gmra.mxu1 %vm2187_vm10, %v6479_v59  ;;  %4190 = vmatprep.subr.mxu1 %v4132_v60  ;;  %v4310_v2 = vpop.permute.xlu0 %4309  ;;  %v4336_v44 = vmul.f32 %v4329_v12, %v8886_v40  ;;  %v4335_v61 = vmul.f32 %v4313_v37, %v8887_v25  ;;  %v6511_v60 = vld [vmem:[%s8877_s15 + $0x148] sm:$0xff]  ;;  %v8888_v3 = vld [vmem:[#allocation26_spill] sm:$0xff] }
 0xa9d   : > { %v4314_v6 = vsel %vm1707_vm7, %v4308_v10, %v4310_v2  ;;  %v4330_v36 = vsel %vm1707_vm7, %v4310_v2, %v4308_v10  ;;  %3874 = vmatprep.mubr.f32.mxu1 %v8871_v32  ;;  %4191 = vmatpush1.msra.mxu1 %v4131_v26  ;;  %v6484_v10 = vld [vmem:[%s8877_s15 + $0xf0] sm:$0xff] }
 0xa9e   : > { %6502 = vmatmul.mubr.msk.f32.vlgmr.msra.gmra.mxu0 %vm2187_vm10, %v6494_v4  ;;  %v4338_v27 = vmul.f32 %v4330_v36, %v8886_v40  ;;  %v4090_v23 = vpop.permute.xlu1 %4089  ;;  %4192 = vmatprep.subr.mxu1 %v4130_v13  ;;  %v4337_v38 = vmul.f32 %v4314_v6, %v8887_v25  ;;  %v8889_v4 = vld [vmem:[#allocation24_spill] sm:$0xff]  ;;  %v6526_v6 = vld [vmem:[%s8877_s15 + $0x180] sm:$0xff] }
 0xa9f   : > { %v4105_v1 = vsel %vm1568_vm5, %v4090_v23, %v4092_v22  ;;  %v4121_v9 = vsel %vm1568_vm5, %v4092_v22, %v4090_v23  ;;  %4030 = vmatprep.mubr.f32.mxu0 %v8871_v32  ;;  %4193 = vmatpush1.msra.mxu1 %v4129_v5  ;;  %v6499_v22 = vld [vmem:[%s8877_s15 + $0x128] sm:$0xff]  ;;  %v8890_v23 = vld [vmem:[#allocation28_spill] sm:$0xff] }
 0xaa0   : > { %v4126_v49 = vmul.f32 %v4121_v9, %v8885_v11  ;;  %6488 = vmatmul.mubr.msk.f32.gmra.mxu1 %vm2187_vm10, %v6480_v8  ;;  %4194 = vmatprep.subr.mxu1 %v4128_v24  ;;  %v4302_v28 = vpop.permute.xlu0 %4301  ;;  %v4125_v14 = vmul.f32 %v4105_v1, %v8884_v57 }
 0xaa1   : > { %4396 = vmatprep.subr.mxu0 %v4338_v27  ;;  %3880 = vmatprep.mubr.f32.mxu1 %v8871_v32 }
 0xaa2   : > { %6503 = vmatmul.mubr.msk.f32.gmra.mxu0 %vm2187_vm10, %v6495_v30  ;;  %4195 = vmatpush1.msra.mxu1 %v4127_v20  ;;  %v4300_v47 = vpop.permute.xlu1 %4299 }
 0xaa3   : > { %4397 = vmatpush1.msra.mxu0 %v4337_v38  ;;  %v4312_v51 = vsel %vm1707_vm7, %v4300_v47, %v4302_v28  ;;  %v4328_v50 = vsel %vm1707_vm7, %v4302_v28, %v4300_v47  ;;  %4196 = vmatprep.subr.mxu1 %v4126_v49  ;;  %v8891_v28 = vld [vmem:[#allocation29_spill] sm:$0xff] }
 0xaa4   : > { %v4334_v48 = vmul.f32 %v4328_v50, %v8886_v40  ;;  %6489 = vmatmul.mubr.msk.f32.gmra.mxu1 %vm2187_vm10, %v6481_v21  ;;  %4398 = vmatprep.subr.mxu0 %v4336_v44  ;;  %v4298_v62 = vpop.permute.xlu0 %4297  ;;  %v4333_v52 = vmul.f32 %v4312_v51, %v8887_v25  ;;  %v6513_v51 = vld [vmem:[%s8877_s15 + $0x158] sm:$0xff] }
 0xaa5   : > { %4036 = vmatprep.mubr.f32.mxu0 %v8871_v32  ;;  %4197 = vmatpush1.msra.mxu1 %v4125_v14  ;;  %v6527_v14 = vld [vmem:[%s8877_s15 + $0x188] sm:$0xff] }
 0xaa6   : > { %4399 = vmatpush1.msra.mxu0 %v4335_v61  ;;  %3886 = vmatprep.mubr.f32.mxu1 %v8871_v32  ;;  %v4296_v46 = vpop.permute.xlu1 %4295 }
 0xaa7   : > { %6504 = vmatmul.mubr.msk.f32.gmra.mxu0 %vm2187_vm10, %v6496_v63  ;;  %v4311_v16 = vsel %vm1707_vm7, %v4296_v46, %v4298_v62  ;;  %v4327_v7 = vsel %vm1707_vm7, %v4298_v62, %v4296_v46  ;;  %4400 = vmatprep.subr.mxu0 %v4334_v48 }
 0xaa8   : > { %v4332_v55 = vmul.f32 %v4327_v7, %v8886_v40  ;;  %6490 = vmatmul.mubr.msk.f32.gmra.mxu1 %vm2187_vm10, %v6482_v17  ;;  %4042 = vmatprep.mubr.f32.mxu0 %v8871_v32  ;;  %v4512_v31 = vpop.permute.xlu0 %4511  ;;  %v4331_v43 = vmul.f32 %v4311_v16, %v8887_v25  ;;  %v6512_v40 = vld [vmem:[%s8877_s15 + $0x150] sm:$0xff]  ;;  %v6514_v7 = vld [vmem:[%s8877_s15 + $0x160] sm:$0xff] }
 0xaa9   : > { %4401 = vmatpush1.msra.mxu0 %v4333_v52  ;;  %3892 = vmatprep.mubr.f32.mxu1 %v8871_v32  ;;  %v6528_v16 = vld [vmem:[%s8877_s15 + $0x190] sm:$0xff] }
 0xaaa   : > { %v4514_v34 = vpop.permute.xlu1 %4513  ;;  %4402 = vmatprep.subr.mxu0 %v4332_v55 }
 0xaab   : > { %6505 = vmatmul.mubr.msk.f32.gmra.mxu0 %vm2187_vm10, %v6497_v18 }
 0xaac   : > { %6491 = vmatmul.mubr.msk.f32.gmra.mxu1 %vm2187_vm10, %v6483_v33  ;;  %4048 = vmatprep.mubr.f32.mxu0 %v8871_v32  ;;  %v4508_v35 = vpop.permute.xlu0 %4507 }
 0xaad   : > { %4403 = vmatpush1.msra.mxu0 %v4331_v43  ;;  %3898 = vmatprep.mubr.f32.mxu1 %v8871_v32 }
 0xaae   : > { %v4510_v39 = vpop.permute.xlu1 %4509 }
 0xaaf   : > { %6506 = vmatmul.mubr.msk.f32.gmra.mxu0 %vm2187_vm10, %v6498_v41  ;;  %v4535_v57 = vsel %vm1846_vm6, %v4512_v31, %v4510_v39  ;;  %v4519_v2 = vsel %vm1846_vm6, %v4510_v39, %v4512_v31  ;;  %v6530_v39 = vld [vmem:[%s8877_s15 + $0x1a0] sm:$0xff] }
 0xab0   : > { %6492 = vmatmul.mubr.msk.f32.gmra.mxu1 %vm2187_vm10, %v6484_v10  ;;  %4054 = vmatprep.mubr.f32.mxu0 %v8871_v32  ;;  %v4718_v29 = vpop.permute.xlu0 %4717  ;;  %v4542_v15 = vmul.f32 %v4535_v57, %v8889_v4  ;;  %v4541_v1 = vmul.f32 %v4519_v2, %v8888_v3  ;;  %v6515_v10 = vld [vmem:[%s8877_s15 + $0x168] sm:$0xff]  ;;  %v6545_v57 = vld [vmem:[%s8877_s15 + $0x1d8] sm:$0xff]  ;;  %v6564_v2 = vld [vmem:[%s8877_s15 + $0x230] sm:$0xff] }
 0xab1   : > { %3904 = vmatprep.mubr.f32.mxu1 %v8871_v32 }
 0xab2   : > { %v4720_v54 = vpop.permute.xlu1 %4719 }
 0xab3   : > { %6507 = vmatmul.mubr.msk.f32.gmra.mxu0 %vm2187_vm10, %v6499_v22  ;;  %v6516_v22 = vld [vmem:[%s8877_s15 + $0x170] sm:$0xff] }
 0xab4   : > { %6493 = vmatmul.mubr.msk.f32.gmra.mxu1 %vm2187_vm10, %v6485_v53  ;;  %4060 = vmatprep.mubr.f32.mxu0 %v8871_v32  ;;  %v4504_v58 = vpop.permute.xlu0 %4503  ;;  %v6517_v53 = vld [vmem:[%s8877_s15 + $0x178] sm:$0xff] }
 0xab5   : > { %4230 = vmatprep.mubr.f32.mxu1 %v8871_v32 }
 0xab6   : > { %v4506_v19 = vpop.permute.xlu1 %4505 }
 0xab7   : > { %6508 = vmatmul.mubr.msk.f32.gmra.mxu0 %vm2187_vm10, %v6500_v56  ;;  %v4534_v8 = vsel %vm1846_vm6, %v4508_v35, %v4506_v19  ;;  %v4518_v27 = vsel %vm1846_vm6, %v4506_v19, %v4508_v35  ;;  %v6529_v35 = vld [vmem:[%s8877_s15 + $0x198] sm:$0xff]  ;;  %v6542_v56 = vld [vmem:[%s8877_s15 + $0x1c0] sm:$0xff] }
 0xab8   : > { %6518 = vmatmul.mubr.msk.f32.vlgmr.msra.gmra.mxu1 %vm2187_vm10, %v6510_v0  ;;  %4066 = vmatprep.mubr.f32.mxu0 %v8871_v32  ;;  %v4516_v59 = vpop.permute.xlu0 %4515  ;;  %v4540_v20 = vmul.f32 %v4534_v8, %v8889_v4  ;;  %v4539_v44 = vmul.f32 %v4518_v27, %v8888_v3  ;;  %v6543_v0 = vld [vmem:[%s8877_s15 + $0x1c8] sm:$0xff]  ;;  %v6558_v19 = vld [vmem:[%s8877_s15 + $0x200] sm:$0xff] }
 0xab9   : > { %v4520_v26 = vsel %vm1846_vm6, %v4514_v34, %v4516_v59  ;;  %v4536_v11 = vsel %vm1846_vm6, %v4516_v59, %v4514_v34  ;;  %4236 = vmatprep.mubr.f32.mxu1 %v8871_v32  ;;  %v6559_v59 = vld [vmem:[%s8877_s15 + $0x208] sm:$0xff] }
 0xaba   : > { %v4543_v45 = vmul.f32 %v4520_v26, %v8888_v3  ;;  %v4544_v5 = vmul.f32 %v4536_v11, %v8889_v4  ;;  %v4716_v13 = vpop.permute.xlu1 %4715  ;;  %v6560_v26 = vld [vmem:[%s8877_s15 + $0x210] sm:$0xff]  ;;  %v6546_v11 = vld [vmem:[%s8877_s15 + $0x1e0] sm:$0xff] }
 0xabb   : > { %6509 = vmatmul.mubr.msk.f32.gmra.mxu0 %vm2187_vm10, %v6501_v42  ;;  %v4741_v49 = vsel %vm1985_vm8, %v4718_v29, %v4716_v13  ;;  %v4725_v50 = vsel %vm1985_vm8, %v4716_v13, %v4718_v29  ;;  %v6531_v29 = vld [vmem:[%s8877_s15 + $0x1a8] sm:$0xff]  ;;  %v6544_v42 = vld [vmem:[%s8877_s15 + $0x1d0] sm:$0xff]  ;;  %v6549_v13 = vld [vmem:[%s8877_s15 + $0x1f8] sm:$0xff] }
 0xabc   : > { %6519 = vmatmul.mubr.msk.f32.gmra.mxu1 %vm2187_vm10, %v6511_v60  ;;  %4436 = vmatprep.mubr.f32.mxu0 %v8871_v32  ;;  %v4722_v36 = vpop.permute.xlu0 %4721  ;;  %v4748_v63 = vmul.f32 %v4741_v49, %v8890_v23  ;;  %v4747_v17 = vmul.f32 %v4725_v50, %v8891_v28  ;;  %v6561_v60 = vld [vmem:[%s8877_s15 + $0x218] sm:$0xff] }
 0xabd   : > { %4602 = vmatprep.subr.mxu1 %v4544_v5  ;;  %v4726_v24 = vsel %vm1985_vm8, %v4720_v54, %v4722_v36  ;;  %v4742_v12 = vsel %vm1985_vm8, %v4722_v36, %v4720_v54  ;;  %4242 = vmatprep.mubr.f32.mxu1 %v8871_v32  ;;  %v6532_v54 = vld [vmem:[%s8877_s15 + $0x1b0] sm:$0xff]  ;;  %v6563_v5 = vld [vmem:[%s8877_s15 + $0x228] sm:$0xff] }
 0xabe   : > { %v4750_v25 = vmul.f32 %v4742_v12, %v8890_v23  ;;  %4603 = vmatpush1.msra.mxu1 %v4543_v45  ;;  %v4502_v38 = vpop.permute.xlu1 %4501  ;;  %v4749_v37 = vmul.f32 %v4726_v24, %v8891_v28  ;;  %v6562_v45 = vld [vmem:[%s8877_s15 + $0x220] sm:$0xff] }
 0xabf   : > { %6534 = vmatmul.mubr.msk.f32.vlgmr.msra.gmra.mxu0 %vm2187_vm10, %v6526_v6  ;;  %v4517_v9 = vsel %vm1846_vm6, %v4502_v38, %v4504_v58  ;;  %v4533_v30 = vsel %vm1846_vm6, %v4504_v58, %v4502_v38  ;;  %4604 = vmatprep.subr.mxu1 %v4542_v15  ;;  %v6533_v58 = vld [vmem:[%s8877_s15 + $0x1b8] sm:$0xff]  ;;  %v7028_v6 = vld [vmem:[%s7098_s13 + $0x8] sm:$0xff] }
 0xac0   : > { %6520 = vmatmul.mubr.msk.f32.gmra.mxu1 %vm2187_vm10, %v6512_v40  ;;  %4442 = vmatprep.mubr.f32.mxu0 %v8871_v32  ;;  %v4714_v21 = vpop.permute.xlu0 %4713  ;;  %v4538_v47 = vmul.f32 %v4533_v30, %v8889_v4  ;;  %v4537_v61 = vmul.f32 %v4517_v9, %v8888_v3  ;;  %v6547_v3 = vld [vmem:[%s8877_s15 + $0x1e8] sm:$0xff]  ;;  %v6548_v4 = vld [vmem:[%s8877_s15 + $0x1f0] sm:$0xff]  ;;  %v6565_v15 = vld [vmem:[%s8877_s15 + $0x238] sm:$0xff] }
 0xac1   : > { %4605 = vmatpush1.msra.mxu1 %v4541_v1  ;;  %4808 = vmatprep.subr.mxu0 %v4750_v25 }
 0xac2   : > { %4606 = vmatprep.subr.mxu1 %v4540_v20  ;;  %4248 = vmatprep.mubr.f32.mxu1 %v8871_v32  ;;  %v4712_v48 = vpop.permute.xlu1 %4711 }
 0xac3   : > { %6535 = vmatmul.mubr.msk.f32.gmra.mxu0 %vm2187_vm10, %v6527_v14  ;;  %4607 = vmatpush1.msra.mxu1 %v4539_v44  ;;  %v4724_v62 = vsel %vm1985_vm8, %v4712_v48, %v4714_v21  ;;  %v4740_v52 = vsel %vm1985_vm8, %v4714_v21, %v4712_v48 }
 0xac4   : > { %4809 = vmatpush1.msra.mxu0 %v4749_v37  ;;  %6521 = vmatmul.mubr.msk.f32.gmra.mxu1 %vm2187_vm10, %v6513_v51  ;;  %v4746_v46 = vmul.f32 %v4740_v52, %v8890_v23  ;;  %v4745_v55 = vmul.f32 %v4724_v62, %v8891_v28  ;;  %v4710_v18 = vpop.permute.xlu0 %4709 }
 0xac5   : > { %4608 = vmatprep.subr.mxu1 %v4538_v47  ;;  %4810 = vmatprep.subr.mxu0 %v4748_v63 }
 0xac6   : > { %4448 = vmatprep.mubr.f32.mxu0 %v8871_v32  ;;  %4609 = vmatpush1.msra.mxu1 %v4537_v61  ;;  %v4708_v31 = vpop.permute.xlu1 %4707 }
 0xac7   : > { %4811 = vmatpush1.msra.mxu0 %v4747_v17  ;;  %4254 = vmatprep.mubr.f32.mxu1 %v8871_v32  ;;  %v4723_v43 = vsel %vm1985_vm8, %v4708_v31, %v4710_v18  ;;  %v4739_v33 = vsel %vm1985_vm8, %v4710_v18, %v4708_v31 }
 0xac8   : > { %6536 = vmatmul.mubr.msk.f32.gmra.mxu0 %vm2187_vm10, %v6528_v16  ;;  %v4744_v34 = vmul.f32 %v4739_v33, %v8890_v23  ;;  %6522 = vmatmul.mubr.msk.f32.gmra.mxu1 %vm2187_vm10, %v6514_v7  ;;  %v4743_v41 = vmul.f32 %v4723_v43, %v8891_v28 }
 0xac9   : > { %4812 = vmatprep.subr.mxu0 %v4746_v46  ;;  %4454 = vmatprep.mubr.f32.mxu0 %v8871_v32 }
 0xaca   : > { %4813 = vmatpush1.msra.mxu0 %v4745_v55  ;;  %4260 = vmatprep.mubr.f32.mxu1 %v8871_v32 }
 0xacb   : > { %4814 = vmatprep.subr.mxu0 %v4744_v34  ;;  %6802 = vmatprep.subr.mxu1 %v8871_v32 }
 0xacc   : > { %6537 = vmatmul.mubr.msk.f32.gmra.mxu0 %vm2187_vm10, %v6529_v35  ;;  %6523 = vmatmul.mubr.msk.f32.gmra.mxu1 %vm2187_vm10, %v6515_v10 }
 0xacd   : > { %4460 = vmatprep.mubr.f32.mxu0 %v8871_v32  ;;  %4815 = vmatpush1.msra.mxu0 %v4743_v41 }
 0xace   : > { %4266 = vmatprep.mubr.f32.mxu1 %v8871_v32 }
 0xad0   : > { %6538 = vmatmul.mubr.msk.f32.gmra.mxu0 %vm2187_vm10, %v6530_v39  ;;  %6524 = vmatmul.mubr.msk.f32.gmra.mxu1 %vm2187_vm10, %v6516_v22 }
 0xad1   : > { %4466 = vmatprep.mubr.f32.mxu0 %v8871_v32  ;;  %4272 = vmatprep.mubr.f32.mxu1 %v8871_v32 }
 0xad4   : > { %6539 = vmatmul.mubr.msk.f32.gmra.mxu0 %vm2187_vm10, %v6531_v29  ;;  %6525 = vmatmul.mubr.msk.f32.gmra.mxu1 %vm2187_vm10, %v6517_v53 }
 0xad5   : > { %4472 = vmatprep.mubr.f32.mxu0 %v8871_v32  ;;  %4642 = vmatprep.mubr.f32.mxu1 %v8871_v32 }
 0xad8   : > { %6540 = vmatmul.mubr.msk.f32.gmra.mxu0 %vm2187_vm10, %v6532_v54  ;;  %6550 = vmatmul.mubr.msk.f32.vlgmr.msra.gmra.mxu1 %vm2187_vm10, %v6542_v56 }
 0xad9   : > { %4478 = vmatprep.mubr.f32.mxu0 %v8871_v32  ;;  %4648 = vmatprep.mubr.f32.mxu1 %v8871_v32 }
 0xadc   : > { %6541 = vmatmul.mubr.msk.f32.gmra.mxu0 %vm2187_vm10, %v6533_v58  ;;  %6551 = vmatmul.mubr.msk.f32.gmra.mxu1 %vm2187_vm10, %v6543_v0 }
 0xadd   : > { %4848 = vmatprep.mubr.f32.mxu0 %v8871_v32  ;;  %4654 = vmatprep.mubr.f32.mxu1 %v8871_v32 }
 0xae0   : > { %6566 = vmatmul.mubr.msk.f32.vlgmr.msra.gmra.mxu0 %vm2187_vm10, %v6558_v19  ;;  %6552 = vmatmul.mubr.msk.f32.gmra.mxu1 %vm2187_vm10, %v6544_v42 }
 0xae1   : > { %4854 = vmatprep.mubr.f32.mxu0 %v8871_v32  ;;  %4660 = vmatprep.mubr.f32.mxu1 %v8871_v32 }
 0xae4   : > { %6567 = vmatmul.mubr.msk.f32.gmra.mxu0 %vm2187_vm10, %v6559_v59  ;;  %6553 = vmatmul.mubr.msk.f32.gmra.mxu1 %vm2187_vm10, %v6545_v57 }
 0xae5   : > { %4860 = vmatprep.mubr.f32.mxu0 %v8871_v32  ;;  %4666 = vmatprep.mubr.f32.mxu1 %v8871_v32 }
 0xae8   : > { %6568 = vmatmul.mubr.msk.f32.gmra.mxu0 %vm2187_vm10, %v6560_v26  ;;  %6554 = vmatmul.mubr.msk.f32.gmra.mxu1 %vm2187_vm10, %v6546_v11 }
 0xae9   : > { %4866 = vmatprep.mubr.f32.mxu0 %v8871_v32  ;;  %4672 = vmatprep.mubr.f32.mxu1 %v8871_v32 }
 0xaec   : > { %6569 = vmatmul.mubr.msk.f32.gmra.mxu0 %vm2187_vm10, %v6561_v60  ;;  %6555 = vmatmul.mubr.msk.f32.gmra.mxu1 %vm2187_vm10, %v6547_v3 }
 0xaed   : > { %4872 = vmatprep.mubr.f32.mxu0 %v8871_v32  ;;  %4678 = vmatprep.mubr.f32.mxu1 %v8871_v32 }
 0xaf0   : > { %6570 = vmatmul.mubr.msk.f32.gmra.mxu0 %vm2187_vm10, %v6562_v45  ;;  %6556 = vmatmul.mubr.msk.f32.gmra.mxu1 %vm2187_vm10, %v6548_v4 }
 0xaf1   : > { %4878 = vmatprep.mubr.f32.mxu0 %v8871_v32  ;;  %4684 = vmatprep.mubr.f32.mxu1 %v8871_v32 }
 0xaf4   : > { %6571 = vmatmul.mubr.msk.f32.gmra.mxu0 %vm2187_vm10, %v6563_v5  ;;  %6557 = vmatmul.mubr.msk.f32.gmra.mxu1 %vm2187_vm10, %v6549_v13 }
 0xaf5   : > { %4884 = vmatprep.mubr.f32.mxu0 %v8871_v32  ;;  %6818 = vmatprep.mubr.msk.f32.mxu1 %vm7079_vm9, %v8871_v32 }
 0xaf8   : > { %6572 = vmatmul.mubr.msk.f32.gmra.mxu0 %vm2187_vm10, %v6564_v2 }
 0xaf9   : > { %4890 = vmatprep.mubr.f32.mxu0 %v8871_v32 }
 0xafc   : > { %6573 = vmatmul.mubr.msk.f32.gmra.mxu0 %vm2187_vm10, %v6565_v15 }
 0xafd   : > { %5451 = vmatprep.mubr.f32.mxu0 %v7028_v6 }
 0xb1c   : > { %v3331_v36 = vpop.f32.mrf.mxu0 }
 0xb1e   : > { %v3333_v8 = vpop.f32.mrf.mxu0 }
 0xb20   : > { %v3337_v24 = vpop.f32.mrf.mxu0 }
 0xb22   : > { %v3339_v12 = vpop.f32.mrf.mxu0 }
 0xb24   : > { %v3343_v40 = vpop.f32.mrf.mxu0 }
 0xb26   : > { %v3345_v27 = vpop.f32.mrf.mxu0 }
 0xb28   : > { %v3349_v23 = vpop.f32.mrf.mxu0 }
 0xb2a   : > { %v3351_v25 = vpop.f32.mrf.mxu0 }
 0xb2c   : > { %v3355_v38 = vpop.f32.mrf.mxu0 }
 0xb2e   : > { %v3357_v1 = vpop.f32.mrf.mxu0 }
 0xb30   : > { %v3361_v9 = vpop.f32.mrf.mxu0 }
 0xb32   : > { %v3363_v30 = vpop.f32.mrf.mxu0 }
 0xb34   : > { %v3367_v20 = vpop.f32.mrf.mxu0 }
 0xb36   : > { %v3369_v49 = vpop.f32.mrf.mxu0  ;;  %v3468_v28 = vpop.f32.mrf.mxu1 }
 0xb37   : > { %v3469_v37 = vadd.f32 %v3468_v28, %v3331_v36 }
 0xb38   : > { %v3470_v14 = vpop.f32.mrf.mxu1 }
 0xb39   : > { %v3373_v21 = vpop.f32.mrf.mxu0  ;;  %v3471_v44 = vadd.f32 %v3470_v14, %v3333_v8 }
 0xb3a   : > { %v3474_v47 = vpop.f32.mrf.mxu1 }
 0xb3b   : > { %v3375_v51 = vpop.f32.mrf.mxu0  ;;  %v3475_v50 = vadd.f32 %v3474_v47, %v3337_v24 }
 0xb3c   : > { %v3476_v61 = vpop.f32.mrf.mxu1 }
 0xb3d   : > { %v3477_v48 = vadd.f32 %v3476_v61, %v3339_v12  ;;  %v3658_v63 = vpop.f32.mrf.mxu0 }
 0xb3e   : > { %v3705_v62 = vadd.f32 %v3658_v63, %v3469_v37  ;;  %v3480_v52 = vpop.f32.mrf.mxu1 }
 0xb3f   : > { %v3481_v17 = vadd.f32 %v3480_v52, %v3343_v40  ;;  %v3660_v46 = vpop.f32.mrf.mxu0 }
 0xb40   : > { %v3706_v16 = vadd.f32 %v3660_v46, %v3471_v44  ;;  %v3482_v7 = vpop.f32.mrf.mxu1 }
 0xb41   : > { %v3483_v55 = vadd.f32 %v3482_v7, %v3345_v27  ;;  %v3664_v18 = vpop.f32.mrf.mxu0 }
 0xb42   : > { %v3707_v31 = vadd.f32 %v3664_v18, %v3475_v50  ;;  %v3486_v43 = vpop.f32.mrf.mxu1 }
 0xb43   : > { %v3487_v33 = vadd.f32 %v3486_v43, %v3349_v23  ;;  %v3666_v34 = vpop.f32.mrf.mxu0 }
 0xb44   : > { %v3708_v41 = vadd.f32 %v3666_v34, %v3477_v48  ;;  %v3488_v35 = vpop.f32.mrf.mxu1 }
 0xb45   : > { %v3489_v10 = vadd.f32 %v3488_v35, %v3351_v25 }
 0xb46   : > { %v3670_v39 = vpop.f32.mrf.mxu0 }
 0xb47   : > { %v3709_v22 = vadd.f32 %v3670_v39, %v3481_v17 }
 0xb48   : > { %v3492_v29 = vpop.f32.mrf.mxu1  ;;  %v3672_v53 = vpop.f32.mrf.mxu0 }
 0xb49   : > { %v3493_v54 = vadd.f32 %v3492_v29, %v3355_v38  ;;  %v3710_v56 = vadd.f32 %v3672_v53, %v3483_v55 }
 0xb4a   : > { %v3494_v58 = vpop.f32.mrf.mxu1  ;;  %v3676_v0 = vpop.f32.mrf.mxu0 }
 0xb4b   : > { %v3495_v19 = vadd.f32 %v3494_v58, %v3357_v1  ;;  %v8234_v42 = vadd.f32 %v3676_v0, %v3487_v33 }
 0xb4c   : > { %v3498_v59 = vpop.f32.mrf.mxu1  ;;  %v3678_v57 = vpop.f32.mrf.mxu0 }
 0xb4d   : > { %v3499_v26 = vadd.f32 %v3498_v59, %v3361_v9  ;;  %v8236_v11 = vadd.f32 %v3678_v57, %v3489_v10 }
 0xb4e   : > { %v3500_v60 = vpop.f32.mrf.mxu1  ;;  %v3682_v3 = vpop.f32.mrf.mxu0 }
 0xb4f   : > { %v3501_v45 = vadd.f32 %v3500_v60, %v3363_v30  ;;  %v8238_v4 = vadd.f32 %v3682_v3, %v3493_v54 }
 0xb50   : > { %v3504_v5 = vpop.f32.mrf.mxu1  ;;  %v3684_v13 = vpop.f32.mrf.mxu0 }
 0xb51   : > { %v3505_v2 = vadd.f32 %v3504_v5, %v3367_v20  ;;  %v8240_v15 = vadd.f32 %v3684_v13, %v3495_v19 }
 0xb52   : > { %v3506_v6 = vpop.f32.mrf.mxu1  ;;  %v3688_v36 = vpop.f32.mrf.mxu0 }
 0xb53   : > { %v3507_v8 = vadd.f32 %v3506_v6, %v3369_v49  ;;  %v8242_v24 = vadd.f32 %v3688_v36, %v3499_v26 }
 0xb54   : > { %v3510_v12 = vpop.f32.mrf.mxu1  ;;  %v3690_v40 = vpop.f32.mrf.mxu0 }
 0xb55   : > { %v3511_v27 = vadd.f32 %v3510_v12, %v3373_v21  ;;  %v8244_v23 = vadd.f32 %v3690_v40, %v3501_v45 }
 0xb56   : > { %v3512_v25 = vpop.f32.mrf.mxu1  ;;  %v3694_v38 = vpop.f32.mrf.mxu0 }
 0xb57   : > { %v3513_v1 = vadd.f32 %v3512_v25, %v3375_v51  ;;  %v8246_v9 = vadd.f32 %v3694_v38, %v3505_v2 }
 0xb58   : > { %v3696_v30 = vpop.f32.mrf.mxu0  ;;  %v3864_v28 = vpop.f32.mrf.mxu1 }
 0xb59   : > { %v8248_v20 = vadd.f32 %v3696_v30, %v3507_v8  ;;  %v3911_v37 = vadd.f32 %v3864_v28, %v3705_v62 }
 0xb5a   : > { %v3700_v14 = vpop.f32.mrf.mxu0  ;;  %v3866_v44 = vpop.f32.mrf.mxu1 }
 0xb5b   : > { %v8250_v49 = vadd.f32 %v3700_v14, %v3511_v27  ;;  %v3912_v47 = vadd.f32 %v3866_v44, %v3706_v16 }
 0xb5c   : > { %v3702_v50 = vpop.f32.mrf.mxu0  ;;  %v3870_v61 = vpop.f32.mrf.mxu1 }
 0xb5d   : > { %v8252_v21 = vadd.f32 %v3702_v50, %v3513_v1  ;;  %v3913_v48 = vadd.f32 %v3870_v61, %v3707_v31 }
 0xb5e   : > { %v3872_v63 = vpop.f32.mrf.mxu1  ;;  %v4026_v52 = vpop.f32.mrf.mxu0 }
 0xb5f   : > { %v3914_v51 = vadd.f32 %v3872_v63, %v3708_v41  ;;  %v4073_v17 = vadd.f32 %v4026_v52, %v3911_v37 }
 0xb60   : > { %v3876_v46 = vpop.f32.mrf.mxu1  ;;  %v4028_v7 = vpop.f32.mrf.mxu0 }
 0xb61   : > { %v3915_v55 = vadd.f32 %v3876_v46, %v3709_v22  ;;  %v4074_v18 = vadd.f32 %v4028_v7, %v3912_v47 }
 0xb62   : > { %v3878_v43 = vpop.f32.mrf.mxu1  ;;  %v4032_v62 = vpop.f32.mrf.mxu0 }
 0xb63   : > { %v3916_v33 = vadd.f32 %v3878_v43, %v3710_v56  ;;  %v8254_v34 = vadd.f32 %v4032_v62, %v3913_v48 }
 0xb64   : > { %v8256_v35 = vpop.f32.mrf.mxu1  ;;  %v4034_v16 = vpop.f32.mrf.mxu0 }
 0xb65   : > { %8892 = vst [vmem:[#allocation31_spill] sm:$0xff] %v8254_v34  ;;  %v8258_v10 = vadd.f32 %v4034_v16, %v3914_v51 }
 0xb66   : > { %v8260_v39 = vpop.f32.mrf.mxu1 }
 0xb67   : > { %8893 = vst [vmem:[#allocation30_spill] sm:$0xff] %v8258_v10  ;;  %v4038_v31 = vpop.f32.mrf.mxu0 }
 0xb68   : > { %v8262_v29 = vadd.f32 %v4038_v31, %v3915_v55  ;;  %v8264_v41 = vpop.f32.mrf.mxu1 }
 0xb69   : > { %v4040_v53 = vpop.f32.mrf.mxu0 }
 0xb6a   : > { %v8266_v22 = vadd.f32 %v4040_v53, %v3916_v33  ;;  %v8268_v54 = vpop.f32.mrf.mxu1 }
 0xb6b   : > { %v8270_v56 = vpop.f32.mrf.mxu0 }
 0xb6c   : > { %v8272_v58 = vpop.f32.mrf.mxu1 }
 0xb6d   : > { %v8274_v0 = vpop.f32.mrf.mxu0 }
 0xb6e   : > { %v8276_v19 = vpop.f32.mrf.mxu1 }
 0xb6f   : > { %v8278_v59 = vpop.f32.mrf.mxu0 }
 0xb70   : > { %v8280_v57 = vpop.f32.mrf.mxu1 }
 0xb71   : > { %v8282_v26 = vpop.f32.mrf.mxu0 }
 0xb72   : > { %v8284_v60 = vpop.f32.mrf.mxu1 }
 0xb73   : > { %v8286_v3 = vpop.f32.mrf.mxu0 }
 0xb74   : > { %v8288_v45 = vpop.f32.mrf.mxu1 }
 0xb75   : > { %v8290_v5 = vpop.f32.mrf.mxu0 }
 0xb76   : > { %v8292_v13 = vpop.f32.mrf.mxu1 }
 0xb77   : > { %v8294_v2 = vpop.f32.mrf.mxu0 }
 0xb78   : > { %v4232_v6 = vpop.f32.mrf.mxu1 }
 0xb79   : > { %v8296_v36 = vpop.f32.mrf.mxu0  ;;  %v4279_v8 = vadd.f32 %v4232_v6, %v4073_v17 }
 0xb7a   : > { %v4234_v12 = vpop.f32.mrf.mxu1 }
 0xb7b   : > { %v8298_v40 = vpop.f32.mrf.mxu0  ;;  %v4280_v27 = vadd.f32 %v4234_v12, %v4074_v18 }
 0xb7c   : > { %v8300_v25 = vpop.f32.mrf.mxu1 }
 0xb7d   : > { %8894 = vst [vmem:[#allocation34_spill] sm:$0xff] %v8300_v25  ;;  %v8302_v38 = vpop.f32.mrf.mxu0 }
 0xb7e   : > { %v8304_v1 = vpop.f32.mrf.mxu1 }
 0xb7f   : > { %8895 = vst [vmem:[#allocation33_spill] sm:$0xff] %v8304_v1  ;;  %v4438_v30 = vpop.f32.mrf.mxu0 }
 0xb80   : > { %v8306_v28 = vadd.f32 %v4438_v30, %v4279_v8  ;;  %v8308_v37 = vpop.f32.mrf.mxu1 }
 0xb81   : > { %v4440_v14 = vpop.f32.mrf.mxu0 }
 0xb82   : > { %8896 = vst [vmem:[#allocation32_spill] sm:$0xff] %v8306_v28  ;;  %v8310_v44 = vadd.f32 %v4440_v14, %v4280_v27  ;;  %v8312_v47 = vpop.f32.mrf.mxu1 }
 0xb83   : > { %v8314_v50 = vpop.f32.mrf.mxu0 }
 0xb84   : > { %8897 = vst [vmem:[#allocation15_spill] sm:$0xff] %v8310_v44  ;;  %8898 = vst [vmem:[#allocation14_spill] sm:$0xff] %v8314_v50  ;;  %v4250_v61 = vpop.f32.mrf.mxu1 }
 0xb85   : > { %v8316_v48 = vpop.f32.mrf.mxu0 }
 0xb86   : > { %8899 = vst [vmem:[#allocation17_spill] sm:$0xff] %v8316_v48  ;;  %v4252_v63 = vpop.f32.mrf.mxu1 }
 0xb88   : > { %v8318_v52 = vpop.f32.mrf.mxu0  ;;  %v4256_v51 = vpop.f32.mrf.mxu1 }
 0xb89   : > { %8900 = vst [vmem:[#allocation16_spill] sm:$0xff] %v8318_v52 }
 0xb8a   : > { %v8320_v17 = vpop.f32.mrf.mxu0  ;;  %v4258_v46 = vpop.f32.mrf.mxu1 }
 0xb8b   : > { %8901 = vst [vmem:[#allocation23_spill] sm:$0xff] %v8320_v17 }
 0xb8c   : > { %v4456_v7 = vpop.f32.mrf.mxu0  ;;  %v4262_v55 = vpop.f32.mrf.mxu1 }
 0xb8e   : > { %v4458_v18 = vpop.f32.mrf.mxu0  ;;  %v8322_v43 = vpop.f32.mrf.mxu1 }
 0xb90   : > { %v4462_v62 = vpop.f32.mrf.mxu0  ;;  %v8324_v33 = vpop.f32.mrf.mxu1 }
 0xb92   : > { %v4464_v16 = vpop.f32.mrf.mxu0  ;;  %v8326_v31 = vpop.f32.mrf.mxu1 }
 0xb94   : > { %v4468_v53 = vpop.f32.mrf.mxu0  ;;  %v8328_v6 = vpop.f32.mrf.mxu1 }
 0xb96   : > { %v8330_v8 = vpop.f32.mrf.mxu0  ;;  %v8332_v12 = vpop.f32.mrf.mxu1 }
 0xb98   : > { %v8334_v27 = vpop.f32.mrf.mxu0  ;;  %v8336_v30 = vpop.f32.mrf.mxu1 }
 0xb99   : > { %8902 = vst [vmem:[#allocation18_spill] sm:$0xff] %v8336_v30  ;;  %v8358_v30 = vpop.permute.xlu1 %4958 }
 0xb9a   : > { %v8338_v14 = vpop.f32.mrf.mxu0  ;;  %v8340_v32 = vpop.f32.mrf.mxu1  ;;  %8911 = vst [vmem:[#allocation28_spill] sm:$0xff] %v8358_v30 }
 0xb9b   : > { %8903 = vst [vmem:[#allocation19_spill] sm:$0xff] %v8340_v32  ;;  %v3917_v32 = vadd.f32 %v8256_v35, %v8234_v42 }
 0xb9c   : > { %v8342_v28 = vpop.f32.mrf.mxu0  ;;  %v8344_v44 = vpop.f32.mrf.mxu1 }
 0xb9d   : > { %8904 = vst [vmem:[#allocation20_spill] sm:$0xff] %v8344_v44  ;;  %v8374_v35 = vpop.permute.xlu1 %4948 }
 0xb9e   : > { %v8346_v50 = vpop.f32.mrf.mxu0  ;;  %v8348_v48 = vpop.f32.mrf.mxu1 }
 0xb9f   : > { %8905 = vst [vmem:[#allocation21_spill] sm:$0xff] %v8346_v50  ;;  %8906 = vst [vmem:[#allocation22_spill] sm:$0xff] %v8348_v48  ;;  %v3918_v50 = vadd.f32 %v8260_v39, %v8236_v11  ;;  %v4079_v48 = vadd.f32 %v8270_v56, %v3917_v32  ;;  %v3921_v56 = vadd.f32 %v8272_v58, %v8242_v24 }
 0xba0   : > { %v8350_v25 = vpop.f32.mrf.mxu0  ;;  %v8352_v34 = vpop.f32.mrf.mxu1 }
 0xba1   : > { %8907 = vst [vmem:[#allocation25_spill] sm:$0xff] %v8350_v25  ;;  %8908 = vst [vmem:[#allocation27_spill] sm:$0xff] %v8352_v34  ;;  %v4285_v30 = vadd.f32 %v4250_v61, %v4079_v48  ;;  %v3922_v48 = vadd.f32 %v8276_v19, %v8244_v23 }
 0xba2   : > { %v8354_v52 = vpop.f32.mrf.mxu0  ;;  %v8356_v1 = vpop.f32.mrf.mxu1 }
 0xba3   : > { %8909 = vst [vmem:[#allocation26_spill] sm:$0xff] %v8354_v52  ;;  %8910 = vst [vmem:[#allocation24_spill] sm:$0xff] %v8356_v1  ;;  %v3919_v52 = vadd.f32 %v8264_v41, %v8238_v4  ;;  %v4080_v1 = vadd.f32 %v8274_v0, %v3918_v50  ;;  %v4491_v39 = vadd.f32 %v4456_v7, %v4285_v30 }
 0xba4   : > { %v8362_v10 = vpop.f32.mrf.mxu0  ;;  %v4662_v44 = vpop.f32.mrf.mxu1  ;;  %v3923_v7 = vadd.f32 %v8280_v57, %v8246_v9  ;;  %v3924_v30 = vadd.f32 %v8284_v60, %v8248_v20 }
 0xba5   : > { %8912 = vst [vmem:[#allocation29_spill] sm:$0xff] %v8362_v10  ;;  %v3920_v10 = vadd.f32 %v8268_v54, %v8240_v15  ;;  %v4081_v11 = vadd.f32 %v8278_v59, %v3919_v52  ;;  %v4286_v32 = vadd.f32 %v4252_v63, %v4080_v1  ;;  %v4697_v61 = vadd.f32 %v4662_v44, %v4491_v39  ;;  %v8387_v1 = vpop.permute.xlu0 %4953 }
 0xba6   : > { %v8367_v25 = vpop.f32.mrf.mxu0  ;;  %v4664_v34 = vpop.f32.mrf.mxu1  ;;  %v4083_v15 = vadd.f32 %v8286_v3, %v3921_v56 }
 0xba7   : > { %8913 = vst [vmem:[#allocation35_spill] sm:$0xff] %v8367_v25  ;;  %v4082_v41 = vadd.f32 %v8282_v26, %v3920_v10  ;;  %v4287_v0 = vadd.f32 %v4256_v51, %v4081_v11  ;;  %v4492_v50 = vadd.f32 %v4458_v18, %v4286_v32  ;;  %v4084_v10 = vadd.f32 %v8290_v5, %v3922_v48  ;;  %v4939_v18 = vpop.permute.xlu1 %4938 }
 0xba8   : > { %v8372_v17 = vpop.f32.mrf.mxu0  ;;  %v4668_v42 = vpop.f32.mrf.mxu1  ;;  %v4289_v26 = vadd.f32 %v4262_v55, %v4083_v15 }
 0xba9   : > { %v4288_v63 = vadd.f32 %v4258_v46, %v4082_v41  ;;  %v4493_v52 = vadd.f32 %v4462_v62, %v4287_v0  ;;  %v4698_v24 = vadd.f32 %v4664_v34, %v4492_v50  ;;  %v4085_v46 = vadd.f32 %v8294_v2, %v3923_v7 }
 0xbaa   : > { %v8381_v25 = vpop.f32.mrf.mxu0  ;;  %v4670_v4 = vpop.f32.mrf.mxu1  ;;  %v4290_v34 = vadd.f32 %v8322_v43, %v4084_v10  ;;  %v4495_v62 = vadd.f32 %v4468_v53, %v4289_v26  ;;  %v3926_v41 = vadd.f32 %v8292_v13, %v8252_v21  ;;  %v8915_v10 = vld [vmem:[#allocation21_spill] sm:$0xff] }
 0xbab   : > { %v4494_v23 = vadd.f32 %v4464_v16, %v4288_v63  ;;  %v4699_v19 = vadd.f32 %v4668_v42, %v4493_v52  ;;  %v3925_v16 = vadd.f32 %v8288_v45, %v8250_v49  ;;  %v4086_v42 = vadd.f32 %v8296_v36, %v3924_v30 }
 0xbac   : > { %v4868_v54 = vpop.f32.mrf.mxu0  ;;  %v4674_v59 = vpop.f32.mrf.mxu1  ;;  %v4291_v20 = vadd.f32 %v8324_v33, %v4085_v46  ;;  %v4496_v43 = vadd.f32 %v8330_v8, %v4290_v34  ;;  %v4088_v48 = vadd.f32 %v8302_v38, %v3926_v41  ;;  %v8918_v46 = vld [vmem:[#allocation16_spill] sm:$0xff] }
 0xbad   : > { %v4903_v58 = vadd.f32 %v4868_v54, %v4697_v61  ;;  %v4700_v9 = vadd.f32 %v4670_v4, %v4494_v23  ;;  %v4701_v53 = vadd.f32 %v4674_v59, %v4495_v62  ;;  %v4944_v4 = vpop.permute.xlu0 %4943  ;;  %v4087_v0 = vadd.f32 %v8298_v40, %v3925_v16  ;;  %v8920_v16 = vld [vmem:[#allocation31_spill] sm:$0xff] }
 0xbae   : > { %v4870_v44 = vpop.f32.mrf.mxu0  ;;  %v4676_v51 = vpop.f32.mrf.mxu1  ;;  %v4292_v49 = vadd.f32 %v8326_v31, %v4086_v42  ;;  %v4497_v45 = vadd.f32 %v8334_v27, %v4291_v20  ;;  %v4284_v59 = vadd.f32 %v8312_v47, %v8266_v22  ;;  %v4294_v63 = vadd.f32 %v8332_v12, %v4088_v48  ;;  %v8914_v47 = vld [vmem:[#allocation23_spill] sm:$0xff]  ;;  %v8921_v42 = vld [vmem:[#allocation34_spill] sm:$0xff] }
 0xbaf   : > { %v4904_v3 = vadd.f32 %v4870_v44, %v4698_v24  ;;  %v8396_v57 = vadd.f32 %v4939_v18, %v4903_v58  ;;  %v4702_v33 = vadd.f32 %v4676_v51, %v4496_v43  ;;  %v4293_v15 = vadd.f32 %v8328_v6, %v4087_v0  ;;  %v8924_v0 = vld [vmem:[#allocation14_spill] sm:$0xff] }
 0xbb0   : > { %v4874_v11 = vpop.f32.mrf.mxu0  ;;  %v4680_v32 = vpop.f32.mrf.mxu1  ;;  %v4498_v13 = vadd.f32 %v8338_v14, %v4292_v49  ;;  %v4283_v22 = vadd.f32 %v8308_v37, %v8262_v29  ;;  %v4490_v12 = vadd.f32 %v8914_v47, %v4284_v59  ;;  %v8919_v37 = vld [vmem:[#allocation24_spill] sm:$0xff]  ;;  %v4281_v20 = vadd.f32 %v8921_v42, %v8920_v16  ;;  %v8925_v49 = vld [vmem:[#allocation22_spill] sm:$0xff]  ;;  %v8930_v59 = vld [vmem:[#allocation19_spill] sm:$0xff] }
 0xbb1   : > { %v8398_v5 = vadd.f32 %v4939_v18, %v4904_v3  ;;  %v4905_v55 = vadd.f32 %v4874_v11, %v4699_v19  ;;  %v4703_v40 = vadd.f32 %v4680_v32, %v4497_v45  ;;  %v4499_v52 = vadd.f32 %v8342_v28, %v4293_v15  ;;  %v8916_v19 = vld [vmem:[#allocation30_spill] sm:$0xff]  ;;  %v8917_v3 = vld [vmem:[#allocation33_spill] sm:$0xff]  ;;  %v4934_v15 = vpop.permute.xlu0 %4933 }
 0xbb2   : > { %v4876_v60 = vpop.f32.mrf.mxu0  ;;  %v4682_v2 = vpop.f32.mrf.mxu1  ;;  %v4500_v28 = vadd.f32 %v8915_v10, %v4294_v63  ;;  %v4282_v30 = vadd.f32 %v8917_v3, %v8916_v19  ;;  %v4489_v29 = vadd.f32 %v8918_v46, %v4283_v22  ;;  %v4696_v34 = vadd.f32 %v8919_v37, %v4490_v12  ;;  %v8933_v22 = vld [vmem:[#allocation18_spill] sm:$0xff] }
 0xbb3   : > { %v4906_v39 = vadd.f32 %v4876_v60, %v4700_v9  ;;  %v4986_v56 = vadd.f32 %v8398_v5, %v8396_v57  ;;  %v8412_v50 = vadd.f32 %v4944_v4, %v4905_v55  ;;  %v4704_v6 = vadd.f32 %v4682_v2, %v4498_v13  ;;  %v8922_v60 = vld [vmem:[#allocation17_spill] sm:$0xff]  ;;  %v8934_v12 = vld [vmem:[#allocation26_spill] sm:$0xff] }
 0xbb4   : > { %v4880_v36 = vpop.f32.mrf.mxu0  ;;  %v4686_v54 = vpop.f32.mrf.mxu1  ;;  %v4488_v2 = vadd.f32 %v8922_v60, %v4282_v30  ;;  %v5018_v3 = vmax.f32 %v8396_v57, %v8398_v5 }
 0xbb5   : > { %v8414_v8 = vadd.f32 %v4944_v4, %v4906_v39  ;;  %v4907_v61 = vadd.f32 %v4880_v36, %v4701_v53  ;;  %4987 = vadd.xlane.f32.xlu1 %v4986_v56  ;;  %v4705_v51 = vadd.f32 %v4686_v54, %v4499_v52  ;;  %v8923_v53 = vld [vmem:[#allocation27_spill] sm:$0xff]  ;;  %v4902_v56 = vadd.f32 %v8381_v25, %v4696_v34  ;;  %v8927_v54 = vld [vmem:[#allocation20_spill] sm:$0xff]  ;;  %v8931_v52 = vld [vmem:[#allocation29_spill] sm:$0xff] }
 0xbb6   : > { %v4882_v21 = vpop.f32.mrf.mxu0  ;;  %v4688_v26 = vpop.f32.mrf.mxu1  ;;  %v4695_v39 = vadd.f32 %v8923_v53, %v4489_v29  ;;  %v4694_v45 = vadd.f32 %v8925_v49, %v4488_v2 }
 0xbb7   : > { %v4908_v31 = vadd.f32 %v4882_v21, %v4702_v33  ;;  %v5021_v27 = vmax.f32 %v8412_v50, %v8414_v8  ;;  %v4989_v38 = vadd.f32 %v8414_v8, %v8412_v50  ;;  %v8428_v58 = vadd.f32 %v8374_v35, %v4907_v61  ;;  %v8926_v33 = vld [vmem:[#allocation28_spill] sm:$0xff]  ;;  %v8928_v21 = vld [vmem:[#allocation35_spill] sm:$0xff] }
 0xbb8   : > { %v4886_v24 = vpop.f32.mrf.mxu0  ;;  %v4706_v11 = vadd.f32 %v4688_v26, %v4500_v28  ;;  %v4901_v36 = vadd.f32 %v8372_v17, %v4695_v39  ;;  %v4900_v13 = vadd.f32 %v8928_v21, %v4694_v45 }
 0xbb9   : > { %v8431_v14 = vadd.f32 %v8374_v35, %v4908_v31  ;;  %v4909_v7 = vadd.f32 %v4886_v24, %v4703_v40  ;;  %5022 = vmax.xlane.f32.xlu0 %v5021_v27  ;;  %4990 = vadd.xlane.f32.xlu1 %v4989_v38  ;;  %v8469_v40 = vadd.f32 %v4934_v15, %v4902_v56  ;;  %v8929_v27 = vld [vmem:[#allocation15_spill] sm:$0xff] }
 0xbba   : > { %v4888_v44 = vpop.f32.mrf.mxu0  ;;  %v4692_v63 = vadd.f32 %v8930_v59, %v8929_v27  ;;  %v8478_v38 = vadd.f32 %v4934_v15, %v4901_v36  ;;  %v8936_v36 = vmov 0.0  }
 0xbbb   : > { %v4910_v18 = vadd.f32 %v4888_v44, %v4704_v6  ;;  %v5024_v23 = vmax.f32 %v8428_v58, %v8431_v14  ;;  %v4992_v35 = vadd.f32 %v8431_v14, %v8428_v58  ;;  %v8446_v32 = vadd.f32 %v8387_v1, %v4909_v7  ;;  %v4929_v6 = vpop.permute.xlu1 %4928  ;;  %v8932_v7 = vld [vmem:[#allocation32_spill] sm:$0xff] }
 0xbbc   : > { %v4892_v62 = vpop.f32.mrf.mxu0  ;;  %v4691_v47 = vadd.f32 %v8933_v22, %v8932_v7  ;;  %v4898_v10 = vadd.f32 %v8934_v12, %v4692_v63  ;;  %v8483_v28 = vadd.f32 %v4929_v6, %v4900_v13  ;;  %v4983_v44 = vadd.f32 %v8469_v40, %v8478_v38  ;;  %v5041_v22 = vld [vmem:[%s8937_s16] sm:$0xf]  ;;  %s8944_s16 = sld [smem:[#allocation13_spill]] }
 0xbbd   : > { %v8449_v9 = vadd.f32 %v8387_v1, %v4910_v18  ;;  %v4911_v55 = vadd.f32 %v4892_v62, %v4705_v51  ;;  %5025 = vmax.xlane.f32.xlu0 %v5024_v23  ;;  %4993 = vadd.xlane.f32.xlu1 %v4992_v35  ;;  %v4487_v1 = vadd.f32 %v8924_v0, %v4281_v20  ;;  %v8935_v51 = vld [vmem:[#allocation25_spill] sm:$0xff]  ;;  %v4924_v35 = vpop.permute.xlu0 %4923  ;;  %v5042_v12 = vld [vmem:[%s8939_s22] sm:$0xf]  ;;  %s6633_s22 = sshll.u32 %s8946_s10, 7 }
 0xbbe   : > { %v4894_v43 = vpop.f32.mrf.mxu0  ;;  %v4897_v18 = vadd.f32 %v8935_v51, %v4691_v47  ;;  %v8492_v19 = vadd.f32 %v4924_v35, %v4898_v10  ;;  %v5015_v29 = vmax.f32 %v8478_v38, %v8469_v40  ;;  %v5118_v47 = vld [vmem:[%s8938_s18] sm:$0xff] }
 0xbbf   : > { %v4912_v4 = vadd.f32 %v4894_v43, %v4706_v11  ;;  %v4995_v41 = vadd.f32 %v8449_v9, %v8446_v32  ;;  %v8462_v61 = vadd.f32 %v8926_v33, %v4911_v55  ;;  %v4693_v25 = vadd.f32 %v8927_v54, %v4487_v1 }
 0xbc0   : > { %v5027_v31 = vmax.f32 %v8446_v32, %v8449_v9  ;;  %v8498_v46 = vadd.f32 %v4924_v35, %v4897_v18  ;;  %v5119_v18 = vld [vmem:[%s8938_s18 + $0x8] sm:$0xff]  ;;  %v5120_v35 = vld [vmem:[%s8938_s18 + $0x10] sm:$0xff] }
 0xbc1   : > { %v8465_v48 = vadd.f32 %v8926_v33, %v4912_v4  ;;  %4996 = vadd.xlane.f32.xlu0 %v4995_v41  ;;  %v4899_v24 = vadd.f32 %v8931_v52, %v4693_v25 }
 0xbc2   : > { %v4977_v37 = vadd.f32 %v8492_v19, %v8498_v46  ;;  %v5009_v62 = vmax.f32 %v8498_v46, %v8492_v19 }
 0xbc3   : > { %v4998_v17 = vadd.f32 %v8465_v48, %v8462_v61  ;;  %v5030_v26 = vmax.f32 %v8462_v61, %v8465_v48  ;;  %v8490_v23 = vadd.f32 %v4929_v6, %v4899_v24 }
 0xbc5   : > { %5028 = vmax.xlane.f32.xlu0 %v5027_v31  ;;  %4999 = vadd.xlane.f32.xlu1 %v4998_v17  ;;  %v4980_v30 = vadd.f32 %v8483_v28, %v8490_v23  ;;  %v5012_v34 = vmax.f32 %v8490_v23, %v8483_v28 }
 0xbc9   : > { %5031 = vmax.xlane.f32.xlu0 %v5030_v26  ;;  %4984 = vadd.xlane.f32.xlu1 %v4983_v44 }
 0xbcd   : > { %5019 = vmax.xlane.f32.xlu0 %v5018_v3  ;;  %4981 = vadd.xlane.f32.xlu1 %v4980_v30  ;;  %v5121_v3 = vld [vmem:[%s8938_s18 + $0x18] sm:$0xff]  ;;  %v5122_v30 = vld [vmem:[%s8938_s18 + $0x20] sm:$0xff] }
 0xbd1   : > { %5016 = vmax.xlane.f32.xlu0 %v5015_v29  ;;  %4978 = vadd.xlane.f32.xlu1 %v4977_v37  ;;  %v5123_v29 = vld [vmem:[%s8938_s18 + $0x28] sm:$0xff]  ;;  %v5124_v37 = vld [vmem:[%s8938_s18 + $0x30] sm:$0xff] }
 0xbd5   : > { %5013 = vmax.xlane.f32.xlu0 %v5012_v34  ;;  %5010 = vmax.xlane.f32.xlu1 %v5009_v62  ;;  %v5125_v34 = vld [vmem:[%s8938_s18 + $0x38] sm:$0xff] }
 0xc3e   : > { %v4988_v11 = vpop.xlane.xlu1 %4987 }
 0xc3f   : > { %v5004_v54 = vmul.f32 0.00390625, %v4988_v11 }
 0xc42   : > { %v5023_v55 = vpop.xlane.xlu0 %5022  ;;  %v4991_v16 = vpop.xlane.xlu1 %4990 }
 0xc43   : > { %v5005_v1 = vmul.f32 0.00390625, %v4991_v16 }
 0xc45   : > { %v5037_v25 = vadd.f32 %v5023_v55, %v5005_v1 }
 0xc46   : > { %v5026_v42 = vpop.xlane.xlu0 %5025  ;;  %v4994_v20 = vpop.xlane.xlu1 %4993 }
 0xc47   : > { %v5006_v4 = vmul.f32 0.00390625, %v4994_v20 }
 0xc49   : > { %v5038_v15 = vadd.f32 %v5026_v42, %v5006_v4  ;;  %v5131_v42 = vld [vmem:[%s8940_s23 + $0x28] sm:$0xff]  ;;  %v5129_v4 = vld [vmem:[%s8940_s23 + $0x18] sm:$0xff] }
 0xc4a   : > { %v4997_v60 = vpop.xlane.xlu0 %4996 }
 0xc4b   : > { %v5007_v41 = vmul.f32 0.00390625, %v4997_v60  ;;  %v5130_v60 = vld [vmem:[%s8940_s23 + $0x20] sm:$0xff] }
 0xc4e   : > { %v5000_v2 = vpop.xlane.xlu1 %4999  ;;  %v5029_v43 = vpop.xlane.xlu0 %5028 }
 0xc4f   : > { %v5008_v53 = vmul.f32 0.00390625, %v5000_v2  ;;  %v5039_v49 = vadd.f32 %v5029_v43, %v5007_v41  ;;  %v5128_v2 = vld [vmem:[%s8940_s23 + $0x10] sm:$0xff] }
 0xc52   : > { %v4985_v39 = vpop.xlane.xlu1 %4984  ;;  %v5032_v56 = vpop.xlane.xlu0 %5031 }
 0xc53   : > { %v5040_v0 = vadd.f32 %v5032_v56, %v5008_v53  ;;  %v5003_v31 = vmul.f32 0.00390625, %v4985_v39  ;;  %v5133_v39 = vld [vmem:[%s8940_s23 + $0x38] sm:$0xff] }
 0xc55   : > { %6803 = vmatpush3.msra.mxu1 %v5040_v0  ;;  %v5132_v0 = vld [vmem:[%s8940_s23 + $0x30] sm:$0xff] }
 0xc56   : > { %v4982_v45 = vpop.xlane.xlu1 %4981  ;;  %6804 = vmatprep.subr.mxu1 %v8936_v36  ;;  %v5020_v33 = vpop.xlane.xlu0 %5019 }
 0xc57   : > { %6805 = vmatpush3.msra.mxu1 %v5039_v49  ;;  %v5036_v17 = vadd.f32 %v5020_v33, %v5004_v54  ;;  %v5002_v27 = vmul.f32 0.00390625, %v4982_v45  ;;  %v5126_v33 = vld [vmem:[%s8940_s23] sm:$0xff] }
 0xc58   : > { %6806 = vmatprep.subr.mxu1 %v8936_v36 }
 0xc59   : > { %6807 = vmatpush3.msra.mxu1 %v5038_v15 }
 0xc5a   : > { %v4979_v21 = vpop.xlane.xlu1 %4978  ;;  %6808 = vmatprep.subr.mxu1 %v8936_v36  ;;  %v5017_v13 = vpop.xlane.xlu0 %5016 }
 0xc5b   : > { %6809 = vmatpush3.msra.mxu1 %v5037_v25  ;;  %v5035_v59 = vadd.f32 %v5017_v13, %v5003_v31  ;;  %v5001_v24 = vmul.f32 0.00390625, %v4979_v21  ;;  %v5127_v31 = vld [vmem:[%s8940_s23 + $0x8] sm:$0xff] }
 0xc5c   : > { %6810 = vmatprep.subr.mxu1 %v8936_v36 }
 0xc5d   : > { %6811 = vmatpush3.msra.mxu1 %v5036_v17 }
 0xc5e   : > { %v5011_v63 = vpop.xlane.xlu1 %5010  ;;  %6812 = vmatprep.subr.mxu1 %v8936_v36  ;;  %v5014_v52 = vpop.xlane.xlu0 %5013 }
 0xc5f   : > { %v5034_v6 = vadd.f32 %v5014_v52, %v5002_v27  ;;  %6813 = vmatpush3.msra.mxu1 %v5035_v59  ;;  %v5033_v7 = vadd.f32 %v5011_v63, %v5001_v24 }
 0xc60   : > { %6814 = vmatprep.subr.mxu1 %v8936_v36 }
 0xc61   : > { %6815 = vmatpush3.msra.mxu1 %v5034_v6 }
 0xc62   : > { %6816 = vmatprep.subr.mxu1 %v8936_v36 }
 0xc63   : > { %6817 = vmatpush3.msra.mxu1 %v5033_v7 }
 0xc64   : > { %6819 = vmatmul.mubr.msk.f32.vlgmr.msra.gmra.mxu1 %vm5043_vm14, %v5041_v22 }
 0xc65   : > { %6823 = vmatprep.mubr.msk.f32.mxu1 %vm2810_vm13, %v5118_v47 }
 0xd24   : > { %v5113_v10 = vpop.f32.mrf.mxu1 }
 0xd25   : > { %v5114_v26 = vadd.f32 %v5113_v10, %v5042_v12 }
 0xd26   : > { %v6820_v44 = vpop.f32.mrf.mxu1 }
 0xd27   : > { %v5117_v51 = vmax.f32 %v5114_v26, 0.0 }
 0xd29   : > { %6821 = vmatprep.subr.msk.mxu1 %vm5158_vm15, %v5117_v51 }
 0xd2a   : > { %6822 = vmatpush3.msk.msra.mxu1 %vm5158_vm15, %v5117_v51 }
 0xd2b   : > { %6824 = vmatmul.mubr.msk.f32.vlgmr.msra.gmra.mxu1 %vm2810_vm13, %v5119_v18 }
 0xd2c   : > { %6826 = vmatprep.mubr.msk.f32.mxu1 %vm2810_vm13, %v5120_v35 }
 0xd2f   : > { %6827 = vmatmul.mubr.msk.f32.gmra.mxu1 %vm2810_vm13, %v5121_v3 }
 0xd30   : > { %6829 = vmatprep.mubr.msk.f32.mxu1 %vm2810_vm13, %v5122_v30 }
 0xd33   : > { %6830 = vmatmul.mubr.msk.f32.gmra.mxu1 %vm2810_vm13, %v5123_v29 }
 0xd34   : > { %6832 = vmatprep.mubr.msk.f32.mxu1 %vm2810_vm13, %v5124_v37 }
 0xd37   : > { %6833 = vmatmul.mubr.msk.f32.gmra.mxu1 %vm2810_vm13, %v5125_v34 }
 0xdeb   : > { %v6825_v62 = vpop.f32.mrf.mxu1 }
 0xdec   : > { %v5234_v63 = vadd.f32 %v6825_v62, %v5127_v31 }
 0xded   : > { %v5228_v11 = vpop.f32.mrf.mxu1 }
 0xdee   : > { %v5229_v17 = vadd.f32 %v5228_v11, %v5126_v33  ;;  %v6585_v6 = vmul.f32 -1.442695, %v5234_v63 }
 0xdef   : > { %v6828_v55 = vpop.f32.mrf.mxu1 }
 0xdf0   : > { %v5244_v25 = vadd.f32 %v6828_v55, %v5129_v4  ;;  %v6584_v24 = vmul.f32 -1.442695, %v5229_v17  ;;  %v5466_v4 = vld [vmem:[%s8941_s26 + $0x20] sm:$0xff] }
 0xdf1   : > { %v5238_v16 = vpop.f32.mrf.mxu1 }
 0xdf2   : > { %v5239_v1 = vadd.f32 %v5238_v16, %v5128_v2  ;;  %v6587_v52 = vmul.f32 -1.442695, %v5244_v25 }
 0xdf3   : > { %v6831_v20 = vpop.f32.mrf.mxu1 }
 0xdf4   : > { %v5254_v43 = vadd.f32 %v6831_v20, %v5131_v42  ;;  %v6586_v27 = vmul.f32 -1.442695, %v5239_v1 }
 0xdf5   : > { %v5248_v53 = vpop.f32.mrf.mxu1 }
 0xdf6   : > { %v5249_v56 = vadd.f32 %v5248_v53, %v5130_v60  ;;  %v6589_v15 = vmul.f32 -1.442695, %v5254_v43  ;;  %v5469_v53 = vld [vmem:[%s8941_s26 + $0x38] sm:$0xff] }
 0xdf7   : > { %v6834_v41 = vpop.f32.mrf.mxu1  ;;  %6835 = vmatprep.subr.mxu1 %v5469_v53 }
 0xdf8   : > { %v6588_v49 = vmul.f32 -1.442695, %v5249_v56  ;;  %v5264_v45 = vadd.f32 %v6834_v41, %v5133_v39  ;;  %v5468_v39 = vld [vmem:[%s8941_s26 + $0x30] sm:$0xff]  ;;  %6836 = vmatpush3.msra.mxu1 %v5469_v53  ;;  %v5467_v56 = vld [vmem:[%s8941_s26 + $0x28] sm:$0xff]  ;;  %v5465_v41 = vld [vmem:[%s8941_s26 + $0x18] sm:$0xff] }
 0xdf9   : > { %v5258_v54 = vpop.f32.mrf.mxu1  ;;  %6837 = vmatprep.subr.mxu1 %v5468_v39  ;;  %v5648_v53 = vld [vmem:[%s7218_s12] sm:$0xff] }
 0xdfa   : > { %v6591_v21 = vmul.f32 -1.442695, %v5264_v45  ;;  %v5259_v13 = vadd.f32 %v5258_v54, %v5132_v0  ;;  %6988 = vpow2.f32 %v6588_v49  ;;  %6838 = vmatpush3.msra.mxu1 %v5468_v39  ;;  %v5464_v0 = vld [vmem:[%s8941_s26 + $0x10] sm:$0xff]  ;;  %v5649_v39 = vld [vmem:[%s7218_s12 + $0x8] sm:$0xff] }
 0xdfb   : > { %6839 = vmatprep.subr.mxu1 %v5467_v56 }
 0xdfc   : > { %6990 = vpow2.f32 %v6591_v21  ;;  %v6590_v59 = vmul.f32 -1.442695, %v5259_v13  ;;  %6840 = vmatpush3.msra.mxu1 %v5467_v56 }
 0xdfd   : > { %6992 = vpow2.f32 %v6589_v15  ;;  %6841 = vmatprep.subr.mxu1 %v5466_v4 }
 0xdfe   : > { %6994 = vpow2.f32 %v6590_v59  ;;  %6842 = vmatpush3.msra.mxu1 %v5466_v4  ;;  %v6592_v4 = vld [vmem:[%s8943_s1] ss:$0 sm:$0xff]  ;;  %s8735_s1 = scalar_lea.vmem %s7233_s4, %s6633_s22 }
 0xdff   : > { %6996 = vpow2.f32 %v6586_v27  ;;  %6843 = vmatprep.subr.mxu1 %v5465_v41 }
 0xe00   : > { %6998 = vpow2.f32 %v6587_v52  ;;  %6844 = vmatpush3.msra.mxu1 %v5465_v41 }
 0xe01   : > { %7000 = vpow2.f32 %v6584_v24  ;;  %6845 = vmatprep.subr.mxu1 %v5464_v0 }
 0xe02   : > { %7002 = vpow2.f32 %v6585_v6  ;;  %6846 = vmatpush3.msra.mxu1 %v5464_v0 }
 0xe07   : > { %v6989_v7 = vpop.eup %6988 }
 0xe08   : > { %v5295_v26 = vadd.f32 1.0, %v6989_v7 }
 0xe09   : > { %v6991_v22 = vpop.eup %6990 }
 0xe0a   : > { %v6993_v47 = vpop.eup %6992  ;;  %v5298_v12 = vadd.f32 1.0, %v6991_v22 }
 0xe0b   : > { %v6995_v10 = vpop.eup %6994  ;;  %v5296_v18 = vadd.f32 1.0, %v6993_v47 }
 0xe0c   : > { %7004 = vrcp.f32 %v5298_v12  ;;  %v5297_v44 = vadd.f32 1.0, %v6995_v10  ;;  %v6997_v51 = vpop.eup %6996 }
 0xe0d   : > { %v6999_v35 = vpop.eup %6998  ;;  %v5293_v3 = vadd.f32 1.0, %v6997_v51 }
 0xe0e   : > { %7006 = vrcp.f32 %v5297_v44  ;;  %v7001_v30 = vpop.eup %7000  ;;  %v5294_v29 = vadd.f32 1.0, %v6999_v35  ;;  %v7031_v35 = vld [vmem:[%s7098_s13 + $0x10] sm:$0xff] }
 0xe0f   : > { %7008 = vrcp.f32 %v5295_v26  ;;  %v7003_v37 = vpop.eup %7002  ;;  %v5291_v34 = vadd.f32 1.0, %v7001_v30  ;;  %v5462_v30 = vld [vmem:[%s8941_s26] sm:$0xff] }
 0xe10   : > { %7010 = vrcp.f32 %v5296_v18  ;;  %v5292_v62 = vadd.f32 1.0, %v7003_v37  ;;  %v7029_v18 = vld [vmem:[%s7098_s13] sm:$0xff] }
 0xe11   : > { %7012 = vrcp.f32 %v5293_v3  ;;  %v5463_v3 = vld [vmem:[%s8941_s26 + $0x8] sm:$0xff] }
 0xe12   : > { %7014 = vrcp.f32 %v5294_v29  ;;  %6847 = vmatprep.subr.mxu1 %v5463_v3  ;;  %v5565_v29 = vld [vmem:[%s8942_s28 + $0x38] sm:$0xff] }
 0xe13   : > { %7016 = vrcp.f32 %v5291_v34  ;;  %6848 = vmatpush3.msra.mxu1 %v5463_v3  ;;  %v5655_v3 = vld [vmem:[%s7218_s12 + $0x38] sm:$0xff] }
 0xe14   : > { %7018 = vrcp.f32 %v5292_v62  ;;  %6849 = vmatprep.subr.mxu1 %v5462_v30 }
 0xe15   : > { %6850 = vmatpush3.msra.mxu1 %v5462_v30 }
 0xe16   : > { %6854 = vmatprep.subr.mxu1 %v5565_v29 }
 0xe19   : > { %v7005_v11 = vpop.eup %7004 }
 0xe1a   : > { %5352 = vperm.xlu0 %6962, %v7005_v11   ;;  %v5564_v11 = vld [vmem:[%s8942_s28 + $0x30] sm:$0xff] }
 0xe1b   : > { %v7007_v55 = vpop.eup %7006 }
 0xe1c   : > { %5347 = vperm.xlu1 %6963, %v7007_v55   ;;  %v7009_v16 = vpop.eup %7008  ;;  %v5563_v55 = vld [vmem:[%s8942_s28 + $0x28] sm:$0xff] }
 0xe1d   : > { %v7011_v42 = vpop.eup %7010 }
 0xe1e   : > { %5337 = vperm.xlu0 %6962, %v7009_v16   ;;  %v7013_v20 = vpop.eup %7012 }
 0xe1f   : > { %v7015_v60 = vpop.eup %7014 }
 0xe20   : > { %5342 = vperm.xlu1 %6963, %v7011_v42   ;;  %v7017_v2 = vpop.eup %7016  ;;  %v5562_v42 = vld [vmem:[%s8942_s28 + $0x20] sm:$0xff] }
 0xe21   : > { %v7019_v43 = vpop.eup %7018 }
 0xe22   : > { %5327 = vperm.xlu0 %6962, %v7013_v20   ;;  %v5561_v20 = vld [vmem:[%s8942_s28 + $0x18] sm:$0xff] }
 0xe24   : > { %5332 = vperm.xlu1 %6963, %v7015_v60   ;;  %v5560_v60 = vld [vmem:[%s8942_s28 + $0x10] sm:$0xff] }
 0xe26   : > { %5317 = vperm.xlu0 %6962, %v7017_v2   ;;  %v5559_v2 = vld [vmem:[%s8942_s28 + $0x8] sm:$0xff] }
 0xe28   : > { %5322 = vperm.xlu1 %6963, %v7019_v43   ;;  %v5558_v43 = vld [vmem:[%s8942_s28] sm:$0xff] }
 0xe95   : > { %v5353_v1 = vpop.permute.xlu0 %5352 }
 0xe96   : > { %v8549_v49 = vmul.f32 %v5353_v1, %v8462_v61  ;;  %v8552_v45 = vmul.f32 %v5353_v1, %v8465_v48  ;;  %v6595_v1 = vld [vmem:[%s8944_s16] ss:$0 sm:$0xff] }
 0xe97   : > { %v5348_v33 = vpop.permute.xlu1 %5347 }
 0xe98   : > { %v5385_v15 = vmax.f32 %v8549_v49, 0.0  ;;  %v5386_v54 = vmax.f32 %v8552_v45, 0.0  ;;  %v8557_v25 = vmul.f32 %v5348_v33, %v8449_v9  ;;  %v8560_v21 = vmul.f32 %v5348_v33, %v8446_v32 }
 0xe99   : > { %v5338_v61 = vpop.permute.xlu0 %5337 }
 0xe9a   : > { %v5384_v13 = vmax.f32 %v8557_v25, 0.0  ;;  %5403 = vmatprep.subr.mxu0 %v5386_v54  ;;  %v5383_v9 = vmax.f32 %v8560_v21, 0.0  ;;  %v8577_v17 = vmul.f32 %v5338_v61, %v8414_v8 }
 0xe9b   : > { %5404 = vmatpush1.xpose.msra.mxu0 %v5385_v15  ;;  %v5343_v48 = vpop.permute.xlu1 %5342 }
 0xe9c   : > { %v8568_v31 = vmul.f32 %v5343_v48, %v8431_v14  ;;  %5405 = vmatprep.subr.mxu0 %v5384_v13  ;;  %v8574_v32 = vmul.f32 %v5343_v48, %v8428_v58  ;;  %v8585_v14 = vmul.f32 %v5338_v61, %v8412_v50  ;;  %v5380_v58 = vmax.f32 %v8577_v17, 0.0 }
 0xe9d   : > { %v5328_v8 = vpop.permute.xlu0 %5327 }
 0xe9e   : > { %v5382_v27 = vmax.f32 %v8568_v31, 0.0  ;;  %v5381_v63 = vmax.f32 %v8574_v32, 0.0  ;;  %v5379_v24 = vmax.f32 %v8585_v14, 0.0  ;;  %v8601_v50 = vmul.f32 %v5328_v8, %v8469_v40 }
 0xe9f   : > { %5406 = vmatpush1.xpose.msra.mxu0 %v5383_v9  ;;  %v5333_v59 = vpop.permute.xlu1 %5332 }
 0xea0   : > { %5407 = vmatprep.subr.mxu0 %v5382_v27  ;;  %v8590_v52 = vmul.f32 %v5333_v59, %v8398_v5  ;;  %v8598_v6 = vmul.f32 %v5333_v59, %v8396_v57  ;;  %v8609_v5 = vmul.f32 %v5328_v8, %v8478_v38  ;;  %v5376_v57 = vmax.f32 %v8601_v50, 0.0 }
 0xea1   : > { %v5318_v40 = vpop.permute.xlu0 %5317 }
 0xea2   : > { %v5378_v7 = vmax.f32 %v8590_v52, 0.0  ;;  %v5377_v47 = vmax.f32 %v8598_v6, 0.0  ;;  %v5375_v10 = vmax.f32 %v8609_v5, 0.0  ;;  %v8625_v26 = vmul.f32 %v5318_v40, %v8492_v19 }
 0xea3   : > { %5408 = vmatpush1.xpose.msra.mxu0 %v5381_v63  ;;  %v5323_v22 = vpop.permute.xlu1 %5322  ;;  %v8633_v44 = vmul.f32 %v5318_v40, %v8498_v46  ;;  %v7030_v46 = vld [vmem:[%s7098_s13 + $0x18] sm:$0xff] }
 0xea4   : > { %5409 = vmatprep.subr.mxu0 %v5380_v58  ;;  %v8614_v12 = vmul.f32 %v5323_v22, %v8483_v28  ;;  %v8622_v38 = vmul.f32 %v5323_v22, %v8490_v23  ;;  %v5372_v51 = vmax.f32 %v8625_v26, 0.0  ;;  %v5650_v22 = vld [vmem:[%s7218_s12 + $0x10] sm:$0xff]  ;;  %v5651_v40 = vld [vmem:[%s7218_s12 + $0x18] sm:$0xff] }
 0xea5   : > { %v5371_v19 = vmax.f32 %v8633_v44, 0.0 }
 0xea6   : > { %v5374_v28 = vmax.f32 %v8614_v12, 0.0  ;;  %v5373_v23 = vmax.f32 %v8622_v38, 0.0 }
 0xea7   : > { %5410 = vmatpush1.xpose.msra.mxu0 %v5379_v24 }
 0xea8   : > { %5411 = vmatprep.subr.mxu0 %v5378_v7 }
 0xeab   : > { %5412 = vmatpush1.xpose.msra.mxu0 %v5377_v47 }
 0xeac   : > { %5413 = vmatprep.subr.mxu0 %v5376_v57 }
 0xeaf   : > { %5414 = vmatpush1.xpose.msra.mxu0 %v5375_v10 }
 0xeb0   : > { %5415 = vmatprep.subr.mxu0 %v5374_v28 }
 0xeb3   : > { %5416 = vmatpush1.xpose.msra.mxu0 %v5373_v23 }
 0xeb4   : > { %5417 = vmatprep.subr.mxu0 %v5372_v51 }
 0xeb7   : > { %5418 = vmatpush1.xpose.msra.mxu0 %v5371_v19 }
 0xeba   : > { %5452 = vmatmul.mubr.f32.vlgmr.msra.gmra.mxu0 %v7029_v18  ;;  %v5652_v18 = vld [vmem:[%s7218_s12 + $0x20] sm:$0xff] }
 0xebb   : > { %5456 = vmatprep.mubr.f32.mxu0 %v7030_v46  ;;  %v5653_v46 = vld [vmem:[%s7218_s12 + $0x28] sm:$0xff] }
 0xebe   : > { %5457 = vmatmul.mubr.f32.gmra.mxu0 %v7031_v35  ;;  %v5654_v35 = vld [vmem:[%s7218_s12 + $0x30] sm:$0xff] }
 0xebf   : > { %6877 = vmatprep.mubr.msk.f32.mxu0 %vm5043_vm14, %v5648_v53 }
 0xf7a   : > { %v5453_v37 = vpop.f32.mrf.mxu0 }
 0xf7b   : > { %6851 = vmatprep.mubr.msk.f32.mxu1 %vm5043_vm14, %v5453_v37 }
 0xf7c   : > { %v5455_v34 = vpop.f32.mrf.mxu0 }
 0xf7e   : > { %v5458_v62 = vpop.f32.mrf.mxu0 }
 0xf7f   : > { %6852 = vmatmul.mubr.msk.f32.vlgmr.msra.gmra.mxu1 %vm5043_vm14, %v5458_v62  ;;  %6873 = vmatprep.subr.msk.mxu0 %vm5043_vm14, %v5458_v62 }
 0xf80   : > { %6855 = vmatpush3.msra.mxu1 %v5565_v29  ;;  %6874 = vmatpush3.xpose.msk.msra.mxu0 %vm5043_vm14, %v5458_v62  ;;  %v5460_v16 = vpop.f32.mrf.mxu0 }
 0xf81   : > { %6856 = vmatprep.subr.mxu1 %v5564_v11  ;;  %6875 = vmatprep.subr.msk.mxu0 %vm5043_vm14, %v5453_v37 }
 0xf82   : > { %6857 = vmatpush3.msra.mxu1 %v5564_v11  ;;  %6870 = vmatprep.mubr.msk.f32.mxu1 %vm5043_vm14, %v5453_v37 }
 0xf83   : > { %6858 = vmatprep.subr.mxu1 %v5563_v55 }
 0xf84   : > { %6859 = vmatpush3.msra.mxu1 %v5563_v55  ;;  %6876 = vmatpush3.xpose.msk.msra.mxu0 %vm5043_vm14, %v5453_v37 }
 0xf85   : > { %6860 = vmatprep.subr.mxu1 %v5562_v42 }
 0xf86   : > { %6861 = vmatpush3.msra.mxu1 %v5562_v42 }
 0xf87   : > { %6862 = vmatprep.subr.mxu1 %v5561_v20  ;;  %6878 = vmatmul.mubr.msk.f32.vlgmr.msra.gmra.mxu0 %vm5043_vm14, %v5649_v39 }
 0xf88   : > { %6863 = vmatpush3.msra.mxu1 %v5561_v20  ;;  %6880 = vmatprep.mubr.msk.f32.mxu0 %vm5043_vm14, %v5650_v22 }
 0xf89   : > { %6864 = vmatprep.subr.mxu1 %v5560_v60 }
 0xf8a   : > { %6865 = vmatpush3.msra.mxu1 %v5560_v60 }
 0xf8b   : > { %6866 = vmatprep.subr.mxu1 %v5559_v2  ;;  %6881 = vmatmul.mubr.msk.f32.gmra.mxu0 %vm5043_vm14, %v5651_v40 }
 0xf8c   : > { %6867 = vmatpush3.msra.mxu1 %v5559_v2  ;;  %6883 = vmatprep.mubr.msk.f32.mxu0 %vm5043_vm14, %v5652_v18 }
 0xf8d   : > { %6868 = vmatprep.subr.mxu1 %v5558_v43 }
 0xf8e   : > { %6869 = vmatpush3.msra.mxu1 %v5558_v43 }
 0xf8f   : > { %6871 = vmatmul.mubr.msk.f32.vlgmr.msra.gmra.mxu1 %vm5043_vm14, %v5458_v62  ;;  %6884 = vmatmul.mubr.msk.f32.gmra.mxu0 %vm5043_vm14, %v5653_v46  ;;  %v5657_v62 = vld [vmem:[%s7223_s20 + $0x8] sm:$0xff] }
 0xf90   : > { %6886 = vmatprep.mubr.msk.f32.mxu0 %vm5043_vm14, %v5654_v35 }
 0xf93   : > { %6887 = vmatmul.mubr.msk.f32.gmra.mxu0 %vm5043_vm14, %v5655_v3 }
0x103f   : > { %v6853_v56 = vpop.f32.mrf.mxu1 }
0x1040   : > { %v5555_v8 = vadd.f32 %v6853_v56, %v6592_v4  ;;  %v5658_v56 = vld [vmem:[%s7223_s20 + $0x10] sm:$0xff] }
0x1041   : > { %v5549_v41 = vpop.f32.mrf.mxu1 }
0x1042   : > { %v5550_v0 = vadd.f32 %v6592_v4, %v5549_v41  ;;  %v5656_v4 = vld [vmem:[%s7223_s20] sm:$0xff] }
0x1043   : > { %v5660_v41 = vld [vmem:[%s7223_s20 + $0x20] sm:$0xff] }
0x1044   : > { %6893 = vmatprep.mubr.msk.f32.mxu1 %vm969_vm3, %v5550_v0  ;;  %v5659_v0 = vld [vmem:[%s7223_s20 + $0x18] sm:$0xff] }
0x1047   : > { %v6879_v40 = vpop.f32.mrf.mxu0 }
0x1049   : > { %v5794_v18 = vpop.f32.mrf.mxu0 }
0x104b   : > { %v6882_v35 = vpop.f32.mrf.mxu0 }
0x104f   : > { %v6872_v33 = vpop.f32.mrf.mxu1 }
0x1050   : > { %v5645_v61 = vadd.f32 %v6872_v33, %v6595_v1  ;;  %v5661_v33 = vld [vmem:[%s7223_s20 + $0x28] sm:$0xff] }
0x1051   : > { %v5639_v48 = vpop.f32.mrf.mxu1 }
0x1052   : > { %v5640_v59 = vadd.f32 %v6595_v1, %v5639_v48  ;;  %6889 = vmatprep.subr.msk.mxu1 %vm969_vm3, %v5645_v61  ;;  %v5662_v1 = vld [vmem:[%s7223_s20 + $0x30] sm:$0xff]  ;;  %v6080_v48 = vld [vmem:[%s7228_s27 + $0x18] sm:$0xff] }
0x1053   : > { %6890 = vmatpush3.xpose.msk.msra.mxu1 %vm969_vm3, %v5645_v61  ;;  %v5663_v61 = vld [vmem:[%s7223_s20 + $0x38] sm:$0xff] }
0x1054   : > { %6891 = vmatprep.subr.msk.mxu1 %vm969_vm3, %v5640_v59 }
0x1057   : > { %6892 = vmatpush3.xpose.msk.msra.mxu1 %vm969_vm3, %v5640_v59 }
0x1058   : > { %6133 = vmatprep.subr.mxu1 %v6080_v48  ;;  %v6079_v48 = vld [vmem:[%s7228_s27 + $0x10] sm:$0xff] }
0x105a   : > { %6894 = vmatmul.mubr.msk.f32.vlgmr.msra.gmra.mxu1 %vm969_vm3, %v5555_v8 }
0x105b   : > { %6169 = vmatprep.mubr.f32.mxu1 %v8936_v36  ;;  %6134 = vmatpush1.msra.mxu1 %v6079_v48 }
0x111a   : > { %v6895_v30 = vpop.f32.mrf.mxu1 }
0x111b   : > { %v5923_v29 = vsel %vm944_vm0, %v6895_v30, -inf }
0x111c   : > { %5924 = vmax.xlane.f32.xlu1 %v5923_v29  ;;  %v5911_v37 = vpop.f32.mrf.mxu1 }
0x111d   : > { %v5920_v34 = vsel %vm944_vm0, %v5911_v37, -inf }
0x111e   : > { %5921 = vmax.xlane.f32.xlu0 %v5920_v34 }
0x112d   : > { %5671 = vperm.xlu1 %6963, %v5657_v62  }
0x11a5   : > { %v5925_v11 = vpop.xlane.xlu1 %5924 }
0x11a6   : > { %v5927_v55 = vsub.f32 %v6895_v30, %v5925_v11  ;;  %v5804_v30 = vpop.f32.mrf.mxu0 }
0x11a7   : > { %v5922_v16 = vpop.xlane.xlu0 %5921 }
0x11a8   : > { %v5930_v42 = vmul.f32 1.442695, %v5927_v55  ;;  %v5926_v20 = vsub.f32 %v5911_v37, %v5922_v16  ;;  %v6885_v11 = vpop.f32.mrf.mxu0 }
0x11a9   : > { %v5672_v59 = vpop.permute.xlu1 %5671 }
0x11aa   : > { %7020 = vpow2.f32 %v5930_v42  ;;  %v5928_v60 = vmul.f32 1.442695, %v5926_v20  ;;  %v5814_v42 = vpop.f32.mrf.mxu0  ;;  %v5800_v20 = vadd.f32 %v6879_v40, %v5672_v59  ;;  %v6078_v59 = vld [vmem:[%s7228_s27 + $0x8] sm:$0xff] }
0x11ab   : > { %6135 = vmatprep.subr.mxu1 %v6078_v59 }
0x11ac   : > { %7022 = vpow2.f32 %v5928_v60 }
0x11b7   : > { %v7021_v2 = vpop.eup %7020 }
0x11b8   : > { %v5935_v43 = vsel %vm944_vm0, %v7021_v2, 0.0 }
0x11b9   : > { %v7023_v53 = vpop.eup %7022  ;;  %5936 = vadd.xlane.f32.xlu0 %v5935_v43 }
0x11ba   : > { %v5932_v39 = vsel %vm944_vm0, %v7023_v53, 0.0 }
0x11bb   : > { %5933 = vadd.xlane.f32.xlu1 %v5932_v39  ;;  %v6888_v39 = vpop.f32.mrf.mxu0 }
0x11cc   : > { %5676 = vperm.xlu1 %6963, %v5658_v56  }
0x11cf   : > { %5666 = vperm.xlu0 %6962, %v5656_v4  }
0x11d0   : > { %5686 = vperm.xlu1 %6963, %v5660_v41   ;;  %v5824_v41 = vpop.f32.mrf.mxu0 }
0x11d3   : > { %5681 = vperm.xlu0 %6962, %v5659_v0  }
0x11d4   : > { %5696 = vperm.xlu1 %6963, %v5662_v1  }
0x11d7   : > { %5691 = vperm.xlu0 %6962, %v5661_v33  }
0x11db   : > { %5701 = vperm.xlu0 %6962, %v5663_v61  }
0x1242   : > { %v5937_v8 = vpop.xlane.xlu0 %5936 }
0x1243   : > { %7024 = vrcp.f32 %v5937_v8  ;;  %v6077_v8 = vld [vmem:[%s7228_s27] sm:$0xff] }
0x1244   : > { %v5934_v22 = vpop.xlane.xlu1 %5933  ;;  %6136 = vmatpush1.msra.mxu1 %v6077_v8 }
0x1245   : > { %7026 = vrcp.f32 %v5934_v22 }
0x1248   : > { %v5677_v62 = vpop.permute.xlu1 %5676 }
0x1249   : > { %v5805_v43 = vadd.f32 %v5804_v30, %v5677_v62 }
0x124a   : > { %v5667_v46 = vpop.permute.xlu0 %5666 }
0x124b   : > { %v5795_v3 = vadd.f32 %v5794_v18, %v5667_v46 }
0x124c   : > { %v5687_v60 = vpop.permute.xlu1 %5686 }
0x124d   : > { %6900 = vmatprep.mubr.msk.f32.mxu0 %vm944_vm0, %v5795_v3  ;;  %v5815_v56 = vadd.f32 %v5814_v42, %v5687_v60 }
0x124e   : > { %v5682_v16 = vpop.permute.xlu0 %5681 }
0x1250   : > { %v7025_v29 = vpop.eup %7024  ;;  %v5697_v4 = vpop.permute.xlu1 %5696 }
0x1251   : > { %v5941_v37 = vmul.f32 %v7025_v29, %v7021_v2  ;;  %v5825_v1 = vadd.f32 %v5824_v41, %v5697_v4 }
0x1252   : > { %v7027_v34 = vpop.eup %7026  ;;  %v5692_v2 = vpop.permute.xlu0 %5691 }
0x1253   : > { %6896 = vmatprep.subr.msk.mxu0 %vm944_vm0, %v5941_v37  ;;  %v5940_v55 = vmul.f32 %v7027_v34, %v7023_v53  ;;  %v5810_v53 = vadd.f32 %v6882_v35, %v5682_v16  ;;  %v5820_v0 = vadd.f32 %v6885_v11, %v5692_v2 }
0x1254   : > { %6897 = vmatpush3.xpose.msk.msra.mxu0 %vm944_vm0, %v5941_v37 }
0x1255   : > { %6898 = vmatprep.subr.msk.mxu0 %vm944_vm0, %v5940_v55 }
0x1256   : > { %v5702_v33 = vpop.permute.xlu0 %5701 }
0x1257   : > { %v5830_v61 = vadd.f32 %v6888_v39, %v5702_v33 }
0x1258   : > { %6899 = vmatpush3.xpose.msk.msra.mxu0 %vm944_vm0, %v5940_v55 }
0x125b   : > { %6901 = vmatmul.mubr.msk.f32.vlgmr.msra.gmra.mxu0 %vm944_vm0, %v5800_v20 }
0x125c   : > { %6903 = vmatprep.mubr.msk.f32.mxu0 %vm944_vm0, %v5805_v43 }
0x125f   : > { %6904 = vmatmul.mubr.msk.f32.gmra.mxu0 %vm944_vm0, %v5810_v53 }
0x1260   : > { %6906 = vmatprep.mubr.msk.f32.mxu0 %vm944_vm0, %v5815_v56 }
0x1263   : > { %6907 = vmatmul.mubr.msk.f32.gmra.mxu0 %vm944_vm0, %v5820_v0 }
0x1264   : > { %6909 = vmatprep.mubr.msk.f32.mxu0 %vm944_vm0, %v5825_v1 }
0x1267   : > { %6910 = vmatmul.mubr.msk.f32.gmra.mxu0 %vm944_vm0, %v5830_v61 }
0x131b   : > { %v6902_v22 = vpop.f32.mrf.mxu0 }
0x131d   : > { %v6038_v40 = vpop.f32.mrf.mxu0 }
0x131e   : > { %6622 = vmatmul.mubr.msk.f32.vlgmr.msra.gmra.mxu1 %vm944_vm0, %v6038_v40 }
0x131f   : > { %6175 = vmatprep.mubr.f32.mxu1 %v8936_v36  ;;  %v6905_v18 = vpop.f32.mrf.mxu0 }
0x1321   : > { %v6048_v46 = vpop.f32.mrf.mxu0 }
0x1322   : > { %6623 = vmatmul.mubr.msk.f32.gmra.mxu1 %vm944_vm0, %v6902_v22 }
0x1323   : > { %6181 = vmatprep.mubr.f32.mxu1 %v8936_v36  ;;  %v6908_v35 = vpop.f32.mrf.mxu0 }
0x1325   : > { %v6058_v3 = vpop.f32.mrf.mxu0 }
0x1326   : > { %6624 = vmatmul.mubr.msk.f32.gmra.mxu1 %vm944_vm0, %v6048_v46 }
0x1327   : > { %6187 = vmatprep.mubr.f32.mxu1 %v8936_v36  ;;  %v6911_v30 = vpop.f32.mrf.mxu0 }
0x1329   : > { %v6068_v29 = vpop.f32.mrf.mxu0 }
0x132a   : > { %6625 = vmatmul.mubr.msk.f32.gmra.mxu1 %vm944_vm0, %v6905_v18 }
0x132b   : > { %6193 = vmatprep.mubr.f32.mxu1 %v8936_v36 }
0x132e   : > { %6626 = vmatmul.mubr.msk.f32.gmra.mxu1 %vm944_vm0, %v6058_v3 }
0x132f   : > { %6199 = vmatprep.mubr.f32.mxu1 %v8936_v36 }
0x1332   : > { %6627 = vmatmul.mubr.msk.f32.gmra.mxu1 %vm944_vm0, %v6908_v35 }
0x1333   : > { %6205 = vmatprep.mubr.f32.mxu1 %v8936_v36 }
0x1336   : > { %6628 = vmatmul.mubr.msk.f32.gmra.mxu1 %vm944_vm0, %v6068_v29 }
0x1337   : > { %6211 = vmatprep.mubr.f32.mxu1 %v8936_v36 }
0x133a   : > { %6629 = vmatmul.mubr.msk.f32.gmra.mxu1 %vm944_vm0, %v6911_v30 }
0x13de   : > { %v6171_v37 = vpop.f32.mrf.mxu1 }
0x13df   : > { %v6172_v34 = vadd.f32 %v6171_v37, %v5371_v19 }
0x13e0   : > { %v6173_v62 = vpop.f32.mrf.mxu1 }
0x13e1   : > { %6218 = vst [vmem:[%s8735_s1] sm:$0xff] %v6172_v34  ;;  %v6174_v36 = vadd.f32 %v6173_v62, %v5372_v51 }
0x13e2   : > { %v6177_v11 = vpop.f32.mrf.mxu1 }
0x13e3   : > { %6219 = vst [vmem:[%s8735_s1 + $0x8] sm:$0xff] %v6174_v36  ;;  %v6178_v55 = vadd.f32 %v6177_v11, %v5373_v23 }
0x13e4   : > { %v6179_v16 = vpop.f32.mrf.mxu1 }
0x13e5   : > { %6220 = vst [vmem:[%s8735_s1 + $0x10] sm:$0xff] %v6178_v55  ;;  %v6180_v42 = vadd.f32 %v6179_v16, %v5374_v28 }
0x13e6   : > { %v6183_v44 = vpop.f32.mrf.mxu1 }
0x13e7   : > { %6221 = vst [vmem:[%s8735_s1 + $0x18] sm:$0xff] %v6180_v42  ;;  %v6184_v19 = vadd.f32 %v6183_v44, %v5375_v10 }
0x13e8   : > { %v6185_v26 = vpop.f32.mrf.mxu1 }
0x13e9   : > { %6222 = vst [vmem:[%s8735_s1 + $0x20] sm:$0xff] %v6184_v19  ;;  %v6186_v51 = vadd.f32 %v6185_v26, %v5376_v57 }
0x13ea   : > { %v6189_v38 = vpop.f32.mrf.mxu1 }
0x13eb   : > { %6223 = vst [vmem:[%s8735_s1 + $0x28] sm:$0xff] %v6186_v51  ;;  %v6190_v23 = vadd.f32 %v6189_v38, %v5377_v47 }
0x13ec   : > { %v6191_v12 = vpop.f32.mrf.mxu1 }
0x13ed   : > { %6224 = vst [vmem:[%s8735_s1 + $0x30] sm:$0xff] %v6190_v23  ;;  %v6192_v28 = vadd.f32 %v6191_v12, %v5378_v7 }
0x13ee   : > { %v6195_v5 = vpop.f32.mrf.mxu1 }
0x13ef   : > { %6225 = vst [vmem:[%s8735_s1 + $0x38] sm:$0xff] %v6192_v28  ;;  %v6196_v10 = vadd.f32 %v6195_v5, %v5379_v24 }
0x13f0   : > { %v6197_v50 = vpop.f32.mrf.mxu1 }
0x13f1   : > { %6226 = vst [vmem:[%s8735_s1 + $0x40] sm:$0xff] %v6196_v10  ;;  %v6198_v57 = vadd.f32 %v6197_v50, %v5380_v58 }
0x13f2   : > { %v6201_v6 = vpop.f32.mrf.mxu1 }
0x13f3   : > { %6227 = vst [vmem:[%s8735_s1 + $0x48] sm:$0xff] %v6198_v57  ;;  %v6202_v47 = vadd.f32 %v6201_v6, %v5381_v63 }
0x13f4   : > { %v6203_v52 = vpop.f32.mrf.mxu1 }
0x13f5   : > { %6228 = vst [vmem:[%s8735_s1 + $0x50] sm:$0xff] %v6202_v47  ;;  %v6204_v7 = vadd.f32 %v6203_v52, %v5382_v27 }
0x13f6   : > { %v6207_v14 = vpop.f32.mrf.mxu1 }
0x13f7   : > { %6229 = vst [vmem:[%s8735_s1 + $0x58] sm:$0xff] %v6204_v7  ;;  %v6208_v24 = vadd.f32 %v6207_v14, %v5383_v9 }
0x13f8   : > { %v6209_v20 = vpop.f32.mrf.mxu1 }
0x13f9   : > { %6230 = vst [vmem:[%s8735_s1 + $0x60] sm:$0xff] %v6208_v24  ;;  %v6210_v17 = vadd.f32 %v6209_v20, %v5384_v13 }
0x13fa   : > { %v6213_v58 = vpop.f32.mrf.mxu1 }
0x13fb   : > { %6231 = vst [vmem:[%s8735_s1 + $0x68] sm:$0xff] %v6210_v17  ;;  %v6214_v32 = vadd.f32 %v6213_v58, %v5385_v15 }
0x13fc   : > { %v6215_v63 = vpop.f32.mrf.mxu1 }
0x13fd   : > { %6232 = vst [vmem:[%s8735_s1 + $0x70] sm:$0xff] %v6214_v32  ;;  %v6216_v31 = vadd.f32 %v6215_v63, %v5386_v54 }
0x13ff   : > { %6233 = vst [vmem:[%s8735_s1 + $0x78] sm:$0xff] %v6216_v31 }
0x1400 PF: > { %s69_s7 = sadd.s32 1, %s7038_s7  }
0x1401   : > { %p66_p4 = scmp.ge.s32.totalorder %s69_s7, 4  }
0x1403   :  { %68 = sbr.rel (!%p66_p4) target bundleno = 49 (0x31), region = 218 }

</bundles_post_ra>
